<compile_context>
chip_gen: v7x
topology: tpu7x:2x2x1
jax: 0.10.0
libtpu: 0.0.40
codegen_flags: <defaults>
</compile_context>

<pallas_src>
import functools

import jax
import jax.numpy as jnp
from jax.experimental import pallas as pl
from jax.experimental.pallas import tpu as pltpu


def _round_up(x, m):
    return (x + m - 1) // m * m


# --------------------------------------------------------------------------
# Kernel: one batch tile per grid step; all (padded) weights VMEM-resident.
# bf16 MXU inputs, f32 accumulate + f32 bias/ReLU/softmax epilogue (v5e's VPU
# has no bf16 VALU, so the epilogue stays f32 on every generation).
# --------------------------------------------------------------------------
def fcn_kernel(x_ref, w1_ref, b1_ref, w2_ref, b2_ref, w3_ref, b3_ref, o_ref):
    # ---- first_layer + ReLU (x already bf16: pad+cast fused in wrapper) ----
    h = jnp.dot(x_ref[...], w1_ref[...], preferred_element_type=jnp.float32)
    h = jnp.maximum(h + b1_ref[...], 0.0)

    # ---- mid layer (num_layers=3 -> exactly one Linear(1000,1000)+ReLU) ----
    h = jnp.dot(h.astype(jnp.bfloat16), w2_ref[...],
                preferred_element_type=jnp.float32)
    h = jnp.maximum(h + b2_ref[...], 0.0)

    # ---- last_layer (padded classes carry a -1e30 bias -> softmax mass 0) ----
    logits = jnp.dot(h.astype(jnp.bfloat16), w3_ref[...],
                     preferred_element_type=jnp.float32)
    logits = logits + b3_ref[...]

    # ---- numerically stable softmax over the lane-dense padded class axis.
    # Exact division for the denominator: the approx reciprocal (EUP) is not
    # accurate enough for rows to sum to 1 within 1e-3.
    m = jnp.max(logits, axis=1, keepdims=True)
    e = jnp.exp(logits - m)
    denom = jnp.sum(e, axis=1, keepdims=True)
    o_ref[...] = (e / denom).astype(o_ref.dtype)


# --------------------------------------------------------------------------
# Wrapper
# --------------------------------------------------------------------------
def fcn_forward(x, packed_params, *, num_class, batch_tile=512,
                out_dtype=jnp.float32):
    w1, b1, w2, b2, w3, b3 = packed_params   # padded, weights in bf16
    B, D = x.shape
    Dp, H = w1.shape
    Cp = w3.shape[1]
    out_itemsize = jnp.dtype(out_dtype).itemsize

    # Batch tiling: large-B path uses 256-aligned tiles (MXU M fill + per-step
    # overhead amortization); tiny-B path uses a single 16-aligned tile.
    if B > 128:
        tb = min(_round_up(batch_tile, 256), _round_up(B, 256))
    else:
        tb = _round_up(B, 16)
    Bp = _round_up(B, tb)
    n_tiles = Bp // tb

    # Fused pad + bf16 cast for x (single XLA op; halves per-tile x DMA bytes).
    x_bf = x.astype(jnp.bfloat16)
    if Bp != B or Dp != D:
        x_bf = jnp.pad(x_bf, ((0, Bp - B), (0, Dp - D)))

    # Cost estimate (advisory, static Python ints).
    flops = 2 * Bp * (Dp * H + H * H + H * Cp)
    bytes_accessed = (x_bf.size * 2
                      + (w1.size + w2.size + w3.size) * 2
                      + (b1.size + b2.size + b3.size) * 4
                      + Bp * Cp * out_itemsize)
    cost = pl.CostEstimate(flops=flops, transcendentals=Bp * Cp,
                           bytes_accessed=bytes_accessed)

    # VMEM budget: single-buffered weights/biases + double-buffered x/out
    # tiles + a few f32 intermediates, with 2x headroom. Cap at 64 MiB (v7x
    # physical), floor at 32 MiB (>= every generation's scoped default that
    # we rely on; v5e's default is only 16 MiB).
    weight_bytes = ((w1.size + w2.size + w3.size) * 2
                    + (b1.size + b2.size + b3.size) * 4)
    stream_bytes = 2 * (tb * Dp * 2 + tb * Cp * out_itemsize)
    interm_bytes = 4 * tb * H * 4
    vmem_limit = int(min(64 << 20,
                         max(32 << 20,
                             2 * (weight_bytes + stream_bytes + interm_bytes))))

    # Megacore sharding only when there are >=2 large tiles: each core fetches
    # its own copy of the resident weights, so small-B stays on one core.
    dim_sem = ("parallel",) if (n_tiles >= 2 and tb >= 256) else ("arbitrary",)

    # Grid-invariant (weights/biases): constant index_map + single buffer.
    def resident(shape):
        return pl.BlockSpec(shape, lambda i: (0,) * len(shape),
                            pipeline_mode=pl.Buffered(buffer_count=1))

    # NOTE: for the single-tile, weight-DMA-bound small-B path one could pass
    # w2/w3 with memory_space=pl.ANY and overlap their fetch with layer-1
    # compute via pltpu.make_async_copy; skipped here (saves only ~1-2us).
    out = pl.pallas_call(
        fcn_kernel,
        out_shape=jax.ShapeDtypeStruct((Bp, Cp), out_dtype),
        grid=(n_tiles,),
        in_specs=[
            pl.BlockSpec((tb, Dp), lambda i: (i, 0)),   # x: batch-tiled bf16
            resident(w1.shape), resident(b1.shape),     # weights: resident
            resident(w2.shape), resident(b2.shape),
            resident(w3.shape), resident(b3.shape),
        ],
        out_specs=pl.BlockSpec((tb, Cp), lambda i: (i, 0)),
        compiler_params=pltpu.CompilerParams(
            dimension_semantics=dim_sem,
            vmem_limit_bytes=vmem_limit),
        cost_estimate=cost,
    )(x_bf, w1, b1, w2, b2, w3, b3)

    return out[:B, :num_class].astype(jnp.float32)


# --------------------------------------------------------------------------
# Parameters
# --------------------------------------------------------------------------
def init_params(key, dimension, hidden=1000, num_class=2):
    """Raw f32 params, (in, out) layout, mimicking nn.Linear default init."""
    ks = jax.random.split(key, 6)

    def linear(kw, kb, fan_in, fan_out):
        bound = 1.0 / jnp.sqrt(jnp.float32(fan_in))
        w = jax.random.uniform(kw, (fan_in, fan_out), jnp.float32, -bound, bound)
        b = jax.random.uniform(kb, (1, fan_out), jnp.float32, -bound, bound)
        return w, b

    w1, b1 = linear(ks[0], ks[1], dimension, hidden)
    w2, b2 = linear(ks[2], ks[3], hidden, hidden)
    w3, b3 = linear(ks[4], ks[5], hidden, num_class)
    return (w1, b1, w2, b2, w3, b3)


def pack_params(raw_params):
    """Pad to MXU/lane-friendly shapes, cast weights to bf16, biases stay f32.

    Zero-padded input/hidden rows & columns are exact no-ops (ReLU(0)=0);
    padded class columns get bias -1e30 so their softmax probability is 0.
    """
    w1, b1, w2, b2, w3, b3 = raw_params
    D, H = w1.shape
    C = w3.shape[1]
    Dp = _round_up(D, 128)
    Hp = _round_up(H, 128)
    Cp = _round_up(C, 128)

    def pad_w(w, rp, cp):
        out = jnp.zeros((rp, cp), jnp.float32)
        return out.at[: w.shape[0], : w.shape[1]].set(w).astype(jnp.bfloat16)

    def pad_b(b, cp, fill=0.0):
        out = jnp.full((1, cp), fill, jnp.float32)
        return out.at[:, : b.shape[1]].set(b)

    return (
        pad_w(w1, Dp, Hp), pad_b(b1, Hp),
        pad_w(w2, Hp, Hp), pad_b(b2, Hp),
        pad_w(w3, Hp, Cp), pad_b(b3, Cp, fill=-1e30),
    )


# --------------------------------------------------------------------------
# References
# --------------------------------------------------------------------------
def fcn_reference_f32(x, raw_params):
    w1, b1, w2, b2, w3, b3 = raw_params
    h = jnp.maximum(x @ w1 + b1, 0.0)
    h = jnp.maximum(h @ w2 + b2, 0.0)
    return jax.nn.softmax(h @ w3 + b3, axis=1)


def fcn_reference_bf16(x, packed_params, num_class):
    """Mirror of the kernel's exact bf16-weight / f32-accumulate math."""
    w1, b1, w2, b2, w3, b3 = packed_params
    B, D = x.shape
    Dp = w1.shape[0]
    xp = jnp.zeros((B, Dp), jnp.float32).at[:, :D].set(x)
    h = jnp.dot(xp.astype(jnp.bfloat16), w1, preferred_element_type=jnp.float32)
    h = jnp.maximum(h + b1, 0.0)
    h = jnp.dot(h.astype(jnp.bfloat16), w2, preferred_element_type=jnp.float32)
    h = jnp.maximum(h + b2, 0.0)
    logits = jnp.dot(h.astype(jnp.bfloat16), w3,
                     preferred_element_type=jnp.float32) + b3
    return jax.nn.softmax(logits, axis=1)[:, :num_class]


# --------------------------------------------------------------------------
if __name__ == "__main__":
    key = jax.random.PRNGKey(0)
    k_x, k_p = jax.random.split(key)

    batch, dimension, num_class = 8, 64, 2
    x = jax.random.normal(k_x, (batch, dimension), jnp.float32)

    raw_params = init_params(k_p, dimension, hidden=1000, num_class=num_class)
    packed_params = pack_params(raw_params)

    fwd = jax.jit(functools.partial(fcn_forward, num_class=num_class))
    out = jax.block_until_ready(fwd(x, packed_params))

    assert out.shape == (batch, num_class)

    # Tight check vs an exact bf16-weight mirror of the kernel math.
    ref_bf16 = fcn_reference_bf16(x, packed_params, num_class)
    assert jnp.allclose(out, ref_bf16, atol=2e-3, rtol=2e-3), \
        "mismatch vs bf16 mirror reference"

    # Loose check vs the full-f32 PyTorch-equivalent forward (bf16 quant noise).
    ref_f32 = fcn_reference_f32(x, raw_params)
    assert jnp.allclose(out, ref_f32, atol=2e-2, rtol=2e-2), \
        "mismatch vs f32 reference"

    # Exact-division softmax: rows sum to 1 up to f32 rounding.
    assert jnp.allclose(jnp.sum(out, axis=1), 1.0, atol=1e-3), \
        "softmax rows must sum to 1"

    print("KERNEL_OK")
</pallas_src>

<mosaic_0001>
module attributes {stable_mosaic.version = 11 : i64} {
  func.func @fcn_kernel(%arg0: i32, %arg1: memref<16x128xbf16, #tpu.memory_space<vmem>>, %arg2: memref<128x1024xbf16, #tpu.memory_space<vmem>>, %arg3: memref<1x1024xf32, #tpu.memory_space<vmem>>, %arg4: memref<1024x1024xbf16, #tpu.memory_space<vmem>>, %arg5: memref<1x1024xf32, #tpu.memory_space<vmem>>, %arg6: memref<1024x128xbf16, #tpu.memory_space<vmem>>, %arg7: memref<1x128xf32, #tpu.memory_space<vmem>>, %arg8: memref<16x128xf32, #tpu.memory_space<vmem>>) attributes {dimension_semantics = [#tpu.dimension_semantics<arbitrary>], iteration_bounds = array<i64: 1>, scalar_prefetch = 0 : i64, scratch_operands = 0 : i64, tpu.core_type = #tpu.core_type<tc>, window_params = [{transform_indices = @transform_0, window_bounds = array<i64: 16, 128>}, {pipeline_mode = #tpu.pipeline_mode<synchronous>, transform_indices = @transform_1, window_bounds = array<i64: 128, 1024>}, {pipeline_mode = #tpu.pipeline_mode<synchronous>, transform_indices = @transform_2, window_bounds = array<i64: 1, 1024>}, {pipeline_mode = #tpu.pipeline_mode<synchronous>, transform_indices = @transform_3, window_bounds = array<i64: 1024, 1024>}, {pipeline_mode = #tpu.pipeline_mode<synchronous>, transform_indices = @transform_4, window_bounds = array<i64: 1, 1024>}, {pipeline_mode = #tpu.pipeline_mode<synchronous>, transform_indices = @transform_5, window_bounds = array<i64: 1024, 128>}, {pipeline_mode = #tpu.pipeline_mode<synchronous>, transform_indices = @transform_6, window_bounds = array<i64: 1, 128>}, {transform_indices = @transform_7, window_bounds = array<i64: 16, 128>}]} {
    %c0 = arith.constant 0 : index
    %c0_0 = arith.constant 0 : index
    %0 = vector.load %arg1[%c0, %c0_0] : memref<16x128xbf16, #tpu.memory_space<vmem>>, vector<16x128xbf16>
    %c0_1 = arith.constant 0 : index
    %c0_2 = arith.constant 0 : index
    %1 = vector.load %arg2[%c0_1, %c0_2] : memref<128x1024xbf16, #tpu.memory_space<vmem>>, vector<128x1024xbf16>
    %cst = arith.constant dense<0.000000e+00> : vector<16x1024xf32>
    %2 = tpu.matmul %0, %1, %cst {dimension_numbers = #tpu.dot_dimension_numbers<[1], [0], [0], [1], [0, 0, 1, 1], [], []>} : vector<16x128xbf16>, vector<128x1024xbf16>, vector<16x1024xf32> -> vector<16x1024xf32>
    %c0_3 = arith.constant 0 : index
    %c0_4 = arith.constant 0 : index
    %3 = vector.load %arg3[%c0_3, %c0_4] : memref<1x1024xf32, #tpu.memory_space<vmem>>, vector<1x1024xf32>
    %4 = vector.broadcast %3 : vector<1x1024xf32> to vector<16x1024xf32>
    %5 = arith.addf %2, %4 : vector<16x1024xf32>
    %cst_5 = arith.constant 0.000000e+00 : f32
    %6 = vector.broadcast %cst_5 : f32 to vector<16x1024xf32>
    %7 = arith.maximumf %5, %6 : vector<16x1024xf32>
    %8 = arith.truncf %7 : vector<16x1024xf32> to vector<16x1024xbf16>
    %c0_6 = arith.constant 0 : index
    %c0_7 = arith.constant 0 : index
    %9 = vector.load %arg4[%c0_6, %c0_7] : memref<1024x1024xbf16, #tpu.memory_space<vmem>>, vector<1024x1024xbf16>
    %cst_8 = arith.constant dense<0.000000e+00> : vector<16x1024xf32>
    %10 = tpu.matmul %8, %9, %cst_8 {dimension_numbers = #tpu.dot_dimension_numbers<[1], [0], [0], [1], [0, 0, 1, 1], [], []>} : vector<16x1024xbf16>, vector<1024x1024xbf16>, vector<16x1024xf32> -> vector<16x1024xf32>
    %c0_9 = arith.constant 0 : index
    %c0_10 = arith.constant 0 : index
    %11 = vector.load %arg5[%c0_9, %c0_10] : memref<1x1024xf32, #tpu.memory_space<vmem>>, vector<1x1024xf32>
    %12 = vector.broadcast %11 : vector<1x1024xf32> to vector<16x1024xf32>
    %13 = arith.addf %10, %12 : vector<16x1024xf32>
    %cst_11 = arith.constant 0.000000e+00 : f32
    %14 = vector.broadcast %cst_11 : f32 to vector<16x1024xf32>
    %15 = arith.maximumf %13, %14 : vector<16x1024xf32>
    %16 = arith.truncf %15 : vector<16x1024xf32> to vector<16x1024xbf16>
    %c0_12 = arith.constant 0 : index
    %c0_13 = arith.constant 0 : index
    %17 = vector.load %arg6[%c0_12, %c0_13] : memref<1024x128xbf16, #tpu.memory_space<vmem>>, vector<1024x128xbf16>
    %cst_14 = arith.constant dense<0.000000e+00> : vector<16x128xf32>
    %18 = tpu.matmul %16, %17, %cst_14 {dimension_numbers = #tpu.dot_dimension_numbers<[1], [0], [0], [1], [0, 0, 1, 1], [], []>} : vector<16x1024xbf16>, vector<1024x128xbf16>, vector<16x128xf32> -> vector<16x128xf32>
    %c0_15 = arith.constant 0 : index
    %c0_16 = arith.constant 0 : index
    %19 = vector.load %arg7[%c0_15, %c0_16] : memref<1x128xf32, #tpu.memory_space<vmem>>, vector<1x128xf32>
    %20 = vector.broadcast %19 : vector<1x128xf32> to vector<16x128xf32>
    %21 = arith.addf %18, %20 : vector<16x128xf32>
    %cst_17 = arith.constant dense<0xFF800000> : vector<16xf32>
    %22 = vector.multi_reduction <maximumf>, %21, %cst_17 [1] : vector<16x128xf32> to vector<16xf32>
    %23 = vector.shape_cast %22 : vector<16xf32> to vector<16x1xf32>
    %24 = vector.broadcast %23 : vector<16x1xf32> to vector<16x128xf32>
    %25 = arith.subf %21, %24 : vector<16x128xf32>
    %26 = math.exp %25 : vector<16x128xf32>
    %cst_18 = arith.constant dense<0.000000e+00> : vector<16xf32>
    %27 = vector.multi_reduction <add>, %26, %cst_18 [1] : vector<16x128xf32> to vector<16xf32>
    %28 = vector.shape_cast %27 : vector<16xf32> to vector<16x1xf32>
    %29 = vector.broadcast %28 : vector<16x1xf32> to vector<16x128xf32>
    %30 = arith.divf %26, %29 : vector<16x128xf32>
    %c0_19 = arith.constant 0 : index
    %c0_20 = arith.constant 0 : index
    %31 = vector.load %arg8[%c0_19, %c0_20] : memref<16x128xf32, #tpu.memory_space<vmem>>, vector<16x128xf32>
    tpu.vector_store %arg8[%c0_19, %c0_20], %30 {strides = array<i32>} : memref<16x128xf32, #tpu.memory_space<vmem>>, vector<16x128xf32>,
    return
  }
  func.func @transform_0(%arg0: i32) -> (i32, i32) {
    %c0_i32 = arith.constant 0 : i32
    %c0_i32_0 = arith.constant 0 : i32
    return %arg0, %c0_i32 : i32, i32
  }
  func.func @transform_1(%arg0: i32) -> (i32, i32) {
    %c0_i32 = arith.constant 0 : i32
    %c0_i32_0 = arith.constant 0 : i32
    %c0_i32_1 = arith.constant 0 : i32
    return %c0_i32, %c0_i32_0 : i32, i32
  }
  func.func @transform_2(%arg0: i32) -> (i32, i32) {
    %c0_i32 = arith.constant 0 : i32
    %c0_i32_0 = arith.constant 0 : i32
    %c0_i32_1 = arith.constant 0 : i32
    return %c0_i32, %c0_i32_0 : i32, i32
  }
  func.func @transform_3(%arg0: i32) -> (i32, i32) {
    %c0_i32 = arith.constant 0 : i32
    %c0_i32_0 = arith.constant 0 : i32
    %c0_i32_1 = arith.constant 0 : i32
    return %c0_i32, %c0_i32_0 : i32, i32
  }
  func.func @transform_4(%arg0: i32) -> (i32, i32) {
    %c0_i32 = arith.constant 0 : i32
    %c0_i32_0 = arith.constant 0 : i32
    %c0_i32_1 = arith.constant 0 : i32
    return %c0_i32, %c0_i32_0 : i32, i32
  }
  func.func @transform_5(%arg0: i32) -> (i32, i32) {
    %c0_i32 = arith.constant 0 : i32
    %c0_i32_0 = arith.constant 0 : i32
    %c0_i32_1 = arith.constant 0 : i32
    return %c0_i32, %c0_i32_0 : i32, i32
  }
  func.func @transform_6(%arg0: i32) -> (i32, i32) {
    %c0_i32 = arith.constant 0 : i32
    %c0_i32_0 = arith.constant 0 : i32
    %c0_i32_1 = arith.constant 0 : i32
    return %c0_i32, %c0_i32_0 : i32, i32
  }
  func.func @transform_7(%arg0: i32) -> (i32, i32) {
    %c0_i32 = arith.constant 0 : i32
    %c0_i32_0 = arith.constant 0 : i32
    return %arg0, %c0_i32 : i32, i32
  }
}

</mosaic_0001>

<bundles_post_ra>
// kernel: fcn_forward.1
= control target key start
LH: loop header
LB: loop body
LE: loop exit
PB: predicated region body
PF: predicated region fallthrough
CT: control target
= control target key end

     0   :  { %12 = vsyncpa [#allocation3], 0  ;;  %s6568_s0 = inlined_call_operand.vmem [shape: bf16[16,128], index: 0, kind: input, shape index: {}]   ;;  %s6569_s1 = inlined_call_operand.hbm [shape: bf16[128,1024], index: 1, kind: input, shape index: {}]   ;;  %s6570_s2 = inlined_call_operand.hbm [shape: f32[1,1024], index: 2, kind: input, shape index: {}]   ;;  %s6571_s3 = inlined_call_operand.hbm [shape: bf16[1024,1024], index: 3, kind: input, shape index: {}]   ;;  %s6572_s4 = inlined_call_operand.hbm [shape: f32[1,1024], index: 4, kind: input, shape index: {}]   ;;  %s6573_s5 = inlined_call_operand.hbm [shape: bf16[1024,128], index: 5, kind: input, shape index: {}]   ;;  %s6574_s6 = inlined_call_operand.hbm [shape: f32[1,128], index: 6, kind: input, shape index: {}]   ;;  %s6575_s7 = inlined_call_operand.vmem [shape: f32[16,128], index: 7, kind: output, shape index: {}]  }
   0x1   :  { %13 = vsyncpa [#allocation5], 0 }
   0x2   :  { %14 = vsyncpa [#allocation8], 0 }
   0x3   :  { %15 = vsyncpa [#allocation11], 0  ;;  %s6288_s24 = smov [#allocation4]   ;;  %s6289_s26 = smov [#allocation7]  }
   0x4   :  { %s36_s25 = sshll.u32 %s6288_s24, 4  ;;  %s58_s27 = sshll.u32 %s6289_s26, 4  ;;  %s37_s25 = int_to_ptr.vmem [resolvable:$true] %s36_s25  ;;  %s59_s27 = int_to_ptr.vmem [resolvable:$true] %s58_s27 }
   0x5   :  { %s6148_s30 = scalar_lea.hbm %s6570_s2, 128 }
   0x6   :  { %p6149_p0 = scmp.ne.s32.totalorder %s6570_s2, %s6148_s30  ;;  %p6152_p1 = scmp.lt.u32.totalorder %s6148_s30, %s6570_s2 }
   0x8   :  { %p6154_p2 = pnand %p6152_p1, %p6149_p0 }
   0xa   :  { %6157 = shalt.err (!%p6154_p2)
}
   0xb   :  { %s6158_s12 = scalar_lea.vmem %s37_s25, 128  ;;  %p6163_p4 = scmp.lt.s32.totalorder %s37_s25, %s37_s25 }
   0xc   :  { %p6159_p3 = scmp.ne.s32.totalorder %s37_s25, %s6158_s12  ;;  %p6164_p5 = scmp.lt.s32.totalorder %s6158_s12, %s6158_s12 }
   0xe   :  { %p6165_p6 = por %p6164_p5, %p6163_p4 }
  0x10   :  { %p6166_p7 = pnand %p6165_p6, %p6159_p3 }
  0x12   :  { %6169 = shalt.err (!%p6166_p7)
}
  0x13   :  { %39 = dma.hbm_to_vmem [thread:$0]  %s6570_s2, 128, %s37_s25, [#allocation5]  }
  0x14   :  { %s6170_s17 = scalar_lea.hbm %s6572_s4, 128 }
  0x15   :  { %p6171_p8 = scmp.ne.s32.totalorder %s6572_s4, %s6170_s17  ;;  %p6174_p9 = scmp.lt.u32.totalorder %s6170_s17, %s6572_s4 }
  0x17   :  { %p6176_p10 = pnand %p6174_p9, %p6171_p8 }
  0x19   :  { %6179 = shalt.err (!%p6176_p10)
}
  0x1a   :  { %s6180_s22 = scalar_lea.vmem %s59_s27, 128  ;;  %p6185_p12 = scmp.lt.s32.totalorder %s59_s27, %s59_s27 }
  0x1b   :  { %p6181_p11 = scmp.ne.s32.totalorder %s59_s27, %s6180_s22  ;;  %p6186_p13 = scmp.lt.s32.totalorder %s6180_s22, %s6180_s22 }
  0x1d   :  { %p6187_p0 = por %p6186_p13, %p6185_p12 }
  0x1f   :  { %p6188_p1 = pnand %p6187_p0, %p6181_p11 }
  0x21   :  { %6191 = shalt.err (!%p6188_p1)
}
  0x22   :  { %61 = dma.hbm_to_vmem [thread:$0]  %s6572_s4, 128, %s59_s27, [#allocation8]  }
  0x23   :  { %s6290_s24 = smov [#allocation2]   ;;  %s6192_s29 = scalar_lea.hbm %s6569_s1, 8192 }
  0x24   :  { %s23_s25 = sshll.u32 %s6290_s24, 4  ;;  %p6193_p2 = scmp.ne.s32.totalorder %s6569_s1, %s6192_s29  ;;  %s24_s25 = int_to_ptr.vmem [resolvable:$true] %s23_s25 }
  0x25   :  { %p6196_p3 = scmp.lt.u32.totalorder %s6192_s29, %s6569_s1 }
  0x27   :  { %p6198_p4 = pnand %p6196_p3, %p6193_p2 }
  0x29   :  { %6201 = shalt.err (!%p6198_p4)
}
  0x2a   :  { %s6202_s11 = scalar_lea.vmem %s24_s25, 8192  ;;  %p6207_p6 = scmp.lt.s32.totalorder %s24_s25, %s24_s25 }
  0x2b   :  { %p6203_p5 = scmp.ne.s32.totalorder %s24_s25, %s6202_s11  ;;  %p6208_p7 = scmp.lt.s32.totalorder %s6202_s11, %s6202_s11 }
  0x2d   :  { %p6209_p8 = por %p6208_p7, %p6207_p6 }
  0x2f   :  { %p6210_p9 = pnand %p6209_p8, %p6203_p5 }
  0x31   :  { %6213 = shalt.err (!%p6210_p9)
}
  0x32   :  { %s6291_s4 = smov 512   ;;  %s6292_s27 = smov 32  }
  0x33   :  { %29 = dma.hbm_to_vmem [thread:$0]  %s6569_s1, 8192, %s24_s25, [#allocation3], %s6291_s4, %s6291_s4, %s6292_s27  }
  0x34   :  { %s6293_s14 = smov [#allocation6]   ;;  %s6294_s16 = smov [#allocation9]  }
  0x35   :  { %s45_s15 = sshll.u32 %s6293_s14, 4  ;;  %s67_s17 = sshll.u32 %s6294_s16, 4  ;;  %s46_s15 = int_to_ptr.vmem [resolvable:$true] %s45_s15  ;;  %s68_s17 = int_to_ptr.vmem [resolvable:$true] %s67_s17 }
  0x36   :  { %s6214_s20 = scalar_lea.hbm %s6571_s3, 65536 }
  0x37   :  { %p6215_p10 = scmp.ne.s32.totalorder %s6571_s3, %s6214_s20  ;;  %p6218_p11 = scmp.lt.u32.totalorder %s6214_s20, %s6571_s3 }
  0x39   :  { %p6220_p12 = pnand %p6218_p11, %p6215_p10 }
  0x3b   :  { %6223 = shalt.err (!%p6220_p12)
}
  0x3c   :  { %s6224_s1 = scalar_lea.vmem %s46_s15, 65536  ;;  %p6229_p0 = scmp.lt.s32.totalorder %s46_s15, %s46_s15 }
  0x3d   :  { %p6225_p13 = scmp.ne.s32.totalorder %s46_s15, %s6224_s1  ;;  %p6230_p1 = scmp.lt.s32.totalorder %s6224_s1, %s6224_s1 }
  0x3f   :  { %p6231_p2 = por %p6230_p1, %p6229_p0 }
  0x41   :  { %p6232_p3 = pnand %p6231_p2, %p6225_p13 }
  0x43   :  { %6235 = shalt.err (!%p6232_p3)
}
  0x44   :  { %51 = dma.hbm_to_vmem [thread:$0]  %s6571_s3, 65536, %s46_s15, [#allocation5], %s6291_s4, %s6291_s4, %s6292_s27  }
  0x45   :  { %s6236_s29 = scalar_lea.hbm %s6573_s5, 8192 }
  0x46   :  { %p6237_p4 = scmp.ne.s32.totalorder %s6573_s5, %s6236_s29  ;;  %p6240_p5 = scmp.lt.u32.totalorder %s6236_s29, %s6573_s5 }
  0x48   :  { %p6242_p6 = pnand %p6240_p5, %p6237_p4 }
  0x4a   :  { %6245 = shalt.err (!%p6242_p6)
}
  0x4b   :  { %s6246_s11 = scalar_lea.vmem %s68_s17, 8192  ;;  %p6251_p8 = scmp.lt.s32.totalorder %s68_s17, %s68_s17 }
  0x4c   :  { %p6247_p7 = scmp.ne.s32.totalorder %s68_s17, %s6246_s11  ;;  %p6252_p9 = scmp.lt.s32.totalorder %s6246_s11, %s6246_s11 }
  0x4e   :  { %p6253_p10 = por %p6252_p9, %p6251_p8 }
  0x50   :  { %p6254_p11 = pnand %p6253_p10, %p6247_p7 }
  0x52   :  { %6257 = shalt.err (!%p6254_p11)
}
  0x53   :  { %s6295_s3 = smov 64   ;;  %s6296_s4 = smov 4  }
  0x54   :  { %73 = dma.hbm_to_vmem [thread:$0]  %s6573_s5, 8192, %s68_s17, [#allocation8], %s6295_s3, %s6295_s3, %s6296_s4  }
  0x55   :  { %s6297_s13 = smov [#allocation10]   ;;  %s6258_s18 = scalar_lea.hbm %s6574_s6, 16 }
  0x56   :  { %s80_s14 = sshll.u32 %s6297_s13, 4  ;;  %p6259_p12 = scmp.ne.s32.totalorder %s6574_s6, %s6258_s18  ;;  %s81_s14 = int_to_ptr.vmem [resolvable:$true] %s80_s14 }
  0x57   :  { %p6262_p13 = scmp.lt.u32.totalorder %s6258_s18, %s6574_s6 }
  0x59   :  { %p6264_p0 = pnand %p6262_p13, %p6259_p12 }
  0x5b   :  { %6267 = shalt.err (!%p6264_p0)
}
  0x5c   :  { %s6268_s2 = scalar_lea.vmem %s81_s14, 16  ;;  %s6272_s5 = scalar_lea.vmem %s81_s14, 32 }
  0x5d   :  { %p6269_p1 = scmp.ne.s32.totalorder %s81_s14, %s6268_s2  ;;  %p6273_p2 = scmp.lt.s32.totalorder %s81_s14, %s81_s14 }
  0x5e   :  { %p6274_p3 = scmp.lt.s32.totalorder %s6272_s5, %s6268_s2 }
  0x60   :  { %p6275_p4 = por %p6274_p3, %p6273_p2 }
  0x62   :  { %p6276_p5 = pnand %p6275_p4, %p6269_p1 }
  0x64   :  { %6279 = shalt.err (!%p6276_p5)
}
  0x65   :  { %83 = dma.hbm_to_vmem [thread:$0]  %s6574_s6, 16, %s81_s14, [#allocation11]  }
  0x66   :  { %6280 = dma.done.wait [#allocation3], 8192  }
  0x67   :  { %6281 = vsyncadd [#allocation3], 4294959104 }
  0x68   :  { %6282 = dma.done.wait [#allocation5], 65664  }
  0x69   :  { %6283 = vsyncadd [#allocation5], 4294901632 }
  0x6a   :  { %6284 = dma.done.wait [#allocation8], 8320  }
  0x6b   :  { %6285 = vsyncadd [#allocation8], 4294958976 }
  0x6c   :  { %6286 = dma.done.wait [#allocation11], 16  }
  0x6d   :  { %6287 = vsyncadd [#allocation11], 4294967280  ;;  %v6298_v0 = vmov 0   ;;  %v105_v1 = vld [vmem:[#allocation2] sm:$0xff]  ;;  %v106_v14 = vld [vmem:[#allocation2 + $0x8] sm:$0xff] }
  0x6e   :  { %569 = vmatprep.mubr.bf16.mxu0 %v6298_v0  ;;  %612 = vmatprep.mubr.bf16.mxu1 %v6298_v0  ;;  %v109_v2 = vld [vmem:[#allocation2 + $0x20] sm:$0xff]  ;;  %v110_v15 = vld [vmem:[#allocation2 + $0x28] sm:$0xff]  ;;  %v107_v58 = vld [vmem:[#allocation2 + $0x10] sm:$0xff] }
  0x6f   :  { %v113_v3 = vld [vmem:[#allocation2 + $0x40] sm:$0xff]  ;;  %v5272_v4 = vcombine.high %v105_v1, %v109_v2  ;;  %v5271_v5 = vcombine.low %v105_v1, %v109_v2  ;;  %v5274_v16 = vcombine.high %v106_v14, %v110_v15  ;;  %v5273_v17 = vcombine.low %v106_v14, %v110_v15  ;;  %v114_v18 = vld [vmem:[#allocation2 + $0x48] sm:$0xff]  ;;  %v111_v59 = vld [vmem:[#allocation2 + $0x30] sm:$0xff] }
  0x70   :  { %v117_v6 = vld [vmem:[#allocation2 + $0x60] sm:$0xff]  ;;  %v118_v19 = vld [vmem:[#allocation2 + $0x68] sm:$0xff]  ;;  %v5276_v1 = vcombine.high %v107_v58, %v111_v59 }
  0x71   :  { %v5280_v7 = vcombine.high %v113_v3, %v117_v6  ;;  %v121_v8 = vld [vmem:[#allocation2 + $0x80] sm:$0xff]  ;;  %537 = vmatprep.subr.bf16.mxu0 %v5272_v4  ;;  %v5279_v10 = vcombine.low %v113_v3, %v117_v6  ;;  %v5282_v21 = vcombine.high %v114_v18, %v118_v19  ;;  %v122_v22 = vld [vmem:[#allocation2 + $0x88] sm:$0xff]  ;;  %580 = vmatprep.subr.bf16.mxu1 %v5274_v16  ;;  %v115_v3 = vld [vmem:[#allocation2 + $0x50] sm:$0xff] }
  0x72   :  { %v125_v9 = vld [vmem:[#allocation2 + $0xa0] sm:$0xff]  ;;  %538 = vmatpush1.bf16.msra.mxu0 %v5271_v5  ;;  %v126_v23 = vld [vmem:[#allocation2 + $0xa8] sm:$0xff]  ;;  %581 = vmatpush1.bf16.msra.mxu1 %v5273_v17  ;;  %v5281_v27 = vcombine.low %v114_v18, %v118_v19  ;;  %v119_v4 = vld [vmem:[#allocation2 + $0x70] sm:$0xff] }
  0x73   :  { %539 = vmatprep.subr.bf16.mxu0 %v5280_v7  ;;  %v5288_v11 = vcombine.high %v121_v8, %v125_v9  ;;  %v129_v12 = vld [vmem:[#allocation2 + $0xc0] sm:$0xff]  ;;  %v5287_v20 = vcombine.low %v121_v8, %v125_v9  ;;  %582 = vmatprep.subr.bf16.mxu1 %v5282_v21  ;;  %v5290_v28 = vcombine.high %v122_v22, %v126_v23  ;;  %v130_v30 = vld [vmem:[#allocation2 + $0xc8] sm:$0xff]  ;;  %v108_v8 = vld [vmem:[#allocation2 + $0x18] sm:$0xff] }
  0x74   :  { %v133_v13 = vld [vmem:[#allocation2 + $0xe0] sm:$0xff]  ;;  %v134_v31 = vld [vmem:[#allocation2 + $0xe8] sm:$0xff]  ;;  %v5289_v35 = vcombine.low %v122_v22, %v126_v23  ;;  %v5275_v7 = vcombine.low %v107_v58, %v111_v59  ;;  %v112_v9 = vld [vmem:[#allocation2 + $0x38] sm:$0xff]  ;;  %v5283_v15 = vcombine.low %v115_v3, %v119_v4 }
  0x75   :  { %v5296_v24 = vcombine.high %v129_v12, %v133_v13  ;;  %v137_v25 = vld [vmem:[#allocation2 + $0x100] sm:$0xff]  ;;  %v5295_v29 = vcombine.low %v129_v12, %v133_v13  ;;  %v5298_v36 = vcombine.high %v130_v30, %v134_v31  ;;  %v138_v38 = vld [vmem:[#allocation2 + $0x108] sm:$0xff]  ;;  %v5297_v43 = vcombine.low %v130_v30, %v134_v31  ;;  %v123_v12 = vld [vmem:[#allocation2 + $0x90] sm:$0xff] }
  0x76   :  { %540 = vmatpush1.bf16.msra.mxu0 %v5279_v10  ;;  %v141_v26 = vld [vmem:[#allocation2 + $0x120] sm:$0xff]  ;;  %583 = vmatpush1.bf16.msra.mxu1 %v5281_v27  ;;  %v142_v39 = vld [vmem:[#allocation2 + $0x128] sm:$0xff]  ;;  %v5284_v10 = vcombine.high %v115_v3, %v119_v4  ;;  %v127_v13 = vld [vmem:[#allocation2 + $0xb0] sm:$0xff]  ;;  %v5278_v14 = vcombine.high %v108_v8, %v112_v9  ;;  %v5277_v21 = vcombine.low %v108_v8, %v112_v9 }
  0x77   :  { %541 = vmatprep.subr.bf16.mxu0 %v5288_v11  ;;  %v5304_v32 = vcombine.high %v137_v25, %v141_v26  ;;  %v145_v33 = vld [vmem:[#allocation2 + $0x140] sm:$0xff]  ;;  %584 = vmatprep.subr.bf16.mxu1 %v5290_v28  ;;  %v5303_v37 = vcombine.low %v137_v25, %v141_v26  ;;  %v5306_v44 = vcombine.high %v138_v38, %v142_v39  ;;  %v146_v46 = vld [vmem:[#allocation2 + $0x148] sm:$0xff]  ;;  %v116_v16 = vld [vmem:[#allocation2 + $0x58] sm:$0xff] }
  0x78   :  { %v149_v34 = vld [vmem:[#allocation2 + $0x160] sm:$0xff]  ;;  %v150_v47 = vld [vmem:[#allocation2 + $0x168] sm:$0xff]  ;;  %v5305_v51 = vcombine.low %v138_v38, %v142_v39  ;;  %v120_v17 = vld [vmem:[#allocation2 + $0x78] sm:$0xff]  ;;  %v5292_v18 = vcombine.high %v123_v12, %v127_v13  ;;  %v5291_v23 = vcombine.low %v123_v12, %v127_v13 }
  0x79   :  { %v5312_v40 = vcombine.high %v145_v33, %v149_v34  ;;  %v153_v41 = vld [vmem:[#allocation2 + $0x180] sm:$0xff]  ;;  %v5311_v45 = vcombine.low %v145_v33, %v149_v34  ;;  %v5314_v52 = vcombine.high %v146_v46, %v150_v47  ;;  %v154_v54 = vld [vmem:[#allocation2 + $0x188] sm:$0xff]  ;;  %v5313_v57 = vcombine.low %v146_v46, %v150_v47  ;;  %v131_v19 = vld [vmem:[#allocation2 + $0xd0] sm:$0xff] }
  0x7a   :  { %542 = vmatpush1.bf16.msra.mxu0 %v5287_v20  ;;  %v157_v42 = vld [vmem:[#allocation2 + $0x1a0] sm:$0xff]  ;;  %585 = vmatpush1.bf16.msra.mxu1 %v5289_v35  ;;  %v158_v55 = vld [vmem:[#allocation2 + $0x1a8] sm:$0xff]  ;;  %v135_v20 = vld [vmem:[#allocation2 + $0xf0] sm:$0xff]  ;;  %v5286_v22 = vcombine.high %v116_v16, %v120_v17 }
  0x7b   :  { %543 = vmatprep.subr.bf16.mxu0 %v5296_v24  ;;  %586 = vmatprep.subr.bf16.mxu1 %v5298_v36  ;;  %v5320_v48 = vcombine.high %v153_v41, %v157_v42  ;;  %v161_v49 = vld [vmem:[#allocation2 + $0x1c0] sm:$0xff]  ;;  %v5319_v53 = vcombine.low %v153_v41, %v157_v42  ;;  %v5322_v60 = vcombine.high %v154_v54, %v158_v55  ;;  %v162_v62 = vld [vmem:[#allocation2 + $0x1c8] sm:$0xff]  ;;  %v139_v24 = vld [vmem:[#allocation2 + $0x110] sm:$0xff] }
  0x7c   :  { %v165_v50 = vld [vmem:[#allocation2 + $0x1e0] sm:$0xff]  ;;  %v166_v63 = vld [vmem:[#allocation2 + $0x1e8] sm:$0xff]  ;;  %v5321_v2 = vcombine.low %v154_v54, %v158_v55  ;;  %v124_v25 = vld [vmem:[#allocation2 + $0x98] sm:$0xff]  ;;  %v5300_v27 = vcombine.high %v131_v19, %v135_v20  ;;  %v5299_v33 = vcombine.low %v131_v19, %v135_v20 }
  0x7d   :  { %v5328_v56 = vcombine.high %v161_v49, %v165_v50  ;;  %v5327_v61 = vcombine.low %v161_v49, %v165_v50  ;;  %v6416_v5 = vld [vmem:[%s6568_s0] sm:$0xff]   ;;  %v5330_v6 = vcombine.high %v162_v62, %v166_v63  ;;  %v5329_v11 = vcombine.low %v162_v62, %v166_v63  ;;  %v128_v26 = vld [vmem:[#allocation2 + $0xb8] sm:$0xff]  ;;  %v143_v28 = vld [vmem:[#allocation2 + $0x130] sm:$0xff] }
  0x7e   :  { %544 = vmatpush1.bf16.msra.mxu0 %v5295_v29  ;;  %587 = vmatpush1.bf16.msra.mxu1 %v5297_v43  ;;  %v5285_v29 = vcombine.low %v116_v16, %v120_v17  ;;  %v132_v30 = vld [vmem:[#allocation2 + $0xd8] sm:$0xff]  ;;  %v147_v34 = vld [vmem:[#allocation2 + $0x150] sm:$0xff]  ;;  %v5308_v36 = vcombine.high %v139_v24, %v143_v28  ;;  %v5307_v41 = vcombine.low %v139_v24, %v143_v28  ;;  %v737_v58 = vld [vmem:[#allocation6 + $0x20] sm:$0xff] }
  0x7f   :  { %545 = vmatprep.subr.bf16.mxu0 %v5304_v32  ;;  %588 = vmatprep.subr.bf16.mxu1 %v5306_v44  ;;  %v136_v31 = vld [vmem:[#allocation2 + $0xf8] sm:$0xff]  ;;  %v5294_v32 = vcombine.high %v124_v25, %v128_v26  ;;  %v151_v35 = vld [vmem:[#allocation2 + $0x170] sm:$0xff]  ;;  %v745_v3 = vld [vmem:[#allocation6 + $0x60] sm:$0xff] }
  0x80   :  { %v140_v38 = vld [vmem:[#allocation2 + $0x118] sm:$0xff]  ;;  %v155_v42 = vld [vmem:[#allocation2 + $0x190] sm:$0xff]  ;;  %v5301_v44 = vcombine.low %v132_v30, %v136_v31  ;;  %v753_v12 = vld [vmem:[#allocation6 + $0xa0] sm:$0xff] }
  0x81   :  { %v144_v39 = vld [vmem:[#allocation2 + $0x138] sm:$0xff]  ;;  %v159_v43 = vld [vmem:[#allocation2 + $0x1b0] sm:$0xff]  ;;  %v757_v19 = vld [vmem:[#allocation6 + $0xc0] sm:$0xff] }
  0x82   :  { %546 = vmatpush1.bf16.msra.mxu0 %v5303_v37  ;;  %589 = vmatpush1.bf16.msra.mxu1 %v5305_v51  ;;  %v5293_v37 = vcombine.low %v124_v25, %v128_v26  ;;  %v152_v46 = vld [vmem:[#allocation2 + $0x178] sm:$0xff]  ;;  %v5310_v47 = vcombine.high %v140_v38, %v144_v39  ;;  %v163_v49 = vld [vmem:[#allocation2 + $0x1d0] sm:$0xff]  ;;  %v5324_v51 = vcombine.high %v155_v42, %v159_v43  ;;  %v761_v20 = vld [vmem:[#allocation6 + $0xe0] sm:$0xff] }
  0x83   :  { %547 = vmatprep.subr.bf16.mxu0 %v5312_v40  ;;  %590 = vmatprep.subr.bf16.mxu1 %v5314_v52  ;;  %v5302_v40 = vcombine.high %v132_v30, %v136_v31  ;;  %v167_v50 = vld [vmem:[#allocation2 + $0x1f0] sm:$0xff]  ;;  %v5309_v52 = vcombine.low %v140_v38, %v144_v39  ;;  %v160_v54 = vld [vmem:[#allocation2 + $0x1b8] sm:$0xff]  ;;  %v769_v28 = vld [vmem:[#allocation6 + $0x120] sm:$0xff] }
  0x84   :  { %v5332_v59 = vcombine.high %v163_v49, %v167_v50  ;;  %v168_v62 = vld [vmem:[#allocation2 + $0x1f8] sm:$0xff]  ;;  %v738_v8 = vld [vmem:[#allocation6 + $0x28] sm:$0xff] }
  0x85   :  { %v746_v16 = vld [vmem:[#allocation6 + $0x68] sm:$0xff] }
  0x86   :  { %548 = vmatpush1.bf16.msra.mxu0 %v5311_v45  ;;  %591 = vmatpush1.bf16.msra.mxu1 %v5313_v57  ;;  %v148_v45 = vld [vmem:[#allocation2 + $0x158] sm:$0xff]  ;;  %v733_v57 = vld [vmem:[#allocation6] sm:$0xff]  ;;  %v754_v24 = vld [vmem:[#allocation6 + $0xa8] sm:$0xff] }
  0x87   :  { %549 = vmatprep.subr.bf16.mxu0 %v5320_v48  ;;  %592 = vmatprep.subr.bf16.mxu1 %v5322_v60  ;;  %v5315_v48 = vcombine.low %v147_v34, %v151_v35  ;;  %v5318_v55 = vcombine.high %v148_v45, %v152_v46  ;;  %v5317_v60 = vcombine.low %v148_v45, %v152_v46  ;;  %v758_v31 = vld [vmem:[#allocation6 + $0xc8] sm:$0xff] }
  0x88   :  { %v5336_v4 = vcombine.high %v733_v57, %v737_v58  ;;  %v766_v39 = vld [vmem:[#allocation6 + $0x108] sm:$0xff] }
  0x8a   :  { %550 = vmatpush1.bf16.msra.mxu0 %v5319_v53  ;;  %593 = vmatpush1.bf16.msra.mxu1 %v5321_v2  ;;  %v156_v53 = vld [vmem:[#allocation2 + $0x198] sm:$0xff]  ;;  %v741_v2 = vld [vmem:[#allocation6 + $0x40] sm:$0xff] }
  0x8b   :  { %551 = vmatprep.subr.bf16.mxu0 %v5328_v56  ;;  %594 = vmatprep.subr.bf16.mxu1 %v5330_v6  ;;  %v5323_v56 = vcombine.low %v155_v42, %v159_v43  ;;  %v5326_v63 = vcombine.high %v156_v53, %v160_v54  ;;  %v5325_v6 = vcombine.low %v156_v53, %v160_v54  ;;  %v781_v42 = vld [vmem:[#allocation6 + $0x180] sm:$0xff] }
  0x8c   :  { %v5344_v13 = vcombine.high %v741_v2, %v745_v3  ;;  %v785_v43 = vld [vmem:[#allocation6 + $0x1a0] sm:$0xff] }
  0x8d   :  { %v5383_v54 = vcombine.low %v781_v42, %v785_v43 }
  0x8e   :  { %552 = vmatpush1.bf16.msra.mxu0 %v5327_v61  ;;  %595 = vmatpush1.bf16.msra.mxu1 %v5329_v11  ;;  %v164_v61 = vld [vmem:[#allocation2 + $0x1d8] sm:$0xff]  ;;  %v749_v11 = vld [vmem:[#allocation6 + $0x80] sm:$0xff] }
  0x8f   :  { %623 = vmatprep.subr.bf16.mxu0 %v5276_v1  ;;  %666 = vmatprep.subr.bf16.mxu1 %v5278_v14  ;;  %v5331_v1 = vcombine.low %v163_v49, %v167_v50  ;;  %v5334_v9 = vcombine.high %v164_v61, %v168_v62  ;;  %v5333_v14 = vcombine.low %v164_v61, %v168_v62 }
  0x90   :  { %v5351_v26 = vcombine.low %v749_v11, %v753_v12  ;;  %v5384_v49 = vcombine.high %v781_v42, %v785_v43 }
  0x91   :  { %570 = vmatmul.mubr.bf16.vlgmr.msra.gmra.mrb[0].mxu0 %v6416_v5  ;;  %613 = vmatmul.mubr.bf16.vlgmr.msra.gmra.mrb[0].mxu1 %v6416_v5 }
  0x92   :  { %624 = vmatpush1.bf16.msra.mxu0 %v5275_v7  ;;  %655 = vmatprep.mubr.bf16.mxu0 %v6298_v0  ;;  %v734_v7 = vld [vmem:[#allocation6 + $0x8] sm:$0xff] }
  0x93   :  { %625 = vmatprep.subr.bf16.mxu0 %v5284_v10  ;;  %667 = vmatpush1.bf16.msra.mxu1 %v5277_v21  ;;  %v5335_v10 = vcombine.low %v733_v57, %v737_v58  ;;  %v5338_v17 = vcombine.high %v734_v7, %v738_v8  ;;  %v5352_v21 = vcombine.high %v749_v11, %v753_v12 }
  0x94   :  { %698 = vmatprep.mubr.bf16.mxu1 %v6298_v0  ;;  %668 = vmatprep.subr.bf16.mxu1 %v5286_v22  ;;  %v5316_v0 = vcombine.high %v147_v34, %v151_v35  ;;  %v5337_v22 = vcombine.low %v734_v7, %v738_v8  ;;  %v5359_v34 = vcombine.low %v757_v19, %v761_v20  ;;  %v773_v35 = vld [vmem:[#allocation6 + $0x140] sm:$0xff] }
  0x96   :  { %626 = vmatpush1.bf16.msra.mxu0 %v5283_v15  ;;  %v742_v15 = vld [vmem:[#allocation6 + $0x48] sm:$0xff] }
  0x97   :  { %627 = vmatprep.subr.bf16.mxu0 %v5292_v18  ;;  %669 = vmatpush1.bf16.msra.mxu1 %v5285_v29  ;;  %v5343_v18 = vcombine.low %v741_v2, %v745_v3  ;;  %v5346_v25 = vcombine.high %v742_v15, %v746_v16  ;;  %v5360_v29 = vcombine.high %v757_v19, %v761_v20 }
  0x98   :  { %670 = vmatprep.subr.bf16.mxu1 %v5294_v32  ;;  %v5345_v30 = vcombine.low %v742_v15, %v746_v16  ;;  %v762_v32 = vld [vmem:[#allocation6 + $0xe8] sm:$0xff] }
  0x9a   :  { %628 = vmatpush1.bf16.msra.mxu0 %v5291_v23  ;;  %v750_v23 = vld [vmem:[#allocation6 + $0x88] sm:$0xff] }
  0x9b   :  { %629 = vmatprep.subr.bf16.mxu0 %v5300_v27  ;;  %671 = vmatpush1.bf16.msra.mxu1 %v5293_v37  ;;  %v765_v27 = vld [vmem:[#allocation6 + $0x100] sm:$0xff]  ;;  %v5353_v38 = vcombine.low %v750_v23, %v754_v24 }
  0x9c   :  { %672 = vmatprep.subr.bf16.mxu1 %v5302_v40  ;;  %v5368_v37 = vcombine.high %v765_v27, %v769_v28  ;;  %v770_v40 = vld [vmem:[#allocation6 + $0x128] sm:$0xff] }
  0x9d   :  { %v5370_v45 = vcombine.high %v766_v39, %v770_v40  ;;  %v5369_v50 = vcombine.low %v766_v39, %v770_v40 }
  0x9e   :  { %630 = vmatpush1.bf16.msra.mxu0 %v5299_v33  ;;  %v5354_v33 = vcombine.high %v750_v23, %v754_v24 }
  0x9f   :  { %631 = vmatprep.subr.bf16.mxu0 %v5308_v36  ;;  %673 = vmatpush1.bf16.msra.mxu1 %v5301_v44  ;;  %v777_v36 = vld [vmem:[#allocation6 + $0x160] sm:$0xff]  ;;  %v5361_v44 = vcombine.low %v758_v31, %v762_v32 }
  0xa0   :  { %674 = vmatprep.subr.bf16.mxu1 %v5310_v47  ;;  %v5375_v46 = vcombine.low %v773_v35, %v777_v36  ;;  %v774_v47 = vld [vmem:[#allocation6 + $0x148] sm:$0xff] }
  0xa2   :  { %632 = vmatpush1.bf16.msra.mxu0 %v5307_v41  ;;  %v5367_v41 = vcombine.low %v765_v27, %v769_v28 }
  0xa3   :  { %633 = vmatprep.subr.bf16.mxu0 %v5316_v0  ;;  %675 = vmatpush1.bf16.msra.mxu1 %v5309_v52  ;;  %v5376_v0 = vcombine.high %v773_v35, %v777_v36  ;;  %v793_v52 = vld [vmem:[#allocation6 + $0x1e0] sm:$0xff] }
  0xa4   :  { %676 = vmatprep.subr.bf16.mxu1 %v5318_v55  ;;  %v782_v55 = vld [vmem:[#allocation6 + $0x188] sm:$0xff] }
  0xa6   :  { %634 = vmatpush1.bf16.msra.mxu0 %v5315_v48  ;;  %v778_v48 = vld [vmem:[#allocation6 + $0x168] sm:$0xff] }
  0xa7   :  { %635 = vmatprep.subr.bf16.mxu0 %v5324_v51  ;;  %677 = vmatpush1.bf16.msra.mxu1 %v5317_v60  ;;  %v789_v51 = vld [vmem:[#allocation6 + $0x1c0] sm:$0xff]  ;;  %v5378_v53 = vcombine.high %v774_v47, %v778_v48  ;;  %v5377_v58 = vcombine.low %v774_v47, %v778_v48 }
  0xa8   :  { %678 = vmatprep.subr.bf16.mxu1 %v5326_v63  ;;  %v5392_v57 = vcombine.high %v789_v51, %v793_v52  ;;  %v801_v60 = vld [vmem:[#allocation6 + $0x220] sm:$0xff]  ;;  %v5391_v62 = vcombine.low %v789_v51, %v793_v52  ;;  %v790_v63 = vld [vmem:[#allocation6 + $0x1c8] sm:$0xff] }
  0xa9   :  { %v845_v47 = vld [vmem:[#allocation6 + $0x380] sm:$0xff] }
  0xaa   :  { %636 = vmatpush1.bf16.msra.mxu0 %v5323_v56  ;;  %v786_v56 = vld [vmem:[#allocation6 + $0x1a8] sm:$0xff]  ;;  %v849_v48 = vld [vmem:[#allocation6 + $0x3a0] sm:$0xff] }
  0xab   :  { %637 = vmatprep.subr.bf16.mxu0 %v5332_v59  ;;  %679 = vmatpush1.bf16.msra.mxu1 %v5325_v6  ;;  %v797_v59 = vld [vmem:[#allocation6 + $0x200] sm:$0xff]  ;;  %v5386_v61 = vcombine.high %v782_v55, %v786_v56  ;;  %v5385_v3 = vcombine.low %v782_v55, %v786_v56  ;;  %v5447_v52 = vcombine.low %v845_v47, %v849_v48 }
  0xac   :  { %680 = vmatprep.subr.bf16.mxu1 %v5334_v9  ;;  %v5400_v2 = vcombine.high %v797_v59, %v801_v60  ;;  %v809_v6 = vld [vmem:[#allocation6 + $0x260] sm:$0xff]  ;;  %v5399_v8 = vcombine.low %v797_v59, %v801_v60  ;;  %v798_v9 = vld [vmem:[#allocation6 + $0x208] sm:$0xff] }
  0xad   :  { %v853_v55 = vld [vmem:[#allocation6 + $0x3c0] sm:$0xff] }
  0xae   :  { %638 = vmatpush1.bf16.msra.mxu0 %v5331_v1  ;;  %v794_v1 = vld [vmem:[#allocation6 + $0x1e8] sm:$0xff]  ;;  %v857_v56 = vld [vmem:[#allocation6 + $0x3e0] sm:$0xff] }
  0xaf   :  { %3847 = vmatprep.subr.bf16.mxu0 %v5336_v4  ;;  %681 = vmatpush1.bf16.msra.mxu1 %v5333_v14  ;;  %v805_v4 = vld [vmem:[#allocation6 + $0x240] sm:$0xff]  ;;  %v5394_v7 = vcombine.high %v790_v63, %v794_v1  ;;  %v5393_v12 = vcombine.low %v790_v63, %v794_v1  ;;  %v5455_v60 = vcombine.low %v853_v55, %v857_v56 }
  0xb0   :  { %4019 = vmatprep.subr.bf16.mxu1 %v5338_v17  ;;  %v5408_v11 = vcombine.high %v805_v4, %v809_v6  ;;  %v817_v14 = vld [vmem:[#allocation6 + $0x2a0] sm:$0xff]  ;;  %v5407_v16 = vcombine.low %v805_v4, %v809_v6  ;;  %v806_v17 = vld [vmem:[#allocation6 + $0x248] sm:$0xff] }
  0xb1   :  { %656 = vmatmul.mubr.bf16.vlgmr.msra.gmra.mrb[4].mxu0 %v6416_v5  ;;  %v6424_v63 = vld [vmem:[#allocation6 + $0x400] sm:$0xff]  ;;  %v6432_v6 = vld [vmem:[#allocation6 + $0x428] sm:$0xff] }
  0xb2   :  { %3848 = vmatpush1.bf16.msra.mxu0 %v5335_v10  ;;  %699 = vmatmul.mubr.bf16.vlgmr.msra.gmra.mrb[4].mxu1 %v6416_v5  ;;  %v5362_v5 = vcombine.high %v758_v31, %v762_v32  ;;  %v802_v10 = vld [vmem:[#allocation6 + $0x228] sm:$0xff]  ;;  %v6426_v1 = vld [vmem:[#allocation6 + $0x420] sm:$0xff] }
  0xb3   :  { %3849 = vmatprep.subr.bf16.mxu0 %v5344_v13  ;;  %4020 = vmatpush1.bf16.msra.mxu1 %v5337_v22  ;;  %v813_v13 = vld [vmem:[#allocation6 + $0x280] sm:$0xff]  ;;  %v5402_v15 = vcombine.high %v798_v9, %v802_v10  ;;  %v5401_v20 = vcombine.low %v798_v9, %v802_v10  ;;  %v5464_v4 = vcombine.high %v6424_v63, %v6426_v1 }
  0xb4   :  { %4021 = vmatprep.subr.bf16.mxu1 %v5346_v25  ;;  %v5416_v19 = vcombine.high %v813_v13, %v817_v14  ;;  %v825_v22 = vld [vmem:[#allocation6 + $0x2e0] sm:$0xff]  ;;  %v5415_v24 = vcombine.low %v813_v13, %v817_v14  ;;  %v814_v25 = vld [vmem:[#allocation6 + $0x288] sm:$0xff] }
  0xb6   :  { %3850 = vmatpush1.bf16.msra.mxu0 %v5343_v18  ;;  %v810_v18 = vld [vmem:[#allocation6 + $0x268] sm:$0xff] }
  0xb7   :  { %3851 = vmatprep.subr.bf16.mxu0 %v5352_v21  ;;  %4022 = vmatpush1.bf16.msra.mxu1 %v5345_v30  ;;  %v821_v21 = vld [vmem:[#allocation6 + $0x2c0] sm:$0xff]  ;;  %v5410_v23 = vcombine.high %v806_v17, %v810_v18  ;;  %v5409_v28 = vcombine.low %v806_v17, %v810_v18 }
  0xb8   :  { %4023 = vmatprep.subr.bf16.mxu1 %v5354_v33  ;;  %v5424_v27 = vcombine.high %v821_v21, %v825_v22  ;;  %v833_v30 = vld [vmem:[#allocation6 + $0x320] sm:$0xff]  ;;  %v5423_v32 = vcombine.low %v821_v21, %v825_v22  ;;  %v822_v33 = vld [vmem:[#allocation6 + $0x2c8] sm:$0xff] }
  0xba   :  { %3852 = vmatpush1.bf16.msra.mxu0 %v5351_v26  ;;  %v818_v26 = vld [vmem:[#allocation6 + $0x2a8] sm:$0xff] }
  0xbb   :  { %3853 = vmatprep.subr.bf16.mxu0 %v5360_v29  ;;  %4024 = vmatpush1.bf16.msra.mxu1 %v5353_v38  ;;  %v829_v29 = vld [vmem:[#allocation6 + $0x300] sm:$0xff]  ;;  %v5418_v31 = vcombine.high %v814_v25, %v818_v26  ;;  %v5417_v36 = vcombine.low %v814_v25, %v818_v26 }
  0xbc   :  { %4025 = vmatprep.subr.bf16.mxu1 %v5362_v5  ;;  %v5432_v35 = vcombine.high %v829_v29, %v833_v30  ;;  %v841_v38 = vld [vmem:[#allocation6 + $0x360] sm:$0xff]  ;;  %v5431_v40 = vcombine.low %v829_v29, %v833_v30  ;;  %v830_v5 = vld [vmem:[#allocation6 + $0x308] sm:$0xff] }
  0xbe   :  { %3854 = vmatpush1.bf16.msra.mxu0 %v5359_v34  ;;  %v826_v34 = vld [vmem:[#allocation6 + $0x2e8] sm:$0xff] }
  0xbf   :  { %3855 = vmatprep.subr.bf16.mxu0 %v5368_v37  ;;  %4026 = vmatpush1.bf16.msra.mxu1 %v5361_v44  ;;  %v837_v37 = vld [vmem:[#allocation6 + $0x340] sm:$0xff]  ;;  %v5426_v39 = vcombine.high %v822_v33, %v826_v34  ;;  %v5425_v43 = vcombine.low %v822_v33, %v826_v34 }
  0xc0   :  { %4027 = vmatprep.subr.bf16.mxu1 %v5370_v45  ;;  %v5440_v42 = vcombine.high %v837_v37, %v841_v38  ;;  %v5439_v44 = vcombine.low %v837_v37, %v841_v38  ;;  %v838_v45 = vld [vmem:[#allocation6 + $0x348] sm:$0xff]  ;;  %v869_v33 = vld [vmem:[#allocation6 + $0x440] sm:$0xff] }
  0xc1   :  { %v870_v37 = vld [vmem:[#allocation6 + $0x448] sm:$0xff] }
  0xc2   :  { %3856 = vmatpush1.bf16.msra.mxu0 %v5367_v41  ;;  %v834_v41 = vld [vmem:[#allocation6 + $0x328] sm:$0xff] }
  0xc3   :  { %3857 = vmatprep.subr.bf16.mxu0 %v5376_v0  ;;  %4028 = vmatpush1.bf16.msra.mxu1 %v5369_v50  ;;  %v5434_v0 = vcombine.high %v830_v5, %v834_v41  ;;  %v5448_v50 = vcombine.high %v845_v47, %v849_v48  ;;  %v874_v38 = vld [vmem:[#allocation6 + $0x468] sm:$0xff] }
  0xc4   :  { %4029 = vmatprep.subr.bf16.mxu1 %v5378_v53  ;;  %v846_v53 = vld [vmem:[#allocation6 + $0x388] sm:$0xff] }
  0xc6   :  { %3858 = vmatpush1.bf16.msra.mxu0 %v5375_v46  ;;  %v842_v46 = vld [vmem:[#allocation6 + $0x368] sm:$0xff] }
  0xc7   :  { %3859 = vmatprep.subr.bf16.mxu0 %v5384_v49  ;;  %4030 = vmatpush1.bf16.msra.mxu1 %v5377_v58  ;;  %v5433_v49 = vcombine.low %v830_v5, %v834_v41  ;;  %v5442_v51 = vcombine.high %v838_v45, %v842_v46  ;;  %v5456_v58 = vcombine.high %v853_v55, %v857_v56 }
  0xc8   :  { %4031 = vmatprep.subr.bf16.mxu1 %v5386_v61  ;;  %v854_v61 = vld [vmem:[#allocation6 + $0x3c8] sm:$0xff] }
  0xca   :  { %3860 = vmatpush1.bf16.msra.mxu0 %v5383_v54  ;;  %v850_v54 = vld [vmem:[#allocation6 + $0x3a8] sm:$0xff] }
  0xcb   :  { %3861 = vmatprep.subr.bf16.mxu0 %v5392_v57  ;;  %4032 = vmatpush1.bf16.msra.mxu1 %v5385_v3  ;;  %v5441_v57 = vcombine.low %v838_v45, %v842_v46  ;;  %v5450_v59 = vcombine.high %v846_v53, %v850_v54  ;;  %v5449_v3 = vcombine.low %v846_v53, %v850_v54  ;;  %v877_v46 = vld [vmem:[#allocation6 + $0x480] sm:$0xff] }
  0xcc   :  { %4033 = vmatprep.subr.bf16.mxu1 %v5394_v7  ;;  %v5474_v45 = vcombine.high %v870_v37, %v874_v38 }
  0xce   :  { %3862 = vmatpush1.bf16.msra.mxu0 %v5391_v62  ;;  %v858_v62 = vld [vmem:[#allocation6 + $0x3e8] sm:$0xff] }
  0xcf   :  { %3863 = vmatprep.subr.bf16.mxu0 %v5400_v2  ;;  %4034 = vmatpush1.bf16.msra.mxu1 %v5393_v12  ;;  %v6428_v2 = vld [vmem:[#allocation6 + $0x408] sm:$0xff]  ;;  %v5458_v7 = vcombine.high %v854_v61, %v858_v62  ;;  %v5457_v10 = vcombine.low %v854_v61, %v858_v62  ;;  %v171_v12 = vlaneseq  ;;  %v885_v61 = vld [vmem:[#allocation6 + $0x4c0] sm:$0xff] }
  0xd0   :  { %4035 = vmatprep.subr.bf16.mxu1 %v5402_v15  ;;  %v5465_v9 = vcombine.low %v6428_v2, %v6432_v6  ;;  %v6443_v15 = vld [vmem:[#allocation4] sm:$0xff] }
  0xd1   :  { %v6440_v13 = vshrl.u32 %v171_v12, 7  ;;  %v898_v12 = vld [vmem:[#allocation6 + $0x528] sm:$0xff] }
  0xd2   :  { %3864 = vmatpush1.bf16.msra.mxu0 %v5399_v8  ;;  %v5463_v8 = vcombine.low %v6424_v63, %v6426_v1  ;;  %v889_v63 = vld [vmem:[#allocation6 + $0x4e0] sm:$0xff]  ;;  %v886_v1 = vld [vmem:[#allocation6 + $0x4c8] sm:$0xff] }
  0xd3   :  { %3865 = vmatprep.subr.bf16.mxu0 %v5408_v11  ;;  %4036 = vmatpush1.bf16.msra.mxu1 %v5401_v20  ;;  %v5466_v11 = vcombine.high %v6428_v2, %v6432_v6  ;;  %v173_v14 = vsub.s32 0, %v6440_v13  ;;  %v185_v21 = vsub.s32 3, %v6440_v13  ;;  %v890_v2 = vld [vmem:[#allocation6 + $0x4e8] sm:$0xff] }
  0xd4   :  { %4037 = vmatprep.subr.bf16.mxu1 %v5410_v23 }
  0xd5   :  { %v174_v17 = vrot.slane %v6443_v15, %v173_v14  ;;  %v186_v30 = vrot.slane %v6443_v15, %v185_v21 }
  0xd6   :  { %3866 = vmatpush1.bf16.msra.mxu0 %v5407_v16  ;;  %v177_v16 = vsub.s32 1, %v6440_v13 }
  0xd7   :  { %3867 = vmatprep.subr.bf16.mxu0 %v5416_v19  ;;  %4038 = vmatpush1.bf16.msra.mxu1 %v5409_v28  ;;  %v181_v19 = vsub.s32 2, %v6440_v13 }
  0xd8   :  { %4039 = vmatprep.subr.bf16.mxu1 %v5418_v31  ;;  %v178_v18 = vrot.slane %v6443_v15, %v177_v16 }
  0xd9   :  { %v182_v28 = vrot.slane %v6443_v15, %v181_v19 }
  0xda   :  { %3868 = vmatpush1.bf16.msra.mxu0 %v5415_v24 }
  0xdb   :  { %3869 = vmatprep.subr.bf16.mxu0 %v5424_v27  ;;  %4040 = vmatpush1.bf16.msra.mxu1 %v5417_v36  ;;  %v873_v36 = vld [vmem:[#allocation6 + $0x460] sm:$0xff] }
  0xdc   :  { %4041 = vmatprep.subr.bf16.mxu1 %v5426_v39  ;;  %v5471_v56 = vcombine.low %v869_v33, %v873_v36 }
  0xde   :  { %3870 = vmatpush1.bf16.msra.mxu0 %v5423_v32 }
  0xdf   :  { %3871 = vmatprep.subr.bf16.mxu0 %v5432_v35  ;;  %4042 = vmatpush1.bf16.msra.mxu1 %v5425_v43 }
  0xe0   :  { %4043 = vmatprep.subr.bf16.mxu1 %v5434_v0 }
  0xe2   :  { %3872 = vmatpush1.bf16.msra.mxu0 %v5431_v40 }
  0xe3   :  { %3873 = vmatprep.subr.bf16.mxu0 %v5440_v42  ;;  %4044 = vmatpush1.bf16.msra.mxu1 %v5433_v49 }
  0xe4   :  { %4045 = vmatprep.subr.bf16.mxu1 %v5442_v51  ;;  %v878_v51 = vld [vmem:[#allocation6 + $0x488] sm:$0xff] }
  0xe6   :  { %3874 = vmatpush1.bf16.msra.mxu0 %v5439_v44  ;;  %v5472_v44 = vcombine.high %v869_v33, %v873_v36  ;;  %v913_v33 = vld [vmem:[#allocation6 + $0x5a0] sm:$0xff]  ;;  %v193_v36 = vsub.s32 5, %v6440_v13 }
  0xe7   :  { %3875 = vmatprep.subr.bf16.mxu0 %v5448_v50  ;;  %4046 = vmatpush1.bf16.msra.mxu1 %v5441_v57  ;;  %v881_v50 = vld [vmem:[#allocation6 + $0x4a0] sm:$0xff]  ;;  %v5473_v57 = vcombine.low %v870_v37, %v874_v38 }
  0xe8   :  { %4047 = vmatprep.subr.bf16.mxu1 %v5450_v59  ;;  %v5480_v59 = vcombine.high %v877_v46, %v881_v50 }
  0xea   :  { %3876 = vmatpush1.bf16.msra.mxu0 %v5447_v52  ;;  %v882_v52 = vld [vmem:[#allocation6 + $0x4a8] sm:$0xff] }
  0xeb   :  { %3877 = vmatprep.subr.bf16.mxu0 %v5456_v58  ;;  %4048 = vmatpush1.bf16.msra.mxu1 %v5449_v3  ;;  %v5481_v6 = vcombine.low %v878_v51, %v882_v52 }
  0xec   :  { %4049 = vmatprep.subr.bf16.mxu1 %v5458_v7  ;;  %v5488_v7 = vcombine.high %v885_v61, %v889_v63 }
  0xee   :  { %3878 = vmatpush1.bf16.msra.mxu0 %v5455_v60  ;;  %v5482_v60 = vcombine.high %v878_v51, %v882_v52  ;;  %v201_v51 = vsub.s32 7, %v6440_v13 }
  0xef   :  { %3890 = vmatprep.subr.bf16.mxu0 %v5464_v4  ;;  %4050 = vmatpush1.bf16.msra.mxu1 %v5457_v10  ;;  %v5479_v4 = vcombine.low %v877_v46, %v881_v50  ;;  %v897_v10 = vld [vmem:[#allocation6 + $0x520] sm:$0xff]  ;;  %v194_v46 = vrot.slane %v6443_v15, %v193_v36 }
  0xf0   :  { %4062 = vmatprep.subr.bf16.mxu1 %v5466_v11  ;;  %v894_v11 = vld [vmem:[#allocation6 + $0x508] sm:$0xff] }
 0x164   :  { %v571_v20 = vpop.f32.mrb[0].mxu0  ;;  %v614_v39 = vpop.f32.mrb[0].mxu1 }
 0x165   :  { %v572_v22 = vadd.f32 %v571_v20, %v174_v17  ;;  %v573_v23 = vpop.f32.mrb[1].mxu0  ;;  %v615_v5 = vadd.f32 %v614_v39, %v182_v28  ;;  %v616_v41 = vpop.f32.mrb[1].mxu1 }
 0x166   :  { %v574_v24 = vadd.f32 %v573_v23, %v178_v18  ;;  %v575_v25 = vpop.f32.mrb[2].mxu0  ;;  %v617_v43 = vadd.f32 %v616_v41, %v186_v30  ;;  %v618_v0 = vpop.f32.mrb[2].mxu1  ;;  %v901_v23 = vld [vmem:[#allocation6 + $0x540] sm:$0xff] }
 0x167   :  { %v576_v26 = vadd.f32 %v575_v25, %v174_v17  ;;  %v577_v27 = vpop.f32.mrb[3].mxu0  ;;  %v709_v31 = vmax.f32 %v572_v22, 0.0  ;;  %v711_v47 = vmax.f32 %v615_v5, 0.0  ;;  %v619_v48 = vadd.f32 %v618_v0, %v182_v28  ;;  %v620_v49 = vpop.f32.mrb[3].mxu1  ;;  %v902_v25 = vld [vmem:[#allocation6 + $0x548] sm:$0xff]  ;;  %v917_v41 = vld [vmem:[#allocation6 + $0x5c0] sm:$0xff] }
 0x168   :  { %v578_v29 = vadd.f32 %v577_v27, %v178_v18  ;;  %v710_v34 = vmax.f32 %v574_v24, 0.0  ;;  %v712_v53 = vmax.f32 %v617_v43, 0.0  ;;  %v621_v54 = vadd.f32 %v620_v49, %v186_v30  ;;  %v905_v24 = vld [vmem:[#allocation6 + $0x560] sm:$0xff] }
 0x169   :  { %v717_v32 = vmax.f32 %v576_v26, 0.0  ;;  %v719_v55 = vmax.f32 %v619_v48, 0.0  ;;  %v5487_v17 = vcombine.low %v885_v61, %v889_v63  ;;  %v5489_v18 = vcombine.low %v886_v1, %v890_v2  ;;  %v906_v26 = vld [vmem:[#allocation6 + $0x568] sm:$0xff]  ;;  %v921_v0 = vld [vmem:[#allocation6 + $0x5e0] sm:$0xff] }
 0x16a   :  { %v718_v35 = vmax.f32 %v578_v29, 0.0  ;;  %v720_v58 = vmax.f32 %v621_v54, 0.0  ;;  %v5498_v22 = vcombine.high %v894_v11, %v898_v12  ;;  %v5497_v28 = vcombine.low %v894_v11, %v898_v12  ;;  %v925_v54 = vld [vmem:[#allocation6 + $0x600] sm:$0xff] }
 0x16b   :  { %v6460_v40 = vpack.c.bf16 %v717_v32, %v709_v31  ;;  %v6468_v62 = vpack.c.bf16 %v719_v55, %v711_v47  ;;  %v5504_v29 = vcombine.high %v901_v23, %v905_v24  ;;  %v5506_v30 = vcombine.high %v902_v25, %v906_v26  ;;  %v909_v31 = vld [vmem:[#allocation6 + $0x580] sm:$0xff] }
 0x16c   :  { %v6462_v42 = vpack.c.bf16 %v718_v35, %v710_v34  ;;  %v6470_v3 = vpack.c.bf16 %v720_v58, %v712_v53  ;;  %v189_v32 = vsub.s32 4, %v6440_v13  ;;  %v910_v34 = vld [vmem:[#allocation6 + $0x588] sm:$0xff]  ;;  %v5503_v37 = vcombine.low %v901_v23, %v905_v24 }
 0x16d   :  { %v914_v35 = vld [vmem:[#allocation6 + $0x5a8] sm:$0xff]  ;;  %v5505_v38 = vcombine.low %v902_v25, %v906_v26  ;;  %v5512_v39 = vcombine.high %v909_v31, %v913_v33  ;;  %v197_v47 = vsub.s32 6, %v6440_v13  ;;  %v5511_v48 = vcombine.low %v909_v31, %v913_v33 }
 0x16e   :  { %3879 = vmatprep.mubr.bf16.mxu0 %v6462_v42  ;;  %4051 = vmatprep.mubr.bf16.mxu1 %v6462_v42  ;;  %v5514_v5 = vcombine.high %v910_v34, %v914_v35  ;;  %v190_v43 = vrot.slane %v6443_v15, %v189_v32  ;;  %v5513_v49 = vcombine.low %v910_v34, %v914_v35  ;;  %v926_v58 = vld [vmem:[#allocation6 + $0x608] sm:$0xff] }
 0x16f   :  { %3880 = vmatmul.mubr.bf16.vlgmr.msra.gmra.mrb[8].mxu0 %v6460_v40  ;;  %4052 = vmatmul.mubr.bf16.vlgmr.msra.gmra.mrb[8].mxu1 %v6460_v40  ;;  %v5520_v52 = vcombine.high %v917_v41, %v921_v0  ;;  %v5519_v63 = vcombine.low %v917_v41, %v921_v0  ;;  %v938_v23 = vld [vmem:[#allocation6 + $0x668] sm:$0xff]  ;;  %v945_v41 = vld [vmem:[#allocation6 + $0x6a0] sm:$0xff] }
 0x170   :  { %3891 = vmatpush1.bf16.msra.mxu0 %v5463_v8  ;;  %4063 = vmatpush1.bf16.msra.mxu1 %v5465_v9  ;;  %v5490_v8 = vcombine.high %v886_v1, %v890_v2  ;;  %v893_v9 = vld [vmem:[#allocation6 + $0x500] sm:$0xff]  ;;  %v946_v0 = vld [vmem:[#allocation6 + $0x6a8] sm:$0xff] }
 0x171   :  { %3892 = vmatprep.subr.bf16.mxu0 %v5472_v44  ;;  %4064 = vmatprep.subr.bf16.mxu1 %v5474_v45  ;;  %v5496_v20 = vcombine.high %v893_v9, %v897_v10  ;;  %v5495_v27 = vcombine.low %v893_v9, %v897_v10  ;;  %v918_v44 = vld [vmem:[#allocation6 + $0x5c8] sm:$0xff]  ;;  %v202_v10 = vrot.slane %v6443_v15, %v201_v51 }
 0x172   :  { %3922 = vmatprep.mubr.bf16.mxu0 %v6470_v3  ;;  %4094 = vmatprep.mubr.bf16.mxu1 %v6470_v3  ;;  %v922_v45 = vld [vmem:[#allocation6 + $0x5e8] sm:$0xff] }
 0x173   :  { %v5522_v53 = vcombine.high %v918_v44, %v922_v45 }
 0x174   :  { %3893 = vmatpush1.bf16.msra.mxu0 %v5471_v56  ;;  %4065 = vmatpush1.bf16.msra.mxu1 %v5473_v57  ;;  %v929_v57 = vld [vmem:[#allocation6 + $0x620] sm:$0xff] }
 0x175   :  { %3894 = vmatprep.subr.bf16.mxu0 %v5480_v59  ;;  %4066 = vmatprep.subr.bf16.mxu1 %v5482_v60  ;;  %v930_v59 = vld [vmem:[#allocation6 + $0x628] sm:$0xff]  ;;  %v5528_v11 = vcombine.high %v925_v54, %v929_v57  ;;  %v5527_v26 = vcombine.low %v925_v54, %v929_v57  ;;  %v949_v54 = vld [vmem:[#allocation6 + $0x6c0] sm:$0xff] }
 0x176   :  { %v5530_v12 = vcombine.high %v926_v58, %v930_v59  ;;  %v950_v57 = vld [vmem:[#allocation6 + $0x6c8] sm:$0xff] }
 0x178   :  { %3895 = vmatpush1.bf16.msra.mxu0 %v5479_v4  ;;  %4067 = vmatpush1.bf16.msra.mxu1 %v5481_v6  ;;  %v198_v6 = vrot.slane %v6443_v15, %v197_v47 }
 0x179   :  { %3896 = vmatprep.subr.bf16.mxu0 %v5488_v7  ;;  %4068 = vmatprep.subr.bf16.mxu1 %v5490_v8  ;;  %v5521_v7 = vcombine.low %v918_v44, %v922_v45 }
 0x17c   :  { %3897 = vmatpush1.bf16.msra.mxu0 %v5487_v17  ;;  %4069 = vmatpush1.bf16.msra.mxu1 %v5489_v18  ;;  %v933_v17 = vld [vmem:[#allocation6 + $0x640] sm:$0xff] }
 0x17d   :  { %3898 = vmatprep.subr.bf16.mxu0 %v5496_v20  ;;  %4070 = vmatprep.subr.bf16.mxu1 %v5498_v22  ;;  %v937_v20 = vld [vmem:[#allocation6 + $0x660] sm:$0xff]  ;;  %v934_v22 = vld [vmem:[#allocation6 + $0x648] sm:$0xff] }
 0x17e   :  { %v5536_v34 = vcombine.high %v933_v17, %v937_v20  ;;  %v5538_v35 = vcombine.high %v934_v22, %v938_v23 }
 0x180   :  { %3899 = vmatpush1.bf16.msra.mxu0 %v5495_v27  ;;  %4071 = vmatpush1.bf16.msra.mxu1 %v5497_v28 }
 0x181   :  { %3900 = vmatprep.subr.bf16.mxu0 %v5504_v29  ;;  %4072 = vmatprep.subr.bf16.mxu1 %v5506_v30  ;;  %v5529_v30 = vcombine.low %v926_v58, %v930_v59  ;;  %v954_v58 = vld [vmem:[#allocation6 + $0x6e8] sm:$0xff] }
 0x184   :  { %3901 = vmatpush1.bf16.msra.mxu0 %v5503_v37  ;;  %4073 = vmatpush1.bf16.msra.mxu1 %v5505_v38  ;;  %v657_v50 = vpop.f32.mrb[4].mxu0  ;;  %v941_v37 = vld [vmem:[#allocation6 + $0x680] sm:$0xff] }
 0x185   :  { %3902 = vmatprep.subr.bf16.mxu0 %v5512_v39  ;;  %4074 = vmatprep.subr.bf16.mxu1 %v5514_v5  ;;  %v658_v55 = vadd.f32 %v657_v50, %v190_v43  ;;  %v659_v56 = vpop.f32.mrb[5].mxu0  ;;  %v700_v25 = vpop.f32.mrb[4].mxu1 }
 0x186   :  { %v660_v60 = vadd.f32 %v659_v56, %v194_v46  ;;  %v661_v61 = vpop.f32.mrb[6].mxu0  ;;  %v701_v28 = vadd.f32 %v700_v25, %v198_v6  ;;  %v702_v29 = vpop.f32.mrb[5].mxu1  ;;  %v953_v56 = vld [vmem:[#allocation6 + $0x6e0] sm:$0xff] }
 0x187   :  { %v713_v1 = vmax.f32 %v658_v55, 0.0  ;;  %v662_v2 = vadd.f32 %v661_v61, %v190_v43  ;;  %v663_v4 = vpop.f32.mrb[7].mxu0  ;;  %v703_v31 = vadd.f32 %v702_v29, %v202_v10  ;;  %v704_v33 = vpop.f32.mrb[6].mxu1  ;;  %v942_v43 = vld [vmem:[#allocation6 + $0x688] sm:$0xff] }
 0x188   :  { %3903 = vmatpush1.bf16.msra.mxu0 %v5511_v48  ;;  %4075 = vmatpush1.bf16.msra.mxu1 %v5513_v49  ;;  %v714_v8 = vmax.f32 %v660_v60, 0.0  ;;  %v664_v9 = vadd.f32 %v663_v4, %v194_v46  ;;  %v715_v38 = vmax.f32 %v701_v28, 0.0  ;;  %v705_v39 = vadd.f32 %v704_v33, %v198_v6  ;;  %v706_v5 = vpop.f32.mrb[7].mxu1  ;;  %v961_v4 = vld [vmem:[#allocation6 + $0x720] sm:$0xff]  ;;  %v958_v6 = vld [vmem:[#allocation6 + $0x708] sm:$0xff] }
 0x189   :  { %3904 = vmatprep.subr.bf16.mxu0 %v5520_v52  ;;  %4076 = vmatprep.subr.bf16.mxu1 %v5522_v53  ;;  %v721_v18 = vmax.f32 %v662_v2, 0.0  ;;  %v716_v44 = vmax.f32 %v703_v31, 0.0  ;;  %v707_v45 = vadd.f32 %v706_v5, %v202_v10  ;;  %v5535_v48 = vcombine.low %v933_v17, %v937_v20  ;;  %v957_v2 = vld [vmem:[#allocation6 + $0x700] sm:$0xff]  ;;  %v970_v20 = vld [vmem:[#allocation6 + $0x768] sm:$0xff] }
 0x18a   :  { %v722_v24 = vmax.f32 %v664_v9, 0.0  ;;  %v723_v46 = vmax.f32 %v705_v39, 0.0  ;;  %v5537_v49 = vcombine.low %v934_v22, %v938_v23  ;;  %v5544_v52 = vcombine.high %v941_v37, %v945_v41  ;;  %v969_v17 = vld [vmem:[#allocation6 + $0x760] sm:$0xff]  ;;  %v974_v29 = vld [vmem:[#allocation6 + $0x788] sm:$0xff] }
 0x18b   :  { %v6490_v27 = vpack.c.bf16 %v721_v18, %v713_v1  ;;  %v724_v50 = vmax.f32 %v707_v45, 0.0  ;;  %v5546_v53 = vcombine.high %v942_v43, %v946_v0  ;;  %v5543_v60 = vcombine.low %v941_v37, %v945_v41  ;;  %v966_v18 = vld [vmem:[#allocation6 + $0x748] sm:$0xff]  ;;  %v977_v28 = vld [vmem:[#allocation6 + $0x7a0] sm:$0xff] }
 0x18c   :  { %3905 = vmatpush1.bf16.msra.mxu0 %v5519_v63  ;;  %4077 = vmatpush1.bf16.msra.mxu1 %v5521_v7  ;;  %v6492_v15 = vpack.c.bf16 %v722_v24, %v714_v8  ;;  %v6494_v55 = vpack.c.bf16 %v723_v46, %v715_v38  ;;  %v5545_v61 = vcombine.low %v942_v43, %v946_v0  ;;  %v962_v7 = vld [vmem:[#allocation6 + $0x728] sm:$0xff]  ;;  %v981_v37 = vld [vmem:[#allocation6 + $0x7c0] sm:$0xff] }
 0x18d   :  { %3906 = vmatprep.subr.bf16.mxu0 %v5528_v11  ;;  %4078 = vmatprep.subr.bf16.mxu1 %v5530_v12  ;;  %v6496_v59 = vpack.c.bf16 %v724_v50, %v716_v44  ;;  %v5552_v63 = vcombine.high %v949_v54, %v953_v56  ;;  %v5554_v1 = vcombine.high %v950_v57, %v954_v58  ;;  %v965_v12 = vld [vmem:[#allocation6 + $0x740] sm:$0xff]  ;;  %v982_v39 = vld [vmem:[#allocation6 + $0x7c8] sm:$0xff] }
 0x18e   :  { %v5551_v8 = vcombine.low %v949_v54, %v953_v56  ;;  %v5553_v9 = vcombine.low %v950_v57, %v954_v58  ;;  %v5560_v10 = vcombine.high %v957_v2, %v961_v4  ;;  %v5562_v11 = vcombine.high %v958_v6, %v962_v7  ;;  %v985_v38 = vld [vmem:[#allocation6 + $0x7e0] sm:$0xff]  ;;  %v986_v5 = vld [vmem:[#allocation6 + $0x7e8] sm:$0xff] }
 0x18f   :  { %v5559_v22 = vcombine.low %v957_v2, %v961_v4  ;;  %v5561_v23 = vcombine.low %v958_v6, %v962_v7  ;;  %v5568_v24 = vcombine.high %v965_v12, %v969_v17  ;;  %v5570_v25 = vcombine.high %v966_v18, %v970_v20  ;;  %v989_v45 = vld [vmem:[#allocation6 + $0x800] sm:$0xff]  ;;  %v998_v58 = vld [vmem:[#allocation6 + $0x848] sm:$0xff] }
 0x190   :  { %3907 = vmatpush1.bf16.msra.mxu0 %v5527_v26  ;;  %4079 = vmatpush1.bf16.msra.mxu1 %v5529_v30  ;;  %v973_v26 = vld [vmem:[#allocation6 + $0x780] sm:$0xff]  ;;  %v978_v30 = vld [vmem:[#allocation6 + $0x7a8] sm:$0xff]  ;;  %v5567_v31 = vcombine.low %v965_v12, %v969_v17  ;;  %v5569_v33 = vcombine.low %v966_v18, %v970_v20  ;;  %v5584_v0 = vcombine.high %v981_v37, %v985_v38 }
 0x191   :  { %3908 = vmatprep.subr.bf16.mxu0 %v5536_v34  ;;  %4080 = vmatprep.subr.bf16.mxu1 %v5538_v35  ;;  %v5576_v34 = vcombine.high %v973_v26, %v977_v28  ;;  %v5578_v35 = vcombine.high %v974_v29, %v978_v30  ;;  %v5575_v41 = vcombine.low %v973_v26, %v977_v28  ;;  %v993_v46 = vld [vmem:[#allocation6 + $0x820] sm:$0xff]  ;;  %v1006_v7 = vld [vmem:[#allocation6 + $0x888] sm:$0xff] }
 0x192   :  { %v5577_v43 = vcombine.low %v974_v29, %v978_v30  ;;  %v5586_v44 = vcombine.high %v982_v39, %v986_v5  ;;  %v5583_v50 = vcombine.low %v981_v37, %v985_v38  ;;  %v997_v56 = vld [vmem:[#allocation6 + $0x840] sm:$0xff]  ;;  %v1014_v20 = vld [vmem:[#allocation6 + $0x8c8] sm:$0xff] }
 0x193   :  { %v1001_v57 = vld [vmem:[#allocation6 + $0x860] sm:$0xff]  ;;  %v1022_v30 = vld [vmem:[#allocation6 + $0x908] sm:$0xff] }
 0x194   :  { %3909 = vmatpush1.bf16.msra.mxu0 %v5535_v48  ;;  %4081 = vmatpush1.bf16.msra.mxu1 %v5537_v49  ;;  %v990_v48 = vld [vmem:[#allocation6 + $0x808] sm:$0xff]  ;;  %v1005_v4 = vld [vmem:[#allocation6 + $0x880] sm:$0xff] }
 0x195   :  { %3910 = vmatprep.subr.bf16.mxu0 %v5544_v52  ;;  %4082 = vmatprep.subr.bf16.mxu1 %v5546_v53  ;;  %v994_v49 = vld [vmem:[#allocation6 + $0x828] sm:$0xff]  ;;  %v5585_v52 = vcombine.low %v982_v39, %v986_v5  ;;  %v5592_v53 = vcombine.high %v989_v45, %v993_v46  ;;  %v1009_v6 = vld [vmem:[#allocation6 + $0x8a0] sm:$0xff] }
 0x196   :  { %v5594_v54 = vcombine.high %v990_v48, %v994_v49  ;;  %v1013_v17 = vld [vmem:[#allocation6 + $0x8c0] sm:$0xff]  ;;  %v1030_v5 = vld [vmem:[#allocation6 + $0x948] sm:$0xff] }
 0x197   :  { %v1017_v18 = vld [vmem:[#allocation6 + $0x8e0] sm:$0xff] }
 0x198   :  { %3911 = vmatpush1.bf16.msra.mxu0 %v5543_v60  ;;  %4083 = vmatpush1.bf16.msra.mxu1 %v5545_v61  ;;  %v1002_v60 = vld [vmem:[#allocation6 + $0x868] sm:$0xff]  ;;  %v5591_v61 = vcombine.low %v989_v45, %v993_v46  ;;  %v1021_v28 = vld [vmem:[#allocation6 + $0x900] sm:$0xff] }
 0x199   :  { %3912 = vmatprep.subr.bf16.mxu0 %v5552_v63  ;;  %4084 = vmatprep.subr.bf16.mxu1 %v5554_v1  ;;  %v5593_v63 = vcombine.low %v990_v48, %v994_v49  ;;  %v5600_v1 = vcombine.high %v997_v56, %v1001_v57  ;;  %v5602_v2 = vcombine.high %v998_v58, %v1002_v60  ;;  %v1025_v29 = vld [vmem:[#allocation6 + $0x920] sm:$0xff]  ;;  %v1038_v49 = vld [vmem:[#allocation6 + $0x988] sm:$0xff] }
 0x19a   :  { %v1029_v38 = vld [vmem:[#allocation6 + $0x940] sm:$0xff] }
 0x19b   :  { %v1033_v39 = vld [vmem:[#allocation6 + $0x960] sm:$0xff] }
 0x19c   :  { %3913 = vmatpush1.bf16.msra.mxu0 %v5551_v8  ;;  %4085 = vmatpush1.bf16.msra.mxu1 %v5553_v9  ;;  %v1010_v8 = vld [vmem:[#allocation6 + $0x8a8] sm:$0xff]  ;;  %v5599_v9 = vcombine.low %v997_v56, %v1001_v57  ;;  %v1037_v46 = vld [vmem:[#allocation6 + $0x980] sm:$0xff] }
 0x19d   :  { %3914 = vmatprep.subr.bf16.mxu0 %v5560_v10  ;;  %4086 = vmatprep.subr.bf16.mxu1 %v5562_v11  ;;  %v5601_v10 = vcombine.low %v998_v58, %v1002_v60  ;;  %v5608_v11 = vcombine.high %v1005_v4, %v1009_v6  ;;  %v5610_v12 = vcombine.high %v1006_v7, %v1010_v8  ;;  %v1041_v48 = vld [vmem:[#allocation6 + $0x9a0] sm:$0xff]  ;;  %v1046_v60 = vld [vmem:[#allocation6 + $0x9c8] sm:$0xff] }
 0x19e   :  { %v1045_v57 = vld [vmem:[#allocation6 + $0x9c0] sm:$0xff] }
 0x19f   :  { %v1049_v58 = vld [vmem:[#allocation6 + $0x9e0] sm:$0xff] }
 0x1a0   :  { %3915 = vmatpush1.bf16.msra.mxu0 %v5559_v22  ;;  %4087 = vmatpush1.bf16.msra.mxu1 %v5561_v23  ;;  %v1018_v22 = vld [vmem:[#allocation6 + $0x8e8] sm:$0xff]  ;;  %v5607_v23 = vcombine.low %v1005_v4, %v1009_v6  ;;  %v1053_v6 = vld [vmem:[#allocation6 + $0xa00] sm:$0xff] }
 0x1a1   :  { %3916 = vmatprep.subr.bf16.mxu0 %v5568_v24  ;;  %4088 = vmatprep.subr.bf16.mxu1 %v5570_v25  ;;  %v5609_v24 = vcombine.low %v1006_v7, %v1010_v8  ;;  %v5616_v25 = vcombine.high %v1013_v17, %v1017_v18  ;;  %v5618_v26 = vcombine.high %v1014_v20, %v1018_v22  ;;  %v1057_v7 = vld [vmem:[#allocation6 + $0xa20] sm:$0xff]  ;;  %v1054_v8 = vld [vmem:[#allocation6 + $0xa08] sm:$0xff] }
 0x1a4   :  { %3917 = vmatpush1.bf16.msra.mxu0 %v5567_v31  ;;  %4089 = vmatpush1.bf16.msra.mxu1 %v5569_v33  ;;  %v1026_v31 = vld [vmem:[#allocation6 + $0x928] sm:$0xff]  ;;  %v5615_v33 = vcombine.low %v1013_v17, %v1017_v18  ;;  %v1061_v18 = vld [vmem:[#allocation6 + $0xa40] sm:$0xff] }
 0x1a5   :  { %3918 = vmatprep.subr.bf16.mxu0 %v5576_v34  ;;  %4090 = vmatprep.subr.bf16.mxu1 %v5578_v35  ;;  %v5617_v34 = vcombine.low %v1014_v20, %v1018_v22  ;;  %v5624_v35 = vcombine.high %v1021_v28, %v1025_v29  ;;  %v5626_v37 = vcombine.high %v1022_v30, %v1026_v31  ;;  %v1065_v20 = vld [vmem:[#allocation6 + $0xa60] sm:$0xff]  ;;  %v1062_v22 = vld [vmem:[#allocation6 + $0xa48] sm:$0xff] }
 0x1a8   :  { %3919 = vmatpush1.bf16.msra.mxu0 %v5575_v41  ;;  %4091 = vmatpush1.bf16.msra.mxu1 %v5577_v43  ;;  %v1034_v41 = vld [vmem:[#allocation6 + $0x968] sm:$0xff]  ;;  %v5623_v43 = vcombine.low %v1021_v28, %v1025_v29  ;;  %v1069_v29 = vld [vmem:[#allocation6 + $0xa80] sm:$0xff] }
 0x1a9   :  { %3920 = vmatprep.subr.bf16.mxu0 %v5584_v0  ;;  %4092 = vmatprep.subr.bf16.mxu1 %v5586_v44  ;;  %v5625_v0 = vcombine.low %v1022_v30, %v1026_v31  ;;  %v5632_v44 = vcombine.high %v1029_v38, %v1033_v39  ;;  %v5634_v45 = vcombine.high %v1030_v5, %v1034_v41  ;;  %v1073_v30 = vld [vmem:[#allocation6 + $0xaa0] sm:$0xff]  ;;  %v1070_v31 = vld [vmem:[#allocation6 + $0xa88] sm:$0xff] }
 0x1ac   :  { %3921 = vmatpush1.bf16.msra.mxu0 %v5583_v50  ;;  %4093 = vmatpush1.bf16.msra.mxu1 %v5585_v52  ;;  %v1042_v50 = vld [vmem:[#allocation6 + $0x9a8] sm:$0xff]  ;;  %v5631_v52 = vcombine.low %v1029_v38, %v1033_v39  ;;  %v1077_v39 = vld [vmem:[#allocation6 + $0xac0] sm:$0xff] }
 0x1ad   :  { %3933 = vmatprep.subr.bf16.mxu0 %v5592_v53  ;;  %4105 = vmatprep.subr.bf16.mxu1 %v5594_v54  ;;  %v5633_v53 = vcombine.low %v1030_v5, %v1034_v41  ;;  %v5640_v54 = vcombine.high %v1037_v46, %v1041_v48  ;;  %v5642_v56 = vcombine.high %v1038_v49, %v1042_v50  ;;  %v1081_v5 = vld [vmem:[#allocation6 + $0xae0] sm:$0xff]  ;;  %v1078_v41 = vld [vmem:[#allocation6 + $0xac8] sm:$0xff] }
 0x1af   :  { %3923 = vmatmul.mubr.bf16.vlgmr.msra.gmra.mrb[8].mxu0 %v6468_v62  ;;  %4095 = vmatmul.mubr.bf16.vlgmr.msra.gmra.mrb[8].mxu1 %v6468_v62 }
 0x1b0   :  { %3934 = vmatpush1.bf16.msra.mxu0 %v5591_v61  ;;  %4106 = vmatpush1.bf16.msra.mxu1 %v5593_v63  ;;  %v1050_v61 = vld [vmem:[#allocation6 + $0x9e8] sm:$0xff]  ;;  %v5639_v63 = vcombine.low %v1037_v46, %v1041_v48  ;;  %v1085_v48 = vld [vmem:[#allocation6 + $0xb00] sm:$0xff] }
 0x1b1   :  { %3935 = vmatprep.subr.bf16.mxu0 %v5600_v1  ;;  %4107 = vmatprep.subr.bf16.mxu1 %v5602_v2  ;;  %v5641_v1 = vcombine.low %v1038_v49, %v1042_v50  ;;  %v5648_v2 = vcombine.high %v1045_v57, %v1049_v58  ;;  %v5650_v4 = vcombine.high %v1046_v60, %v1050_v61  ;;  %v1089_v49 = vld [vmem:[#allocation6 + $0xb20] sm:$0xff]  ;;  %v1086_v50 = vld [vmem:[#allocation6 + $0xb08] sm:$0xff] }
 0x1b2   :  { %3965 = vmatprep.mubr.bf16.mxu0 %v6492_v15  ;;  %4137 = vmatprep.mubr.bf16.mxu1 %v6492_v15 }
 0x1b4   :  { %3936 = vmatpush1.bf16.msra.mxu0 %v5599_v9  ;;  %4108 = vmatpush1.bf16.msra.mxu1 %v5601_v10  ;;  %v1058_v9 = vld [vmem:[#allocation6 + $0xa28] sm:$0xff]  ;;  %v5647_v10 = vcombine.low %v1045_v57, %v1049_v58  ;;  %v1093_v58 = vld [vmem:[#allocation6 + $0xb40] sm:$0xff] }
 0x1b5   :  { %3937 = vmatprep.subr.bf16.mxu0 %v5608_v11  ;;  %4109 = vmatprep.subr.bf16.mxu1 %v5610_v12  ;;  %v5649_v11 = vcombine.low %v1046_v60, %v1050_v61  ;;  %v5656_v12 = vcombine.high %v1053_v6, %v1057_v7  ;;  %v5658_v17 = vcombine.high %v1054_v8, %v1058_v9  ;;  %v1097_v60 = vld [vmem:[#allocation6 + $0xb60] sm:$0xff]  ;;  %v1094_v61 = vld [vmem:[#allocation6 + $0xb48] sm:$0xff] }
 0x1b8   :  { %3938 = vmatpush1.bf16.msra.mxu0 %v5607_v23  ;;  %4110 = vmatpush1.bf16.msra.mxu1 %v5609_v24  ;;  %v1066_v23 = vld [vmem:[#allocation6 + $0xa68] sm:$0xff]  ;;  %v5655_v24 = vcombine.low %v1053_v6, %v1057_v7  ;;  %v1101_v7 = vld [vmem:[#allocation6 + $0xb80] sm:$0xff] }
 0x1b9   :  { %3939 = vmatprep.subr.bf16.mxu0 %v5616_v25  ;;  %4111 = vmatprep.subr.bf16.mxu1 %v5618_v26  ;;  %v5657_v25 = vcombine.low %v1054_v8, %v1058_v9  ;;  %v5664_v26 = vcombine.high %v1061_v18, %v1065_v20  ;;  %v5666_v28 = vcombine.high %v1062_v22, %v1066_v23  ;;  %v1105_v8 = vld [vmem:[#allocation6 + $0xba0] sm:$0xff]  ;;  %v1102_v9 = vld [vmem:[#allocation6 + $0xb88] sm:$0xff] }
 0x1bc   :  { %3940 = vmatpush1.bf16.msra.mxu0 %v5615_v33  ;;  %4112 = vmatpush1.bf16.msra.mxu1 %v5617_v34  ;;  %v1074_v33 = vld [vmem:[#allocation6 + $0xaa8] sm:$0xff]  ;;  %v5663_v34 = vcombine.low %v1061_v18, %v1065_v20  ;;  %v1109_v20 = vld [vmem:[#allocation6 + $0xbc0] sm:$0xff] }
 0x1bd   :  { %3941 = vmatprep.subr.bf16.mxu0 %v5624_v35  ;;  %4113 = vmatprep.subr.bf16.mxu1 %v5626_v37  ;;  %v5665_v35 = vcombine.low %v1062_v22, %v1066_v23  ;;  %v5672_v37 = vcombine.high %v1069_v29, %v1073_v30  ;;  %v5674_v38 = vcombine.high %v1070_v31, %v1074_v33  ;;  %v1113_v22 = vld [vmem:[#allocation6 + $0xbe0] sm:$0xff]  ;;  %v1110_v23 = vld [vmem:[#allocation6 + $0xbc8] sm:$0xff] }
 0x1c0   :  { %3942 = vmatpush1.bf16.msra.mxu0 %v5623_v43  ;;  %4114 = vmatpush1.bf16.msra.mxu1 %v5625_v0  ;;  %v1082_v43 = vld [vmem:[#allocation6 + $0xae8] sm:$0xff]  ;;  %v5671_v0 = vcombine.low %v1069_v29, %v1073_v30  ;;  %v1117_v30 = vld [vmem:[#allocation6 + $0xc00] sm:$0xff] }
 0x1c1   :  { %3943 = vmatprep.subr.bf16.mxu0 %v5632_v44  ;;  %4115 = vmatprep.subr.bf16.mxu1 %v5634_v45  ;;  %v5673_v44 = vcombine.low %v1070_v31, %v1074_v33  ;;  %v5680_v45 = vcombine.high %v1077_v39, %v1081_v5  ;;  %v5682_v46 = vcombine.high %v1078_v41, %v1082_v43  ;;  %v1121_v31 = vld [vmem:[#allocation6 + $0xc20] sm:$0xff]  ;;  %v1118_v33 = vld [vmem:[#allocation6 + $0xc08] sm:$0xff] }
 0x1c4   :  { %3944 = vmatpush1.bf16.msra.mxu0 %v5631_v52  ;;  %4116 = vmatpush1.bf16.msra.mxu1 %v5633_v53  ;;  %v1090_v52 = vld [vmem:[#allocation6 + $0xb28] sm:$0xff]  ;;  %v5679_v53 = vcombine.low %v1077_v39, %v1081_v5  ;;  %v1125_v5 = vld [vmem:[#allocation6 + $0xc40] sm:$0xff] }
 0x1c5   :  { %3945 = vmatprep.subr.bf16.mxu0 %v5640_v54  ;;  %4117 = vmatprep.subr.bf16.mxu1 %v5642_v56  ;;  %v5681_v54 = vcombine.low %v1078_v41, %v1082_v43  ;;  %v5688_v56 = vcombine.high %v1085_v48, %v1089_v49  ;;  %v5690_v57 = vcombine.high %v1086_v50, %v1090_v52  ;;  %v1129_v41 = vld [vmem:[#allocation6 + $0xc60] sm:$0xff]  ;;  %v1126_v43 = vld [vmem:[#allocation6 + $0xc48] sm:$0xff] }
 0x1c8   :  { %3946 = vmatpush1.bf16.msra.mxu0 %v5639_v63  ;;  %4118 = vmatpush1.bf16.msra.mxu1 %v5641_v1  ;;  %v1098_v63 = vld [vmem:[#allocation6 + $0xb68] sm:$0xff]  ;;  %v5687_v1 = vcombine.low %v1085_v48, %v1089_v49  ;;  %v1133_v49 = vld [vmem:[#allocation6 + $0xc80] sm:$0xff] }
 0x1c9   :  { %3947 = vmatprep.subr.bf16.mxu0 %v5648_v2  ;;  %4119 = vmatprep.subr.bf16.mxu1 %v5650_v4  ;;  %v5689_v2 = vcombine.low %v1086_v50, %v1090_v52  ;;  %v5696_v4 = vcombine.high %v1093_v58, %v1097_v60  ;;  %v5698_v6 = vcombine.high %v1094_v61, %v1098_v63  ;;  %v1137_v50 = vld [vmem:[#allocation6 + $0xca0] sm:$0xff]  ;;  %v1134_v52 = vld [vmem:[#allocation6 + $0xc88] sm:$0xff] }
 0x1cc   :  { %3948 = vmatpush1.bf16.msra.mxu0 %v5647_v10  ;;  %4120 = vmatpush1.bf16.msra.mxu1 %v5649_v11  ;;  %v1106_v10 = vld [vmem:[#allocation6 + $0xba8] sm:$0xff]  ;;  %v5695_v11 = vcombine.low %v1093_v58, %v1097_v60  ;;  %v1141_v60 = vld [vmem:[#allocation6 + $0xcc0] sm:$0xff] }
 0x1cd   :  { %3949 = vmatprep.subr.bf16.mxu0 %v5656_v12  ;;  %4121 = vmatprep.subr.bf16.mxu1 %v5658_v17  ;;  %v5697_v12 = vcombine.low %v1094_v61, %v1098_v63  ;;  %v5704_v17 = vcombine.high %v1101_v7, %v1105_v8  ;;  %v5706_v18 = vcombine.high %v1102_v9, %v1106_v10  ;;  %v1145_v61 = vld [vmem:[#allocation6 + $0xce0] sm:$0xff]  ;;  %v1142_v63 = vld [vmem:[#allocation6 + $0xcc8] sm:$0xff] }
 0x1d0   :  { %3950 = vmatpush1.bf16.msra.mxu0 %v5655_v24  ;;  %4122 = vmatpush1.bf16.msra.mxu1 %v5657_v25  ;;  %v1114_v24 = vld [vmem:[#allocation6 + $0xbe8] sm:$0xff]  ;;  %v5703_v25 = vcombine.low %v1101_v7, %v1105_v8  ;;  %v1149_v8 = vld [vmem:[#allocation6 + $0xd00] sm:$0xff] }
 0x1d1   :  { %3951 = vmatprep.subr.bf16.mxu0 %v5664_v26  ;;  %4123 = vmatprep.subr.bf16.mxu1 %v5666_v28  ;;  %v5705_v26 = vcombine.low %v1102_v9, %v1106_v10  ;;  %v5712_v28 = vcombine.high %v1109_v20, %v1113_v22  ;;  %v5714_v29 = vcombine.high %v1110_v23, %v1114_v24  ;;  %v1153_v9 = vld [vmem:[#allocation6 + $0xd20] sm:$0xff]  ;;  %v1150_v10 = vld [vmem:[#allocation6 + $0xd08] sm:$0xff] }
 0x1d4   :  { %3952 = vmatpush1.bf16.msra.mxu0 %v5663_v34  ;;  %4124 = vmatpush1.bf16.msra.mxu1 %v5665_v35  ;;  %v1122_v34 = vld [vmem:[#allocation6 + $0xc28] sm:$0xff]  ;;  %v5711_v35 = vcombine.low %v1109_v20, %v1113_v22  ;;  %v1157_v22 = vld [vmem:[#allocation6 + $0xd40] sm:$0xff] }
 0x1d5   :  { %3953 = vmatprep.subr.bf16.mxu0 %v5672_v37  ;;  %4125 = vmatprep.subr.bf16.mxu1 %v5674_v38  ;;  %v5713_v37 = vcombine.low %v1110_v23, %v1114_v24  ;;  %v5720_v38 = vcombine.high %v1117_v30, %v1121_v31  ;;  %v5722_v39 = vcombine.high %v1118_v33, %v1122_v34  ;;  %v1161_v23 = vld [vmem:[#allocation6 + $0xd60] sm:$0xff]  ;;  %v1158_v24 = vld [vmem:[#allocation6 + $0xd48] sm:$0xff] }
 0x1d8   :  { %3954 = vmatpush1.bf16.msra.mxu0 %v5671_v0  ;;  %4126 = vmatpush1.bf16.msra.mxu1 %v5673_v44  ;;  %v1130_v0 = vld [vmem:[#allocation6 + $0xc68] sm:$0xff]  ;;  %v5719_v44 = vcombine.low %v1117_v30, %v1121_v31  ;;  %v1165_v31 = vld [vmem:[#allocation6 + $0xd80] sm:$0xff] }
 0x1d9   :  { %3955 = vmatprep.subr.bf16.mxu0 %v5680_v45  ;;  %4127 = vmatprep.subr.bf16.mxu1 %v5682_v46  ;;  %v5721_v45 = vcombine.low %v1118_v33, %v1122_v34  ;;  %v5728_v46 = vcombine.high %v1125_v5, %v1129_v41  ;;  %v5730_v48 = vcombine.high %v1126_v43, %v1130_v0  ;;  %v1169_v33 = vld [vmem:[#allocation6 + $0xda0] sm:$0xff]  ;;  %v1166_v34 = vld [vmem:[#allocation6 + $0xd88] sm:$0xff] }
 0x1dc   :  { %3956 = vmatpush1.bf16.msra.mxu0 %v5679_v53  ;;  %4128 = vmatpush1.bf16.msra.mxu1 %v5681_v54  ;;  %v1138_v53 = vld [vmem:[#allocation6 + $0xca8] sm:$0xff]  ;;  %v5727_v54 = vcombine.low %v1125_v5, %v1129_v41  ;;  %v1173_v41 = vld [vmem:[#allocation6 + $0xdc0] sm:$0xff] }
 0x1dd   :  { %3957 = vmatprep.subr.bf16.mxu0 %v5688_v56  ;;  %4129 = vmatprep.subr.bf16.mxu1 %v5690_v57  ;;  %v5729_v56 = vcombine.low %v1126_v43, %v1130_v0  ;;  %v5736_v57 = vcombine.high %v1133_v49, %v1137_v50  ;;  %v5738_v58 = vcombine.high %v1134_v52, %v1138_v53  ;;  %v1177_v43 = vld [vmem:[#allocation6 + $0xde0] sm:$0xff]  ;;  %v1174_v0 = vld [vmem:[#allocation6 + $0xdc8] sm:$0xff] }
 0x1e0   :  { %3958 = vmatpush1.bf16.msra.mxu0 %v5687_v1  ;;  %4130 = vmatpush1.bf16.msra.mxu1 %v5689_v2  ;;  %v1146_v1 = vld [vmem:[#allocation6 + $0xce8] sm:$0xff]  ;;  %v5735_v2 = vcombine.low %v1133_v49, %v1137_v50  ;;  %v1181_v50 = vld [vmem:[#allocation6 + $0xe00] sm:$0xff] }
 0x1e1   :  { %3959 = vmatprep.subr.bf16.mxu0 %v5696_v4  ;;  %4131 = vmatprep.subr.bf16.mxu1 %v5698_v6  ;;  %v5737_v4 = vcombine.low %v1134_v52, %v1138_v53  ;;  %v5744_v6 = vcombine.high %v1141_v60, %v1145_v61  ;;  %v5746_v7 = vcombine.high %v1142_v63, %v1146_v1  ;;  %v1185_v52 = vld [vmem:[#allocation6 + $0xe20] sm:$0xff]  ;;  %v1182_v53 = vld [vmem:[#allocation6 + $0xe08] sm:$0xff] }
 0x1e4   :  { %3960 = vmatpush1.bf16.msra.mxu0 %v5695_v11  ;;  %4132 = vmatpush1.bf16.msra.mxu1 %v5697_v12  ;;  %v1154_v11 = vld [vmem:[#allocation6 + $0xd28] sm:$0xff]  ;;  %v5743_v12 = vcombine.low %v1141_v60, %v1145_v61  ;;  %v1189_v61 = vld [vmem:[#allocation6 + $0xe40] sm:$0xff] }
 0x1e5   :  { %3961 = vmatprep.subr.bf16.mxu0 %v5704_v17  ;;  %4133 = vmatprep.subr.bf16.mxu1 %v5706_v18  ;;  %v5745_v17 = vcombine.low %v1142_v63, %v1146_v1  ;;  %v5752_v18 = vcombine.high %v1149_v8, %v1153_v9  ;;  %v5754_v20 = vcombine.high %v1150_v10, %v1154_v11  ;;  %v1193_v63 = vld [vmem:[#allocation6 + $0xe60] sm:$0xff]  ;;  %v1190_v1 = vld [vmem:[#allocation6 + $0xe48] sm:$0xff] }
 0x1e8   :  { %3962 = vmatpush1.bf16.msra.mxu0 %v5703_v25  ;;  %4134 = vmatpush1.bf16.msra.mxu1 %v5705_v26  ;;  %v1162_v25 = vld [vmem:[#allocation6 + $0xd68] sm:$0xff]  ;;  %v5751_v26 = vcombine.low %v1149_v8, %v1153_v9  ;;  %v1197_v9 = vld [vmem:[#allocation6 + $0xe80] sm:$0xff] }
 0x1e9   :  { %3963 = vmatprep.subr.bf16.mxu0 %v5712_v28  ;;  %4135 = vmatprep.subr.bf16.mxu1 %v5714_v29  ;;  %v5753_v28 = vcombine.low %v1150_v10, %v1154_v11  ;;  %v5760_v29 = vcombine.high %v1157_v22, %v1161_v23  ;;  %v5762_v30 = vcombine.high %v1158_v24, %v1162_v25  ;;  %v1201_v10 = vld [vmem:[#allocation6 + $0xea0] sm:$0xff]  ;;  %v1198_v11 = vld [vmem:[#allocation6 + $0xe88] sm:$0xff] }
 0x1ec   :  { %3964 = vmatpush1.bf16.msra.mxu0 %v5711_v35  ;;  %4136 = vmatpush1.bf16.msra.mxu1 %v5713_v37  ;;  %v1170_v35 = vld [vmem:[#allocation6 + $0xda8] sm:$0xff]  ;;  %v5759_v37 = vcombine.low %v1157_v22, %v1161_v23  ;;  %v1205_v23 = vld [vmem:[#allocation6 + $0xec0] sm:$0xff] }
 0x1ed   :  { %3976 = vmatprep.subr.bf16.mxu0 %v5720_v38  ;;  %4148 = vmatprep.subr.bf16.mxu1 %v5722_v39  ;;  %v5761_v38 = vcombine.low %v1158_v24, %v1162_v25  ;;  %v5768_v39 = vcombine.high %v1165_v31, %v1169_v33  ;;  %v5770_v5 = vcombine.high %v1166_v34, %v1170_v35  ;;  %v1209_v24 = vld [vmem:[#allocation6 + $0xee0] sm:$0xff]  ;;  %v1206_v25 = vld [vmem:[#allocation6 + $0xec8] sm:$0xff] }
 0x1ef   :  { %3966 = vmatmul.mubr.bf16.vlgmr.msra.gmra.mrb[8].mxu0 %v6490_v27  ;;  %4138 = vmatmul.mubr.bf16.vlgmr.msra.gmra.mrb[8].mxu1 %v6490_v27 }
 0x1f0   :  { %3977 = vmatpush1.bf16.msra.mxu0 %v5719_v44  ;;  %4149 = vmatpush1.bf16.msra.mxu1 %v5721_v45  ;;  %v1178_v44 = vld [vmem:[#allocation6 + $0xde8] sm:$0xff]  ;;  %v5767_v45 = vcombine.low %v1165_v31, %v1169_v33  ;;  %v1213_v33 = vld [vmem:[#allocation6 + $0xf00] sm:$0xff] }
 0x1f1   :  { %3978 = vmatprep.subr.bf16.mxu0 %v5728_v46  ;;  %4150 = vmatprep.subr.bf16.mxu1 %v5730_v48  ;;  %v5769_v46 = vcombine.low %v1166_v34, %v1170_v35  ;;  %v5776_v48 = vcombine.high %v1173_v41, %v1177_v43  ;;  %v5778_v49 = vcombine.high %v1174_v0, %v1178_v44  ;;  %v1217_v34 = vld [vmem:[#allocation6 + $0xf20] sm:$0xff]  ;;  %v1214_v35 = vld [vmem:[#allocation6 + $0xf08] sm:$0xff] }
 0x1f2   :  { %4008 = vmatprep.mubr.bf16.mxu0 %v6496_v59  ;;  %4180 = vmatprep.mubr.bf16.mxu1 %v6496_v59 }
 0x1f4   :  { %3979 = vmatpush1.bf16.msra.mxu0 %v5727_v54  ;;  %4151 = vmatpush1.bf16.msra.mxu1 %v5729_v56  ;;  %v1186_v54 = vld [vmem:[#allocation6 + $0xe28] sm:$0xff]  ;;  %v5775_v56 = vcombine.low %v1173_v41, %v1177_v43  ;;  %v1221_v43 = vld [vmem:[#allocation6 + $0xf40] sm:$0xff] }
 0x1f5   :  { %3980 = vmatprep.subr.bf16.mxu0 %v5736_v57  ;;  %4152 = vmatprep.subr.bf16.mxu1 %v5738_v58  ;;  %v5777_v57 = vcombine.low %v1174_v0, %v1178_v44  ;;  %v5784_v58 = vcombine.high %v1181_v50, %v1185_v52  ;;  %v5786_v60 = vcombine.high %v1182_v53, %v1186_v54  ;;  %v1225_v0 = vld [vmem:[#allocation6 + $0xf60] sm:$0xff]  ;;  %v1222_v44 = vld [vmem:[#allocation6 + $0xf48] sm:$0xff] }
 0x1f8   :  { %3981 = vmatpush1.bf16.msra.mxu0 %v5735_v2  ;;  %4153 = vmatpush1.bf16.msra.mxu1 %v5737_v4  ;;  %v1194_v2 = vld [vmem:[#allocation6 + $0xe68] sm:$0xff]  ;;  %v5783_v4 = vcombine.low %v1181_v50, %v1185_v52  ;;  %v1229_v52 = vld [vmem:[#allocation6 + $0xf80] sm:$0xff] }
 0x1f9   :  { %3982 = vmatprep.subr.bf16.mxu0 %v5744_v6  ;;  %4154 = vmatprep.subr.bf16.mxu1 %v5746_v7  ;;  %v5785_v6 = vcombine.low %v1182_v53, %v1186_v54  ;;  %v5792_v7 = vcombine.high %v1189_v61, %v1193_v63  ;;  %v5794_v8 = vcombine.high %v1190_v1, %v1194_v2  ;;  %v1233_v53 = vld [vmem:[#allocation6 + $0xfa0] sm:$0xff]  ;;  %v1230_v54 = vld [vmem:[#allocation6 + $0xf88] sm:$0xff] }
 0x1fc   :  { %3983 = vmatpush1.bf16.msra.mxu0 %v5743_v12  ;;  %4155 = vmatpush1.bf16.msra.mxu1 %v5745_v17  ;;  %v1202_v12 = vld [vmem:[#allocation6 + $0xea8] sm:$0xff]  ;;  %v5791_v17 = vcombine.low %v1189_v61, %v1193_v63  ;;  %v1237_v63 = vld [vmem:[#allocation6 + $0xfc0] sm:$0xff] }
 0x1fd   :  { %3984 = vmatprep.subr.bf16.mxu0 %v5752_v18  ;;  %4156 = vmatprep.subr.bf16.mxu1 %v5754_v20  ;;  %v5793_v18 = vcombine.low %v1190_v1, %v1194_v2  ;;  %v5800_v20 = vcombine.high %v1197_v9, %v1201_v10  ;;  %v5802_v22 = vcombine.high %v1198_v11, %v1202_v12  ;;  %v1241_v1 = vld [vmem:[#allocation6 + $0xfe0] sm:$0xff]  ;;  %v1238_v2 = vld [vmem:[#allocation6 + $0xfc8] sm:$0xff] }
 0x200   :  { %3985 = vmatpush1.bf16.msra.mxu0 %v5751_v26  ;;  %4157 = vmatpush1.bf16.msra.mxu1 %v5753_v28  ;;  %v1210_v26 = vld [vmem:[#allocation6 + $0xee8] sm:$0xff]  ;;  %v5799_v28 = vcombine.low %v1197_v9, %v1201_v10  ;;  %v735_v10 = vld [vmem:[#allocation6 + $0x10] sm:$0xff] }
 0x201   :  { %3986 = vmatprep.subr.bf16.mxu0 %v5760_v29  ;;  %4158 = vmatprep.subr.bf16.mxu1 %v5762_v30  ;;  %v5801_v29 = vcombine.low %v1198_v11, %v1202_v12  ;;  %v5808_v30 = vcombine.high %v1205_v23, %v1209_v24  ;;  %v5810_v31 = vcombine.high %v1206_v25, %v1210_v26  ;;  %v739_v11 = vld [vmem:[#allocation6 + $0x30] sm:$0xff]  ;;  %v736_v12 = vld [vmem:[#allocation6 + $0x18] sm:$0xff] }
 0x204   :  { %3987 = vmatpush1.bf16.msra.mxu0 %v5759_v37  ;;  %4159 = vmatpush1.bf16.msra.mxu1 %v5761_v38  ;;  %v1218_v37 = vld [vmem:[#allocation6 + $0xf28] sm:$0xff]  ;;  %v5807_v38 = vcombine.low %v1205_v23, %v1209_v24  ;;  %v743_v24 = vld [vmem:[#allocation6 + $0x50] sm:$0xff] }
 0x205   :  { %3988 = vmatprep.subr.bf16.mxu0 %v5768_v39  ;;  %4160 = vmatprep.subr.bf16.mxu1 %v5770_v5  ;;  %v5809_v39 = vcombine.low %v1206_v25, %v1210_v26  ;;  %v5816_v5 = vcombine.high %v1213_v33, %v1217_v34  ;;  %v5818_v41 = vcombine.high %v1214_v35, %v1218_v37  ;;  %v747_v25 = vld [vmem:[#allocation6 + $0x70] sm:$0xff]  ;;  %v744_v26 = vld [vmem:[#allocation6 + $0x58] sm:$0xff] }
 0x208   :  { %3989 = vmatpush1.bf16.msra.mxu0 %v5767_v45  ;;  %4161 = vmatpush1.bf16.msra.mxu1 %v5769_v46  ;;  %v1226_v45 = vld [vmem:[#allocation6 + $0xf68] sm:$0xff]  ;;  %v5815_v46 = vcombine.low %v1213_v33, %v1217_v34  ;;  %v751_v34 = vld [vmem:[#allocation6 + $0x90] sm:$0xff] }
 0x209   :  { %3990 = vmatprep.subr.bf16.mxu0 %v5776_v48  ;;  %4162 = vmatprep.subr.bf16.mxu1 %v5778_v49  ;;  %v5817_v48 = vcombine.low %v1214_v35, %v1218_v37  ;;  %v5824_v49 = vcombine.high %v1221_v43, %v1225_v0  ;;  %v5826_v50 = vcombine.high %v1222_v44, %v1226_v45  ;;  %v755_v35 = vld [vmem:[#allocation6 + $0xb0] sm:$0xff]  ;;  %v752_v37 = vld [vmem:[#allocation6 + $0x98] sm:$0xff] }
 0x20c   :  { %3991 = vmatpush1.bf16.msra.mxu0 %v5775_v56  ;;  %4163 = vmatpush1.bf16.msra.mxu1 %v5777_v57  ;;  %v1234_v56 = vld [vmem:[#allocation6 + $0xfa8] sm:$0xff]  ;;  %v5823_v57 = vcombine.low %v1221_v43, %v1225_v0  ;;  %v759_v0 = vld [vmem:[#allocation6 + $0xd0] sm:$0xff] }
 0x20d   :  { %3992 = vmatprep.subr.bf16.mxu0 %v5784_v58  ;;  %4164 = vmatprep.subr.bf16.mxu1 %v5786_v60  ;;  %v5825_v58 = vcombine.low %v1222_v44, %v1226_v45  ;;  %v5832_v60 = vcombine.high %v1229_v52, %v1233_v53  ;;  %v5834_v61 = vcombine.high %v1230_v54, %v1234_v56  ;;  %v763_v44 = vld [vmem:[#allocation6 + $0xf0] sm:$0xff]  ;;  %v760_v45 = vld [vmem:[#allocation6 + $0xd8] sm:$0xff] }
 0x210   :  { %3993 = vmatpush1.bf16.msra.mxu0 %v5783_v4  ;;  %4165 = vmatpush1.bf16.msra.mxu1 %v5785_v6  ;;  %v1242_v4 = vld [vmem:[#allocation6 + $0xfe8] sm:$0xff]  ;;  %v5831_v6 = vcombine.low %v1229_v52, %v1233_v53  ;;  %v767_v53 = vld [vmem:[#allocation6 + $0x110] sm:$0xff] }
 0x211   :  { %3994 = vmatprep.subr.bf16.mxu0 %v5792_v7  ;;  %4166 = vmatprep.subr.bf16.mxu1 %v5794_v8  ;;  %v5833_v7 = vcombine.low %v1230_v54, %v1234_v56  ;;  %v5840_v8 = vcombine.high %v1237_v63, %v1241_v1  ;;  %v5842_v9 = vcombine.high %v1238_v2, %v1242_v4  ;;  %v771_v54 = vld [vmem:[#allocation6 + $0x130] sm:$0xff]  ;;  %v772_v56 = vld [vmem:[#allocation6 + $0x138] sm:$0xff] }
 0x214   :  { %3995 = vmatpush1.bf16.msra.mxu0 %v5791_v17  ;;  %4167 = vmatpush1.bf16.msra.mxu1 %v5793_v18  ;;  %v740_v17 = vld [vmem:[#allocation6 + $0x38] sm:$0xff]  ;;  %v5839_v18 = vcombine.low %v1237_v63, %v1241_v1  ;;  %v775_v63 = vld [vmem:[#allocation6 + $0x150] sm:$0xff] }
 0x215   :  { %3996 = vmatprep.subr.bf16.mxu0 %v5800_v20  ;;  %4168 = vmatprep.subr.bf16.mxu1 %v5802_v22  ;;  %v5841_v20 = vcombine.low %v1238_v2, %v1242_v4  ;;  %v5340_v22 = vcombine.high %v735_v10, %v739_v11  ;;  %v5342_v23 = vcombine.high %v736_v12, %v740_v17  ;;  %v779_v1 = vld [vmem:[#allocation6 + $0x170] sm:$0xff]  ;;  %v776_v2 = vld [vmem:[#allocation6 + $0x158] sm:$0xff] }
 0x216   :  { %v780_v4 = vld [vmem:[#allocation6 + $0x178] sm:$0xff] }
 0x218   :  { %3997 = vmatpush1.bf16.msra.mxu0 %v5799_v28  ;;  %4169 = vmatpush1.bf16.msra.mxu1 %v5801_v29  ;;  %v748_v28 = vld [vmem:[#allocation6 + $0x78] sm:$0xff]  ;;  %v5339_v29 = vcombine.low %v735_v10, %v739_v11  ;;  %v783_v10 = vld [vmem:[#allocation6 + $0x190] sm:$0xff] }
 0x219   :  { %3998 = vmatprep.subr.bf16.mxu0 %v5808_v30  ;;  %4170 = vmatprep.subr.bf16.mxu1 %v5810_v31  ;;  %v5341_v30 = vcombine.low %v736_v12, %v740_v17  ;;  %v5348_v31 = vcombine.high %v743_v24, %v747_v25  ;;  %v5350_v33 = vcombine.high %v744_v26, %v748_v28  ;;  %v787_v11 = vld [vmem:[#allocation6 + $0x1b0] sm:$0xff]  ;;  %v784_v12 = vld [vmem:[#allocation6 + $0x198] sm:$0xff] }
 0x21a   :  { %v788_v17 = vld [vmem:[#allocation6 + $0x1b8] sm:$0xff] }
 0x21c   :  { %3999 = vmatpush1.bf16.msra.mxu0 %v5807_v38  ;;  %4171 = vmatpush1.bf16.msra.mxu1 %v5809_v39  ;;  %v756_v38 = vld [vmem:[#allocation6 + $0xb8] sm:$0xff]  ;;  %v5347_v39 = vcombine.low %v743_v24, %v747_v25  ;;  %v791_v24 = vld [vmem:[#allocation6 + $0x1d0] sm:$0xff] }
 0x21d   :  { %4000 = vmatprep.subr.bf16.mxu0 %v5816_v5  ;;  %4172 = vmatprep.subr.bf16.mxu1 %v5818_v41  ;;  %v5349_v5 = vcombine.low %v744_v26, %v748_v28  ;;  %v5356_v41 = vcombine.high %v751_v34, %v755_v35  ;;  %v5358_v43 = vcombine.high %v752_v37, %v756_v38  ;;  %v795_v25 = vld [vmem:[#allocation6 + $0x1f0] sm:$0xff]  ;;  %v792_v26 = vld [vmem:[#allocation6 + $0x1d8] sm:$0xff] }
 0x21e   :  { %v796_v28 = vld [vmem:[#allocation6 + $0x1f8] sm:$0xff] }
 0x220   :  { %4001 = vmatpush1.bf16.msra.mxu0 %v5815_v46  ;;  %4173 = vmatpush1.bf16.msra.mxu1 %v5817_v48  ;;  %v764_v46 = vld [vmem:[#allocation6 + $0xf8] sm:$0xff]  ;;  %v5355_v48 = vcombine.low %v751_v34, %v755_v35  ;;  %v799_v34 = vld [vmem:[#allocation6 + $0x210] sm:$0xff] }
 0x221   :  { %4002 = vmatprep.subr.bf16.mxu0 %v5824_v49  ;;  %4174 = vmatprep.subr.bf16.mxu1 %v5826_v50  ;;  %v5357_v49 = vcombine.low %v752_v37, %v756_v38  ;;  %v5364_v50 = vcombine.high %v759_v0, %v763_v44  ;;  %v5366_v52 = vcombine.high %v760_v45, %v764_v46  ;;  %v803_v35 = vld [vmem:[#allocation6 + $0x230] sm:$0xff]  ;;  %v800_v37 = vld [vmem:[#allocation6 + $0x218] sm:$0xff] }
 0x222   :  { %v804_v38 = vld [vmem:[#allocation6 + $0x238] sm:$0xff] }
 0x224   :  { %4003 = vmatpush1.bf16.msra.mxu0 %v5823_v57  ;;  %4175 = vmatpush1.bf16.msra.mxu1 %v5825_v58  ;;  %v5363_v57 = vcombine.low %v759_v0, %v763_v44  ;;  %v5365_v58 = vcombine.low %v760_v45, %v764_v46  ;;  %v807_v0 = vld [vmem:[#allocation6 + $0x250] sm:$0xff]  ;;  %v808_v45 = vld [vmem:[#allocation6 + $0x258] sm:$0xff] }
 0x225   :  { %4004 = vmatprep.subr.bf16.mxu0 %v5832_v60  ;;  %4176 = vmatprep.subr.bf16.mxu1 %v5834_v61  ;;  %v5372_v60 = vcombine.high %v767_v53, %v771_v54  ;;  %v811_v44 = vld [vmem:[#allocation6 + $0x270] sm:$0xff]  ;;  %v812_v46 = vld [vmem:[#allocation6 + $0x278] sm:$0xff] }
 0x228   :  { %4005 = vmatpush1.bf16.msra.mxu0 %v5831_v6  ;;  %4177 = vmatpush1.bf16.msra.mxu1 %v5833_v7  ;;  %v5371_v6 = vcombine.low %v767_v53, %v771_v54  ;;  %v815_v53 = vld [vmem:[#allocation6 + $0x290] sm:$0xff] }
 0x229   :  { %4006 = vmatprep.subr.bf16.mxu0 %v5840_v8  ;;  %4178 = vmatprep.subr.bf16.mxu1 %v5842_v9  ;;  %v5380_v8 = vcombine.high %v775_v63, %v779_v1  ;;  %v5382_v9 = vcombine.high %v776_v2, %v780_v4  ;;  %v819_v54 = vld [vmem:[#allocation6 + $0x2b0] sm:$0xff] }
 0x22c   :  { %4007 = vmatpush1.bf16.msra.mxu0 %v5839_v18  ;;  %4179 = vmatpush1.bf16.msra.mxu1 %v5841_v20  ;;  %v5379_v18 = vcombine.low %v775_v63, %v779_v1  ;;  %v5381_v20 = vcombine.low %v776_v2, %v780_v4  ;;  %v823_v63 = vld [vmem:[#allocation6 + $0x2d0] sm:$0xff]  ;;  %v824_v2 = vld [vmem:[#allocation6 + $0x2d8] sm:$0xff] }
 0x22d   :  { %4191 = vmatprep.subr.bf16.mxu0 %v5340_v22  ;;  %4363 = vmatprep.subr.bf16.mxu1 %v5342_v23  ;;  %v5388_v22 = vcombine.high %v783_v10, %v787_v11  ;;  %v5390_v23 = vcombine.high %v784_v12, %v788_v17  ;;  %v827_v1 = vld [vmem:[#allocation6 + $0x2f0] sm:$0xff]  ;;  %v828_v4 = vld [vmem:[#allocation6 + $0x2f8] sm:$0xff] }
 0x22f   :  { %4009 = vmatmul.mubr.bf16.vlgmr.msra.gmra.mrb[8].mxu0 %v6494_v55  ;;  %4181 = vmatmul.mubr.bf16.vlgmr.msra.gmra.mrb[8].mxu1 %v6494_v55 }
 0x230   :  { %4192 = vmatpush1.bf16.msra.mxu0 %v5339_v29  ;;  %4223 = vmatprep.mubr.bf16.mxu0 %v6462_v42  ;;  %v5387_v29 = vcombine.low %v783_v10, %v787_v11  ;;  %v831_v10 = vld [vmem:[#allocation6 + $0x310] sm:$0xff] }
 0x231   :  { %4364 = vmatpush1.bf16.msra.mxu1 %v5341_v30  ;;  %4395 = vmatprep.mubr.bf16.mxu1 %v6462_v42  ;;  %v768_v42 = vld [vmem:[#allocation6 + $0x118] sm:$0xff]  ;;  %v5389_v30 = vcombine.low %v784_v12, %v788_v17  ;;  %v835_v11 = vld [vmem:[#allocation6 + $0x330] sm:$0xff] }
 0x232   :  { %4193 = vmatprep.subr.bf16.mxu0 %v5348_v31  ;;  %4365 = vmatprep.subr.bf16.mxu1 %v5350_v33  ;;  %v5374_v61 = vcombine.high %v768_v42, %v772_v56  ;;  %v5373_v7 = vcombine.low %v768_v42, %v772_v56  ;;  %v5396_v31 = vcombine.high %v791_v24, %v795_v25  ;;  %v816_v42 = vld [vmem:[#allocation6 + $0x298] sm:$0xff] }
 0x233   :  { %v5398_v33 = vcombine.high %v792_v26, %v796_v28  ;;  %v820_v56 = vld [vmem:[#allocation6 + $0x2b8] sm:$0xff] }
 0x234   :  { %4194 = vmatpush1.bf16.msra.mxu0 %v5347_v39  ;;  %v5395_v39 = vcombine.low %v791_v24, %v795_v25  ;;  %v832_v12 = vld [vmem:[#allocation6 + $0x318] sm:$0xff]  ;;  %v839_v24 = vld [vmem:[#allocation6 + $0x350] sm:$0xff] }
 0x235   :  { %4366 = vmatpush1.bf16.msra.mxu1 %v5349_v5  ;;  %4195 = vmatprep.subr.bf16.mxu0 %v5356_v41  ;;  %v5397_v5 = vcombine.low %v792_v26, %v796_v28  ;;  %v5404_v41 = vcombine.high %v799_v34, %v803_v35  ;;  %v836_v17 = vld [vmem:[#allocation6 + $0x338] sm:$0xff]  ;;  %v843_v25 = vld [vmem:[#allocation6 + $0x370] sm:$0xff] }
 0x236   :  { %4367 = vmatprep.subr.bf16.mxu1 %v5358_v43  ;;  %v5406_v43 = vcombine.high %v800_v37, %v804_v38  ;;  %v840_v26 = vld [vmem:[#allocation6 + $0x358] sm:$0xff] }
 0x237   :  { %v844_v28 = vld [vmem:[#allocation6 + $0x378] sm:$0xff] }
 0x238   :  { %4196 = vmatpush1.bf16.msra.mxu0 %v5355_v48  ;;  %v5403_v48 = vcombine.low %v799_v34, %v803_v35  ;;  %v847_v34 = vld [vmem:[#allocation6 + $0x390] sm:$0xff] }
 0x239   :  { %4368 = vmatpush1.bf16.msra.mxu1 %v5357_v49  ;;  %4197 = vmatprep.subr.bf16.mxu0 %v5364_v50  ;;  %v5405_v49 = vcombine.low %v800_v37, %v804_v38  ;;  %v5412_v50 = vcombine.high %v807_v0, %v811_v44  ;;  %v851_v35 = vld [vmem:[#allocation6 + $0x3b0] sm:$0xff]  ;;  %v848_v37 = vld [vmem:[#allocation6 + $0x398] sm:$0xff] }
 0x23a   :  { %4369 = vmatprep.subr.bf16.mxu1 %v5366_v52  ;;  %v5414_v52 = vcombine.high %v808_v45, %v812_v46  ;;  %v852_v38 = vld [vmem:[#allocation6 + $0x3b8] sm:$0xff] }
 0x23c   :  { %4198 = vmatpush1.bf16.msra.mxu0 %v5363_v57  ;;  %v5411_v57 = vcombine.low %v807_v0, %v811_v44  ;;  %v855_v0 = vld [vmem:[#allocation6 + $0x3d0] sm:$0xff] }
 0x23d   :  { %4370 = vmatpush1.bf16.msra.mxu1 %v5365_v58  ;;  %4199 = vmatprep.subr.bf16.mxu0 %v5372_v60  ;;  %v5413_v58 = vcombine.low %v808_v45, %v812_v46  ;;  %v5420_v60 = vcombine.high %v815_v53, %v819_v54  ;;  %v859_v44 = vld [vmem:[#allocation6 + $0x3f0] sm:$0xff]  ;;  %v856_v45 = vld [vmem:[#allocation6 + $0x3d8] sm:$0xff] }
 0x23e   :  { %4371 = vmatprep.subr.bf16.mxu1 %v5374_v61  ;;  %v5422_v61 = vcombine.high %v816_v42, %v820_v56  ;;  %v860_v46 = vld [vmem:[#allocation6 + $0x3f8] sm:$0xff] }
 0x240   :  { %4200 = vmatpush1.bf16.msra.mxu0 %v5371_v6  ;;  %v5419_v6 = vcombine.low %v815_v53, %v819_v54  ;;  %v863_v53 = vld [vmem:[#allocation6 + $0x410] sm:$0xff] }
 0x241   :  { %4372 = vmatpush1.bf16.msra.mxu1 %v5373_v7  ;;  %4201 = vmatprep.subr.bf16.mxu0 %v5380_v8  ;;  %v5421_v7 = vcombine.low %v816_v42, %v820_v56  ;;  %v5428_v8 = vcombine.high %v823_v63, %v827_v1  ;;  %v867_v54 = vld [vmem:[#allocation6 + $0x430] sm:$0xff]  ;;  %v864_v42 = vld [vmem:[#allocation6 + $0x418] sm:$0xff] }
 0x242   :  { %4373 = vmatprep.subr.bf16.mxu1 %v5382_v9  ;;  %v5430_v9 = vcombine.high %v824_v2, %v828_v4  ;;  %v868_v56 = vld [vmem:[#allocation6 + $0x438] sm:$0xff] }
 0x244   :  { %4202 = vmatpush1.bf16.msra.mxu0 %v5379_v18  ;;  %v5427_v18 = vcombine.low %v823_v63, %v827_v1  ;;  %v871_v63 = vld [vmem:[#allocation6 + $0x450] sm:$0xff] }
 0x245   :  { %4374 = vmatpush1.bf16.msra.mxu1 %v5381_v20  ;;  %4203 = vmatprep.subr.bf16.mxu0 %v5388_v22  ;;  %v5429_v20 = vcombine.low %v824_v2, %v828_v4  ;;  %v5436_v22 = vcombine.high %v831_v10, %v835_v11  ;;  %v875_v1 = vld [vmem:[#allocation6 + $0x470] sm:$0xff]  ;;  %v5467_v2 = vcombine.low %v863_v53, %v867_v54  ;;  %v872_v4 = vld [vmem:[#allocation6 + $0x458] sm:$0xff] }
 0x246   :  { %4375 = vmatprep.subr.bf16.mxu1 %v5390_v23  ;;  %v5438_v23 = vcombine.high %v832_v12, %v836_v17 }
 0x248   :  { %4204 = vmatpush1.bf16.msra.mxu0 %v5387_v29  ;;  %v5435_v29 = vcombine.low %v831_v10, %v835_v11  ;;  %v883_v10 = vld [vmem:[#allocation6 + $0x4b0] sm:$0xff] }
 0x249   :  { %4376 = vmatpush1.bf16.msra.mxu1 %v5389_v30  ;;  %4205 = vmatprep.subr.bf16.mxu0 %v5396_v31  ;;  %v5437_v30 = vcombine.low %v832_v12, %v836_v17  ;;  %v5444_v31 = vcombine.high %v839_v24, %v843_v25  ;;  %v880_v12 = vld [vmem:[#allocation6 + $0x498] sm:$0xff] }
 0x24a   :  { %4377 = vmatprep.subr.bf16.mxu1 %v5398_v33  ;;  %v5446_v33 = vcombine.high %v840_v26, %v844_v28  ;;  %v884_v17 = vld [vmem:[#allocation6 + $0x4b8] sm:$0xff] }
 0x24c   :  { %4206 = vmatpush1.bf16.msra.mxu0 %v5395_v39  ;;  %v5443_v39 = vcombine.low %v839_v24, %v843_v25  ;;  %v887_v24 = vld [vmem:[#allocation6 + $0x4d0] sm:$0xff] }
 0x24d   :  { %4378 = vmatpush1.bf16.msra.mxu1 %v5397_v5  ;;  %4207 = vmatprep.subr.bf16.mxu0 %v5404_v41  ;;  %v5445_v5 = vcombine.low %v840_v26, %v844_v28  ;;  %v5452_v41 = vcombine.high %v847_v34, %v851_v35  ;;  %v891_v25 = vld [vmem:[#allocation6 + $0x4f0] sm:$0xff]  ;;  %v888_v26 = vld [vmem:[#allocation6 + $0x4d8] sm:$0xff] }
 0x24e   :  { %4379 = vmatprep.subr.bf16.mxu1 %v5406_v43  ;;  %v5454_v43 = vcombine.high %v848_v37, %v852_v38  ;;  %v892_v28 = vld [vmem:[#allocation6 + $0x4f8] sm:$0xff] }
 0x250   :  { %4208 = vmatpush1.bf16.msra.mxu0 %v5403_v48  ;;  %v5451_v48 = vcombine.low %v847_v34, %v851_v35  ;;  %v899_v34 = vld [vmem:[#allocation6 + $0x530] sm:$0xff]  ;;  %v896_v35 = vld [vmem:[#allocation6 + $0x518] sm:$0xff] }
 0x251   :  { %4380 = vmatpush1.bf16.msra.mxu1 %v5405_v49  ;;  %4209 = vmatprep.subr.bf16.mxu0 %v5412_v50  ;;  %v5453_v49 = vcombine.low %v848_v37, %v852_v38  ;;  %v5460_v50 = vcombine.high %v855_v0, %v859_v44  ;;  %v900_v37 = vld [vmem:[#allocation6 + $0x538] sm:$0xff]  ;;  %v5493_v38 = vcombine.low %v888_v26, %v892_v28 }
 0x252   :  { %4381 = vmatprep.subr.bf16.mxu1 %v5414_v52  ;;  %v5462_v52 = vcombine.high %v856_v45, %v860_v46 }
 0x254   :  { %4210 = vmatpush1.bf16.msra.mxu0 %v5411_v57  ;;  %v5459_v57 = vcombine.low %v855_v0, %v859_v44  ;;  %v904_v0 = vld [vmem:[#allocation6 + $0x558] sm:$0xff] }
 0x255   :  { %4382 = vmatpush1.bf16.msra.mxu1 %v5413_v58  ;;  %4211 = vmatprep.subr.bf16.mxu0 %v5420_v60  ;;  %v5461_v58 = vcombine.low %v856_v45, %v860_v46  ;;  %v5468_v60 = vcombine.high %v863_v53, %v867_v54  ;;  %v908_v44 = vld [vmem:[#allocation6 + $0x578] sm:$0xff]  ;;  %v5501_v46 = vcombine.low %v896_v35, %v900_v37 }
 0x256   :  { %4383 = vmatprep.subr.bf16.mxu1 %v5422_v61  ;;  %v5470_v61 = vcombine.high %v864_v42, %v868_v56  ;;  %v912_v53 = vld [vmem:[#allocation6 + $0x598] sm:$0xff] }
 0x257   :  { %v916_v54 = vld [vmem:[#allocation6 + $0x5b8] sm:$0xff] }
 0x258   :  { %4212 = vmatpush1.bf16.msra.mxu0 %v5419_v6  ;;  %v876_v6 = vld [vmem:[#allocation6 + $0x478] sm:$0xff] }
 0x259   :  { %4384 = vmatpush1.bf16.msra.mxu1 %v5421_v7  ;;  %4213 = vmatprep.subr.bf16.mxu0 %v5428_v8  ;;  %v5469_v7 = vcombine.low %v864_v42, %v868_v56  ;;  %v5476_v8 = vcombine.high %v871_v63, %v875_v1  ;;  %v5478_v11 = vcombine.high %v872_v4, %v876_v6 }
 0x25a   :  { %4385 = vmatprep.subr.bf16.mxu1 %v5430_v9  ;;  %v879_v9 = vld [vmem:[#allocation6 + $0x490] sm:$0xff]  ;;  %v5509_v56 = vcombine.low %v904_v0, %v908_v44 }
 0x25c   :  { %4214 = vmatpush1.bf16.msra.mxu0 %v5427_v18  ;;  %v5475_v18 = vcombine.low %v871_v63, %v875_v1  ;;  %v920_v63 = vld [vmem:[#allocation6 + $0x5d8] sm:$0xff] }
 0x25d   :  { %4386 = vmatpush1.bf16.msra.mxu1 %v5429_v20  ;;  %4215 = vmatprep.subr.bf16.mxu0 %v5436_v22  ;;  %v5477_v20 = vcombine.low %v872_v4, %v876_v6  ;;  %v5484_v22 = vcombine.high %v879_v9, %v883_v10  ;;  %v924_v1 = vld [vmem:[#allocation6 + $0x5f8] sm:$0xff]  ;;  %v5517_v4 = vcombine.low %v912_v53, %v916_v54 }
 0x25e   :  { %4387 = vmatprep.subr.bf16.mxu1 %v5438_v23  ;;  %v5486_v23 = vcombine.high %v880_v12, %v884_v17 }
 0x260   :  { %4216 = vmatpush1.bf16.msra.mxu0 %v5435_v29  ;;  %v5483_v29 = vcombine.low %v879_v9, %v883_v10  ;;  %v931_v9 = vld [vmem:[#allocation6 + $0x630] sm:$0xff]  ;;  %v928_v10 = vld [vmem:[#allocation6 + $0x618] sm:$0xff] }
 0x261   :  { %4388 = vmatpush1.bf16.msra.mxu1 %v5437_v30  ;;  %4217 = vmatprep.subr.bf16.mxu0 %v5444_v31  ;;  %v5492_v30 = vcombine.high %v887_v24, %v891_v25  ;;  %v5494_v31 = vcombine.high %v888_v26, %v892_v28 }
 0x262   :  { %4389 = vmatprep.subr.bf16.mxu1 %v5446_v33  ;;  %v895_v33 = vld [vmem:[#allocation6 + $0x510] sm:$0xff] }
 0x263   :  { %v5499_v45 = vcombine.low %v895_v33, %v899_v34 }
 0x264   :  { %4218 = vmatpush1.bf16.msra.mxu0 %v5443_v39  ;;  %v5500_v39 = vcombine.high %v895_v33, %v899_v34  ;;  %v944_v33 = vld [vmem:[#allocation6 + $0x698] sm:$0xff] }
 0x265   :  { %4390 = vmatpush1.bf16.msra.mxu1 %v5445_v5  ;;  %4219 = vmatprep.subr.bf16.mxu0 %v5452_v41  ;;  %v5502_v5 = vcombine.high %v896_v35, %v900_v37  ;;  %v903_v41 = vld [vmem:[#allocation6 + $0x550] sm:$0xff]  ;;  %v948_v34 = vld [vmem:[#allocation6 + $0x6b8] sm:$0xff] }
 0x266   :  { %4391 = vmatprep.subr.bf16.mxu1 %v5454_v43  ;;  %v907_v43 = vld [vmem:[#allocation6 + $0x570] sm:$0xff] }
 0x267   :  { %v5507_v42 = vcombine.low %v903_v41, %v907_v43 }
 0x268   :  { %4220 = vmatpush1.bf16.msra.mxu0 %v5451_v48  ;;  %v5508_v48 = vcombine.high %v903_v41, %v907_v43  ;;  %v952_v41 = vld [vmem:[#allocation6 + $0x6d8] sm:$0xff] }
 0x269   :  { %4392 = vmatpush1.bf16.msra.mxu1 %v5453_v49  ;;  %4221 = vmatprep.subr.bf16.mxu0 %v5460_v50  ;;  %v5510_v49 = vcombine.high %v904_v0, %v908_v44  ;;  %v911_v50 = vld [vmem:[#allocation6 + $0x590] sm:$0xff]  ;;  %v956_v43 = vld [vmem:[#allocation6 + $0x6f8] sm:$0xff]  ;;  %v5549_v44 = vcombine.low %v944_v33, %v948_v34 }
 0x26a   :  { %4393 = vmatprep.subr.bf16.mxu1 %v5462_v52  ;;  %v915_v52 = vld [vmem:[#allocation6 + $0x5b0] sm:$0xff] }
 0x26c   :  { %4222 = vmatpush1.bf16.msra.mxu0 %v5459_v57  ;;  %v5516_v57 = vcombine.high %v911_v50, %v915_v52 }
 0x26d   :  { %4394 = vmatpush1.bf16.msra.mxu1 %v5461_v58  ;;  %4234 = vmatprep.subr.bf16.mxu0 %v5468_v60  ;;  %v5518_v58 = vcombine.high %v912_v53, %v916_v54  ;;  %v919_v60 = vld [vmem:[#allocation6 + $0x5d0] sm:$0xff]  ;;  %v5557_v54 = vcombine.low %v952_v41, %v956_v43 }
 0x26e   :  { %4406 = vmatprep.subr.bf16.mxu1 %v5470_v61  ;;  %v923_v61 = vld [vmem:[#allocation6 + $0x5f0] sm:$0xff] }
 0x26f   :  { %4224 = vmatmul.mubr.bf16.vlgmr.msra.gmra.mrb[12].mxu0 %v6460_v40  ;;  %v5524_v6 = vcombine.high %v919_v60, %v923_v61 }
 0x270   :  { %4396 = vmatmul.mubr.bf16.vlgmr.msra.gmra.mrb[12].mxu1 %v6460_v40  ;;  %4235 = vmatpush1.bf16.msra.mxu0 %v5467_v2  ;;  %v5485_v40 = vcombine.low %v880_v12, %v884_v17  ;;  %v5515_v2 = vcombine.low %v911_v50, %v915_v52  ;;  %v5523_v12 = vcombine.low %v919_v60, %v923_v61  ;;  %v960_v50 = vld [vmem:[#allocation6 + $0x718] sm:$0xff] }
 0x271   :  { %4266 = vmatprep.mubr.bf16.mxu0 %v6470_v3  ;;  %4407 = vmatpush1.bf16.msra.mxu1 %v5469_v7  ;;  %v5526_v7 = vcombine.high %v920_v63, %v924_v1  ;;  %v5525_v17 = vcombine.low %v920_v63, %v924_v1  ;;  %v964_v52 = vld [vmem:[#allocation6 + $0x738] sm:$0xff] }
 0x272   :  { %4438 = vmatprep.mubr.bf16.mxu1 %v6470_v3  ;;  %4236 = vmatprep.subr.bf16.mxu0 %v5476_v8  ;;  %v5491_v3 = vcombine.low %v887_v24, %v891_v25  ;;  %v927_v8 = vld [vmem:[#allocation6 + $0x610] sm:$0xff]  ;;  %v936_v24 = vld [vmem:[#allocation6 + $0x658] sm:$0xff]  ;;  %v5565_v1 = vcombine.low %v960_v50, %v964_v52 }
 0x273   :  { %4408 = vmatprep.subr.bf16.mxu1 %v5478_v11  ;;  %v932_v11 = vld [vmem:[#allocation6 + $0x638] sm:$0xff]  ;;  %v5531_v26 = vcombine.low %v927_v8, %v931_v9 }
 0x274   :  { %4237 = vmatpush1.bf16.msra.mxu0 %v5475_v18  ;;  %v5532_v18 = vcombine.high %v927_v8, %v931_v9  ;;  %v940_v25 = vld [vmem:[#allocation6 + $0x678] sm:$0xff]  ;;  %v5533_v28 = vcombine.low %v928_v10, %v932_v11 }
 0x275   :  { %4409 = vmatpush1.bf16.msra.mxu1 %v5477_v20  ;;  %4238 = vmatprep.subr.bf16.mxu0 %v5484_v22  ;;  %v5534_v20 = vcombine.high %v928_v10, %v932_v11  ;;  %v935_v22 = vld [vmem:[#allocation6 + $0x650] sm:$0xff]  ;;  %v5541_v37 = vcombine.low %v936_v24, %v940_v25  ;;  %v968_v60 = vld [vmem:[#allocation6 + $0x758] sm:$0xff] }
 0x276   :  { %4410 = vmatprep.subr.bf16.mxu1 %v5486_v23  ;;  %v939_v23 = vld [vmem:[#allocation6 + $0x670] sm:$0xff]  ;;  %v972_v61 = vld [vmem:[#allocation6 + $0x778] sm:$0xff] }
 0x277   :  { %v5539_v35 = vcombine.low %v935_v22, %v939_v23  ;;  %v976_v8 = vld [vmem:[#allocation6 + $0x798] sm:$0xff]  ;;  %v5573_v11 = vcombine.low %v968_v60, %v972_v61 }
 0x278   :  { %4239 = vmatpush1.bf16.msra.mxu0 %v5483_v29  ;;  %v5540_v29 = vcombine.high %v935_v22, %v939_v23  ;;  %v980_v9 = vld [vmem:[#allocation6 + $0x7b8] sm:$0xff] }
 0x279   :  { %4411 = vmatpush1.bf16.msra.mxu1 %v5485_v40  ;;  %4240 = vmatprep.subr.bf16.mxu0 %v5492_v30  ;;  %v5542_v40 = vcombine.high %v936_v24, %v940_v25  ;;  %v943_v30 = vld [vmem:[#allocation6 + $0x690] sm:$0xff]  ;;  %v984_v22 = vld [vmem:[#allocation6 + $0x7d8] sm:$0xff]  ;;  %v5581_v25 = vcombine.low %v976_v8, %v980_v9 }
 0x27a   :  { %4412 = vmatprep.subr.bf16.mxu1 %v5494_v31  ;;  %v947_v31 = vld [vmem:[#allocation6 + $0x6b0] sm:$0xff]  ;;  %v988_v23 = vld [vmem:[#allocation6 + $0x7f8] sm:$0xff] }
 0x27b   :  { %v5547_v0 = vcombine.low %v943_v30, %v947_v31 }
 0x27c   :  { %4241 = vmatpush1.bf16.msra.mxu0 %v5491_v3  ;;  %v5548_v3 = vcombine.high %v943_v30, %v947_v31  ;;  %v992_v30 = vld [vmem:[#allocation6 + $0x818] sm:$0xff] }
 0x27d   :  { %4413 = vmatpush1.bf16.msra.mxu1 %v5493_v38  ;;  %4242 = vmatprep.subr.bf16.mxu0 %v5500_v39  ;;  %v5550_v38 = vcombine.high %v944_v33, %v948_v34  ;;  %v951_v39 = vld [vmem:[#allocation6 + $0x6d0] sm:$0xff]  ;;  %v996_v31 = vld [vmem:[#allocation6 + $0x838] sm:$0xff]  ;;  %v5589_v34 = vcombine.low %v984_v22, %v988_v23 }
 0x27e   :  { %4414 = vmatprep.subr.bf16.mxu1 %v5502_v5  ;;  %v955_v5 = vld [vmem:[#allocation6 + $0x6f0] sm:$0xff] }
 0x27f   :  { %v5555_v53 = vcombine.low %v951_v39, %v955_v5 }
 0x280   :  { %4243 = vmatpush1.bf16.msra.mxu0 %v5499_v45  ;;  %v5556_v45 = vcombine.high %v951_v39, %v955_v5  ;;  %v1000_v5 = vld [vmem:[#allocation6 + $0x858] sm:$0xff] }
 0x281   :  { %4415 = vmatpush1.bf16.msra.mxu1 %v5501_v46  ;;  %4244 = vmatprep.subr.bf16.mxu0 %v5508_v48  ;;  %v5558_v46 = vcombine.high %v952_v41, %v956_v43  ;;  %v959_v48 = vld [vmem:[#allocation6 + $0x710] sm:$0xff]  ;;  %v1004_v41 = vld [vmem:[#allocation6 + $0x878] sm:$0xff]  ;;  %v5597_v43 = vcombine.low %v992_v30, %v996_v31 }
 0x282   :  { %4416 = vmatprep.subr.bf16.mxu1 %v5510_v49  ;;  %v963_v49 = vld [vmem:[#allocation6 + $0x730] sm:$0xff] }
 0x283   :  { %v5563_v63 = vcombine.low %v959_v48, %v963_v49 }
 0x284   :  { %4245 = vmatpush1.bf16.msra.mxu0 %v5507_v42  ;;  %v5564_v42 = vcombine.high %v959_v48, %v963_v49  ;;  %v1008_v48 = vld [vmem:[#allocation6 + $0x898] sm:$0xff] }
 0x285   :  { %4417 = vmatpush1.bf16.msra.mxu1 %v5509_v56  ;;  %4246 = vmatprep.subr.bf16.mxu0 %v5516_v57  ;;  %v5566_v56 = vcombine.high %v960_v50, %v964_v52  ;;  %v967_v57 = vld [vmem:[#allocation6 + $0x750] sm:$0xff]  ;;  %v1012_v49 = vld [vmem:[#allocation6 + $0x8b8] sm:$0xff]  ;;  %v5605_v52 = vcombine.low %v1000_v5, %v1004_v41 }
 0x286   :  { %4418 = vmatprep.subr.bf16.mxu1 %v5518_v58  ;;  %v971_v58 = vld [vmem:[#allocation6 + $0x770] sm:$0xff] }
 0x287   :  { %v5571_v10 = vcombine.low %v967_v57, %v971_v58 }
 0x288   :  { %4247 = vmatpush1.bf16.msra.mxu0 %v5515_v2  ;;  %v5572_v2 = vcombine.high %v967_v57, %v971_v58  ;;  %v1016_v57 = vld [vmem:[#allocation6 + $0x8d8] sm:$0xff] }
 0x289   :  { %4419 = vmatpush1.bf16.msra.mxu1 %v5517_v4  ;;  %4248 = vmatprep.subr.bf16.mxu0 %v5524_v6  ;;  %v5574_v4 = vcombine.high %v968_v60, %v972_v61  ;;  %v975_v6 = vld [vmem:[#allocation6 + $0x790] sm:$0xff]  ;;  %v1020_v58 = vld [vmem:[#allocation6 + $0x8f8] sm:$0xff] }
 0x28a   :  { %4420 = vmatprep.subr.bf16.mxu1 %v5526_v7  ;;  %v979_v7 = vld [vmem:[#allocation6 + $0x7b0] sm:$0xff] }
 0x28b   :  { %v5579_v24 = vcombine.low %v975_v6, %v979_v7 }
 0x28c   :  { %4249 = vmatpush1.bf16.msra.mxu0 %v5523_v12  ;;  %v5580_v12 = vcombine.high %v975_v6, %v979_v7  ;;  %v1028_v6 = vld [vmem:[#allocation6 + $0x938] sm:$0xff]  ;;  %v5621_v7 = vcombine.low %v1016_v57, %v1020_v58 }
 0x28d   :  { %4421 = vmatpush1.bf16.msra.mxu1 %v5525_v17  ;;  %4250 = vmatprep.subr.bf16.mxu0 %v5532_v18  ;;  %v5582_v17 = vcombine.high %v976_v8, %v980_v9  ;;  %v983_v18 = vld [vmem:[#allocation6 + $0x7d0] sm:$0xff] }
 0x28e   :  { %4422 = vmatprep.subr.bf16.mxu1 %v5534_v20  ;;  %v987_v20 = vld [vmem:[#allocation6 + $0x7f0] sm:$0xff] }
 0x28f   :  { %v5587_v33 = vcombine.low %v983_v18, %v987_v20 }
 0x290   :  { %4251 = vmatpush1.bf16.msra.mxu0 %v5531_v26  ;;  %v5588_v26 = vcombine.high %v983_v18, %v987_v20 }
 0x291   :  { %4423 = vmatpush1.bf16.msra.mxu1 %v5533_v28  ;;  %4252 = vmatprep.subr.bf16.mxu0 %v5540_v29  ;;  %v5590_v28 = vcombine.high %v984_v22, %v988_v23  ;;  %v991_v29 = vld [vmem:[#allocation6 + $0x810] sm:$0xff] }
 0x292   :  { %4424 = vmatprep.subr.bf16.mxu1 %v5542_v40  ;;  %v995_v40 = vld [vmem:[#allocation6 + $0x830] sm:$0xff] }
 0x293   :  { %v5595_v39 = vcombine.low %v991_v29, %v995_v40 }
 0x294   :  { %4253 = vmatpush1.bf16.msra.mxu0 %v5539_v35  ;;  %v5596_v35 = vcombine.high %v991_v29, %v995_v40 }
 0x295   :  { %4425 = vmatpush1.bf16.msra.mxu1 %v5541_v37  ;;  %4254 = vmatprep.subr.bf16.mxu0 %v5548_v3  ;;  %v5598_v37 = vcombine.high %v992_v30, %v996_v31  ;;  %v999_v3 = vld [vmem:[#allocation6 + $0x850] sm:$0xff] }
 0x296   :  { %4426 = vmatprep.subr.bf16.mxu1 %v5550_v38  ;;  %v1003_v38 = vld [vmem:[#allocation6 + $0x870] sm:$0xff] }
 0x297   :  { %v5603_v50 = vcombine.low %v999_v3, %v1003_v38 }
 0x298   :  { %4255 = vmatpush1.bf16.msra.mxu0 %v5547_v0  ;;  %v5604_v0 = vcombine.high %v999_v3, %v1003_v38 }
 0x299   :  { %4427 = vmatpush1.bf16.msra.mxu1 %v5549_v44  ;;  %4256 = vmatprep.subr.bf16.mxu0 %v5556_v45  ;;  %v1007_v44 = vld [vmem:[#allocation6 + $0x890] sm:$0xff] }
 0x29a   :  { %4428 = vmatprep.subr.bf16.mxu1 %v5558_v46  ;;  %v1011_v45 = vld [vmem:[#allocation6 + $0x8b0] sm:$0xff]  ;;  %v5606_v46 = vcombine.high %v1000_v5, %v1004_v41 }
 0x29b   :  { %v5611_v60 = vcombine.low %v1007_v44, %v1011_v45  ;;  %v1055_v41 = vld [vmem:[#allocation6 + $0xa10] sm:$0xff] }
 0x29c   :  { %4257 = vmatpush1.bf16.msra.mxu0 %v5555_v53  ;;  %v5612_v53 = vcombine.high %v1007_v44, %v1011_v45  ;;  %v1060_v44 = vld [vmem:[#allocation6 + $0xa38] sm:$0xff] }
 0x29d   :  { %4429 = vmatpush1.bf16.msra.mxu1 %v5557_v54  ;;  %4258 = vmatprep.subr.bf16.mxu0 %v5564_v42  ;;  %v5614_v54 = vcombine.high %v1008_v48, %v1012_v49  ;;  %v1015_v42 = vld [vmem:[#allocation6 + $0x8d0] sm:$0xff] }
 0x29e   :  { %4430 = vmatprep.subr.bf16.mxu1 %v5566_v56  ;;  %v1019_v56 = vld [vmem:[#allocation6 + $0x8f0] sm:$0xff] }
 0x29f   :  { %v5620_v61 = vcombine.high %v1015_v42, %v1019_v56 }
 0x2a0   :  { %4259 = vmatpush1.bf16.msra.mxu0 %v5563_v63  ;;  %v5622_v63 = vcombine.high %v1016_v57, %v1020_v58 }
 0x2a1   :  { %4431 = vmatpush1.bf16.msra.mxu1 %v5565_v1  ;;  %4260 = vmatprep.subr.bf16.mxu0 %v5572_v2  ;;  %v1023_v1 = vld [vmem:[#allocation6 + $0x910] sm:$0xff] }
 0x2a2   :  { %4432 = vmatprep.subr.bf16.mxu1 %v5574_v4  ;;  %v1027_v2 = vld [vmem:[#allocation6 + $0x930] sm:$0xff]  ;;  %v1024_v4 = vld [vmem:[#allocation6 + $0x918] sm:$0xff] }
 0x2a3   :  { %v5628_v8 = vcombine.high %v1023_v1, %v1027_v2  ;;  %v5630_v9 = vcombine.high %v1024_v4, %v1028_v6  ;;  %v5627_v18 = vcombine.low %v1023_v1, %v1027_v2  ;;  %v5629_v20 = vcombine.low %v1024_v4, %v1028_v6 }
 0x2a4   :  { %4261 = vmatpush1.bf16.msra.mxu0 %v5571_v10  ;;  %v1031_v10 = vld [vmem:[#allocation6 + $0x950] sm:$0xff] }
 0x2a5   :  { %4433 = vmatpush1.bf16.msra.mxu1 %v5573_v11  ;;  %4262 = vmatprep.subr.bf16.mxu0 %v5580_v12  ;;  %v1035_v11 = vld [vmem:[#allocation6 + $0x970] sm:$0xff]  ;;  %v1032_v12 = vld [vmem:[#allocation6 + $0x958] sm:$0xff] }
 0x2a6   :  { %4434 = vmatprep.subr.bf16.mxu1 %v5582_v17  ;;  %v1036_v17 = vld [vmem:[#allocation6 + $0x978] sm:$0xff]  ;;  %v5636_v22 = vcombine.high %v1031_v10, %v1035_v11  ;;  %v5635_v29 = vcombine.low %v1031_v10, %v1035_v11 }
 0x2a7   :  { %v5638_v23 = vcombine.high %v1032_v12, %v1036_v17  ;;  %v5637_v40 = vcombine.low %v1032_v12, %v1036_v17 }
 0x2a8   :  { %4263 = vmatpush1.bf16.msra.mxu0 %v5579_v24  ;;  %v1039_v24 = vld [vmem:[#allocation6 + $0x990] sm:$0xff] }
 0x2a9   :  { %4435 = vmatpush1.bf16.msra.mxu1 %v5581_v25  ;;  %4264 = vmatprep.subr.bf16.mxu0 %v5588_v26  ;;  %v1043_v25 = vld [vmem:[#allocation6 + $0x9b0] sm:$0xff]  ;;  %v1040_v26 = vld [vmem:[#allocation6 + $0x998] sm:$0xff] }
 0x2aa   :  { %4436 = vmatprep.subr.bf16.mxu1 %v5590_v28  ;;  %v1044_v28 = vld [vmem:[#allocation6 + $0x9b8] sm:$0xff]  ;;  %v5644_v30 = vcombine.high %v1039_v24, %v1043_v25  ;;  %v5643_v3 = vcombine.low %v1039_v24, %v1043_v25 }
 0x2ab   :  { %v5646_v31 = vcombine.high %v1040_v26, %v1044_v28  ;;  %v5645_v38 = vcombine.low %v1040_v26, %v1044_v28 }
 0x2ac   :  { %4265 = vmatpush1.bf16.msra.mxu0 %v5587_v33  ;;  %v1047_v33 = vld [vmem:[#allocation6 + $0x9d0] sm:$0xff] }
 0x2ad   :  { %4437 = vmatpush1.bf16.msra.mxu1 %v5589_v34  ;;  %4277 = vmatprep.subr.bf16.mxu0 %v5596_v35  ;;  %v1051_v34 = vld [vmem:[#allocation6 + $0x9f0] sm:$0xff]  ;;  %v1048_v35 = vld [vmem:[#allocation6 + $0x9d8] sm:$0xff] }
 0x2ae   :  { %4449 = vmatprep.subr.bf16.mxu1 %v5598_v37  ;;  %v1052_v37 = vld [vmem:[#allocation6 + $0x9f8] sm:$0xff]  ;;  %v5651_v45 = vcombine.low %v1047_v33, %v1051_v34 }
 0x2af   :  { %4267 = vmatmul.mubr.bf16.vlgmr.msra.gmra.mrb[12].mxu0 %v6468_v62  ;;  %v5654_v5 = vcombine.high %v1048_v35, %v1052_v37 }
 0x2b0   :  { %4439 = vmatmul.mubr.bf16.vlgmr.msra.gmra.mrb[12].mxu1 %v6468_v62  ;;  %4278 = vmatpush1.bf16.msra.mxu0 %v5595_v39  ;;  %v5613_v62 = vcombine.low %v1008_v48, %v1012_v49  ;;  %v5652_v39 = vcombine.high %v1047_v33, %v1051_v34 }
 0x2b1   :  { %4309 = vmatprep.mubr.bf16.mxu0 %v6492_v15  ;;  %4450 = vmatpush1.bf16.msra.mxu1 %v5597_v43  ;;  %v1059_v43 = vld [vmem:[#allocation6 + $0xa30] sm:$0xff] }
 0x2b2   :  { %4481 = vmatprep.mubr.bf16.mxu1 %v6492_v15  ;;  %4279 = vmatprep.subr.bf16.mxu0 %v5604_v0  ;;  %v5619_v15 = vcombine.low %v1015_v42, %v1019_v56  ;;  %v1056_v0 = vld [vmem:[#allocation6 + $0xa18] sm:$0xff]  ;;  %v5660_v48 = vcombine.high %v1055_v41, %v1059_v43  ;;  %v5659_v42 = vcombine.low %v1055_v41, %v1059_v43 }
 0x2b3   :  { %4451 = vmatprep.subr.bf16.mxu1 %v5606_v46  ;;  %v5653_v46 = vcombine.low %v1048_v35, %v1052_v37  ;;  %v5662_v49 = vcombine.high %v1056_v0, %v1060_v44  ;;  %v5661_v56 = vcombine.low %v1056_v0, %v1060_v44 }
 0x2b4   :  { %4280 = vmatpush1.bf16.msra.mxu0 %v5603_v50  ;;  %v1063_v50 = vld [vmem:[#allocation6 + $0xa50] sm:$0xff] }
 0x2b5   :  { %4452 = vmatpush1.bf16.msra.mxu1 %v5605_v52  ;;  %4281 = vmatprep.subr.bf16.mxu0 %v5612_v53  ;;  %v1067_v52 = vld [vmem:[#allocation6 + $0xa70] sm:$0xff]  ;;  %v1064_v53 = vld [vmem:[#allocation6 + $0xa58] sm:$0xff] }
 0x2b6   :  { %4453 = vmatprep.subr.bf16.mxu1 %v5614_v54  ;;  %v1068_v54 = vld [vmem:[#allocation6 + $0xa78] sm:$0xff]  ;;  %v5668_v57 = vcombine.high %v1063_v50, %v1067_v52  ;;  %v5667_v1 = vcombine.low %v1063_v50, %v1067_v52 }
 0x2b7   :  { %v5670_v58 = vcombine.high %v1064_v53, %v1068_v54  ;;  %v5669_v2 = vcombine.low %v1064_v53, %v1068_v54 }
 0x2b8   :  { %4282 = vmatpush1.bf16.msra.mxu0 %v5611_v60  ;;  %v1071_v60 = vld [vmem:[#allocation6 + $0xa90] sm:$0xff] }
 0x2b9   :  { %4454 = vmatpush1.bf16.msra.mxu1 %v5613_v62  ;;  %4283 = vmatprep.subr.bf16.mxu0 %v5620_v61  ;;  %v1075_v62 = vld [vmem:[#allocation6 + $0xab0] sm:$0xff]  ;;  %v1072_v61 = vld [vmem:[#allocation6 + $0xa98] sm:$0xff] }
 0x2ba   :  { %4455 = vmatprep.subr.bf16.mxu1 %v5622_v63  ;;  %v1076_v63 = vld [vmem:[#allocation6 + $0xab8] sm:$0xff]  ;;  %v5676_v4 = vcombine.high %v1071_v60, %v1075_v62  ;;  %v5675_v10 = vcombine.low %v1071_v60, %v1075_v62 }
 0x2bb   :  { %v5678_v6 = vcombine.high %v1072_v61, %v1076_v63  ;;  %v5677_v11 = vcombine.low %v1072_v61, %v1076_v63 }
 0x2bc   :  { %4284 = vmatpush1.bf16.msra.mxu0 %v5619_v15  ;;  %v1079_v15 = vld [vmem:[#allocation6 + $0xad0] sm:$0xff] }
 0x2bd   :  { %4456 = vmatpush1.bf16.msra.mxu1 %v5621_v7  ;;  %4285 = vmatprep.subr.bf16.mxu0 %v5628_v8  ;;  %v1083_v7 = vld [vmem:[#allocation6 + $0xaf0] sm:$0xff]  ;;  %v1080_v8 = vld [vmem:[#allocation6 + $0xad8] sm:$0xff] }
 0x2be   :  { %4457 = vmatprep.subr.bf16.mxu1 %v5630_v9  ;;  %v1084_v9 = vld [vmem:[#allocation6 + $0xaf8] sm:$0xff]  ;;  %v5684_v12 = vcombine.high %v1079_v15, %v1083_v7  ;;  %v5683_v24 = vcombine.low %v1079_v15, %v1083_v7 }
 0x2bf   :  { %v5686_v17 = vcombine.high %v1080_v8, %v1084_v9  ;;  %v5685_v25 = vcombine.low %v1080_v8, %v1084_v9  ;;  %v1132_v15 = vld [vmem:[#allocation6 + $0xc78] sm:$0xff]  ;;  %v1135_v9 = vld [vmem:[#allocation6 + $0xc90] sm:$0xff] }
 0x2c0   :  { %4286 = vmatpush1.bf16.msra.mxu0 %v5627_v18  ;;  %v1087_v18 = vld [vmem:[#allocation6 + $0xb10] sm:$0xff] }
 0x2c1   :  { %4458 = vmatpush1.bf16.msra.mxu1 %v5629_v20  ;;  %4287 = vmatprep.subr.bf16.mxu0 %v5636_v22  ;;  %v1091_v20 = vld [vmem:[#allocation6 + $0xb30] sm:$0xff]  ;;  %v1088_v22 = vld [vmem:[#allocation6 + $0xb18] sm:$0xff] }
 0x2c2   :  { %4459 = vmatprep.subr.bf16.mxu1 %v5638_v23  ;;  %v1092_v23 = vld [vmem:[#allocation6 + $0xb38] sm:$0xff]  ;;  %v5692_v26 = vcombine.high %v1087_v18, %v1091_v20  ;;  %v5691_v33 = vcombine.low %v1087_v18, %v1091_v20 }
 0x2c3   :  { %v5694_v28 = vcombine.high %v1088_v22, %v1092_v23  ;;  %v5693_v34 = vcombine.low %v1088_v22, %v1092_v23 }
 0x2c4   :  { %4288 = vmatpush1.bf16.msra.mxu0 %v5635_v29  ;;  %v1095_v29 = vld [vmem:[#allocation6 + $0xb50] sm:$0xff] }
 0x2c5   :  { %4460 = vmatpush1.bf16.msra.mxu1 %v5637_v40  ;;  %4289 = vmatprep.subr.bf16.mxu0 %v5644_v30  ;;  %v1099_v40 = vld [vmem:[#allocation6 + $0xb70] sm:$0xff]  ;;  %v1096_v30 = vld [vmem:[#allocation6 + $0xb58] sm:$0xff] }
 0x2c6   :  { %4461 = vmatprep.subr.bf16.mxu1 %v5646_v31  ;;  %v1100_v31 = vld [vmem:[#allocation6 + $0xb78] sm:$0xff]  ;;  %v5700_v35 = vcombine.high %v1095_v29, %v1099_v40  ;;  %v5699_v41 = vcombine.low %v1095_v29, %v1099_v40 }
 0x2c7   :  { %v5702_v37 = vcombine.high %v1096_v30, %v1100_v31  ;;  %v5701_v43 = vcombine.low %v1096_v30, %v1100_v31  ;;  %v1151_v31 = vld [vmem:[#allocation6 + $0xd10] sm:$0xff] }
 0x2c8   :  { %4290 = vmatpush1.bf16.msra.mxu0 %v5643_v3  ;;  %v1103_v3 = vld [vmem:[#allocation6 + $0xb90] sm:$0xff] }
 0x2c9   :  { %4462 = vmatpush1.bf16.msra.mxu1 %v5645_v38  ;;  %4291 = vmatprep.subr.bf16.mxu0 %v5652_v39  ;;  %v1107_v38 = vld [vmem:[#allocation6 + $0xbb0] sm:$0xff]  ;;  %v1104_v39 = vld [vmem:[#allocation6 + $0xb98] sm:$0xff] }
 0x2ca   :  { %4463 = vmatprep.subr.bf16.mxu1 %v5654_v5  ;;  %v1108_v5 = vld [vmem:[#allocation6 + $0xbb8] sm:$0xff]  ;;  %v5708_v0 = vcombine.high %v1103_v3, %v1107_v38  ;;  %v5707_v50 = vcombine.low %v1103_v3, %v1107_v38 }
 0x2cb   :  { %v5710_v44 = vcombine.high %v1104_v39, %v1108_v5  ;;  %v5709_v52 = vcombine.low %v1104_v39, %v1108_v5  ;;  %v1159_v39 = vld [vmem:[#allocation6 + $0xd50] sm:$0xff] }
 0x2cc   :  { %4292 = vmatpush1.bf16.msra.mxu0 %v5651_v45  ;;  %v1111_v45 = vld [vmem:[#allocation6 + $0xbd0] sm:$0xff] }
 0x2cd   :  { %4464 = vmatpush1.bf16.msra.mxu1 %v5653_v46  ;;  %4293 = vmatprep.subr.bf16.mxu0 %v5660_v48  ;;  %v1115_v46 = vld [vmem:[#allocation6 + $0xbf0] sm:$0xff]  ;;  %v1112_v48 = vld [vmem:[#allocation6 + $0xbd8] sm:$0xff] }
 0x2ce   :  { %4465 = vmatprep.subr.bf16.mxu1 %v5662_v49  ;;  %v1116_v49 = vld [vmem:[#allocation6 + $0xbf8] sm:$0xff]  ;;  %v5716_v53 = vcombine.high %v1111_v45, %v1115_v46  ;;  %v5715_v60 = vcombine.low %v1111_v45, %v1115_v46  ;;  %v1163_v5 = vld [vmem:[#allocation6 + $0xd70] sm:$0xff] }
 0x2cf   :  { %v5718_v54 = vcombine.high %v1112_v48, %v1116_v49  ;;  %v5717_v62 = vcombine.low %v1112_v48, %v1116_v49  ;;  %v5764_v46 = vcombine.high %v1159_v39, %v1163_v5  ;;  %v1167_v49 = vld [vmem:[#allocation6 + $0xd90] sm:$0xff] }
 0x2d0   :  { %4294 = vmatpush1.bf16.msra.mxu0 %v5659_v42  ;;  %v1119_v42 = vld [vmem:[#allocation6 + $0xc10] sm:$0xff] }
 0x2d1   :  { %4466 = vmatpush1.bf16.msra.mxu1 %v5661_v56  ;;  %4295 = vmatprep.subr.bf16.mxu0 %v5668_v57  ;;  %v1123_v56 = vld [vmem:[#allocation6 + $0xc30] sm:$0xff]  ;;  %v1120_v57 = vld [vmem:[#allocation6 + $0xc18] sm:$0xff] }
 0x2d2   :  { %4467 = vmatprep.subr.bf16.mxu1 %v5670_v58  ;;  %v1124_v58 = vld [vmem:[#allocation6 + $0xc38] sm:$0xff]  ;;  %v5724_v61 = vcombine.high %v1119_v42, %v1123_v56 }
 0x2d3   :  { %v5726_v63 = vcombine.high %v1120_v57, %v1124_v58  ;;  %v5725_v7 = vcombine.low %v1120_v57, %v1124_v58  ;;  %v5763_v58 = vcombine.low %v1159_v39, %v1163_v5 }
 0x2d4   :  { %4296 = vmatpush1.bf16.msra.mxu0 %v5667_v1  ;;  %v1127_v1 = vld [vmem:[#allocation6 + $0xc50] sm:$0xff] }
 0x2d5   :  { %4468 = vmatpush1.bf16.msra.mxu1 %v5669_v2  ;;  %4297 = vmatprep.subr.bf16.mxu0 %v5676_v4  ;;  %v1131_v2 = vld [vmem:[#allocation6 + $0xc70] sm:$0xff]  ;;  %v5723_v4 = vcombine.low %v1119_v42, %v1123_v56  ;;  %v1172_v42 = vld [vmem:[#allocation6 + $0xdb8] sm:$0xff] }
 0x2d6   :  { %4469 = vmatprep.subr.bf16.mxu1 %v5678_v6  ;;  %v1128_v6 = vld [vmem:[#allocation6 + $0xc58] sm:$0xff]  ;;  %v5732_v8 = vcombine.high %v1127_v1, %v1131_v2  ;;  %v5731_v18 = vcombine.low %v1127_v1, %v1131_v2 }
 0x2d7   :  { %v5733_v20 = vcombine.low %v1128_v6, %v1132_v15 }
 0x2d8   :  { %4298 = vmatpush1.bf16.msra.mxu0 %v5675_v10  ;;  %v1139_v10 = vld [vmem:[#allocation6 + $0xcb0] sm:$0xff] }
 0x2d9   :  { %4470 = vmatpush1.bf16.msra.mxu1 %v5677_v11  ;;  %4299 = vmatprep.subr.bf16.mxu0 %v5684_v12  ;;  %v5734_v11 = vcombine.high %v1128_v6, %v1132_v15  ;;  %v1136_v12 = vld [vmem:[#allocation6 + $0xc98] sm:$0xff]  ;;  %v5740_v22 = vcombine.high %v1135_v9, %v1139_v10  ;;  %v5739_v29 = vcombine.low %v1135_v9, %v1139_v10 }
 0x2da   :  { %4471 = vmatprep.subr.bf16.mxu1 %v5686_v17  ;;  %v1140_v17 = vld [vmem:[#allocation6 + $0xcb8] sm:$0xff] }
 0x2db   :  { %v5742_v23 = vcombine.high %v1136_v12, %v1140_v17 }
 0x2dc   :  { %4300 = vmatpush1.bf16.msra.mxu0 %v5683_v24  ;;  %v1143_v24 = vld [vmem:[#allocation6 + $0xcd0] sm:$0xff] }
 0x2dd   :  { %4472 = vmatpush1.bf16.msra.mxu1 %v5685_v25  ;;  %4301 = vmatprep.subr.bf16.mxu0 %v5692_v26  ;;  %v1147_v25 = vld [vmem:[#allocation6 + $0xcf0] sm:$0xff]  ;;  %v1144_v26 = vld [vmem:[#allocation6 + $0xcd8] sm:$0xff] }
 0x2de   :  { %4473 = vmatprep.subr.bf16.mxu1 %v5694_v28  ;;  %v1148_v28 = vld [vmem:[#allocation6 + $0xcf8] sm:$0xff]  ;;  %v5748_v40 = vcombine.high %v1143_v24, %v1147_v25 }
 0x2df   :  { %v5750_v30 = vcombine.high %v1144_v26, %v1148_v28 }
 0x2e0   :  { %4302 = vmatpush1.bf16.msra.mxu0 %v5691_v33  ;;  %v1155_v33 = vld [vmem:[#allocation6 + $0xd30] sm:$0xff] }
 0x2e1   :  { %4474 = vmatpush1.bf16.msra.mxu1 %v5693_v34  ;;  %4303 = vmatprep.subr.bf16.mxu0 %v5700_v35  ;;  %v1152_v34 = vld [vmem:[#allocation6 + $0xd18] sm:$0xff]  ;;  %v5756_v3 = vcombine.high %v1151_v31, %v1155_v33 }
 0x2e2   :  { %4475 = vmatprep.subr.bf16.mxu1 %v5702_v37  ;;  %v1156_v35 = vld [vmem:[#allocation6 + $0xd38] sm:$0xff]  ;;  %v5749_v37 = vcombine.low %v1144_v26, %v1148_v28 }
 0x2e3   :  { %v5758_v38 = vcombine.high %v1152_v34, %v1156_v35  ;;  %v5757_v45 = vcombine.low %v1152_v34, %v1156_v35  ;;  %v1184_v35 = vld [vmem:[#allocation6 + $0xe18] sm:$0xff] }
 0x2e4   :  { %4304 = vmatpush1.bf16.msra.mxu0 %v5699_v41  ;;  %v1160_v41 = vld [vmem:[#allocation6 + $0xd58] sm:$0xff] }
 0x2e5   :  { %4476 = vmatpush1.bf16.msra.mxu1 %v5701_v43  ;;  %4305 = vmatprep.subr.bf16.mxu0 %v5708_v0  ;;  %v1164_v43 = vld [vmem:[#allocation6 + $0xd78] sm:$0xff]  ;;  %v5755_v0 = vcombine.low %v1151_v31, %v1155_v33 }
 0x2e6   :  { %4477 = vmatprep.subr.bf16.mxu1 %v5710_v44  ;;  %v6522_v44 = vld [vmem:[#allocation7] sm:$0xff]  ;;  %v5766_v48 = vcombine.high %v1160_v41, %v1164_v43 }
 0x2e7   :  { %v1254_v56 = vrot.slane %v6522_v44, %v177_v16  ;;  %v1262_v57 = vrot.slane %v6522_v44, %v185_v21 }
 0x2e8   :  { %4306 = vmatpush1.bf16.msra.mxu0 %v5707_v50  ;;  %v1171_v50 = vld [vmem:[#allocation6 + $0xdb0] sm:$0xff] }
 0x2e9   :  { %4478 = vmatpush1.bf16.msra.mxu1 %v5709_v52  ;;  %4307 = vmatprep.subr.bf16.mxu0 %v5716_v53  ;;  %v1250_v52 = vrot.slane %v6522_v44, %v173_v14  ;;  %v1258_v53 = vrot.slane %v6522_v44, %v181_v19  ;;  %v5772_v14 = vcombine.high %v1167_v49, %v1171_v50 }
 0x2ea   :  { %4479 = vmatprep.subr.bf16.mxu1 %v5718_v54  ;;  %v1168_v54 = vld [vmem:[#allocation6 + $0xd98] sm:$0xff]  ;;  %v5771_v16 = vcombine.low %v1167_v49, %v1171_v50  ;;  %v1195_v49 = vld [vmem:[#allocation6 + $0xe70] sm:$0xff] }
 0x2eb   :  { %v5774_v1 = vcombine.high %v1168_v54, %v1172_v42  ;;  %v1192_v50 = vld [vmem:[#allocation6 + $0xe58] sm:$0xff] }
 0x2ec   :  { %4308 = vmatpush1.bf16.msra.mxu0 %v5715_v60  ;;  %v5765_v60 = vcombine.low %v1160_v41, %v1164_v43 }
 0x2ed   :  { %4480 = vmatpush1.bf16.msra.mxu1 %v5717_v62  ;;  %4320 = vmatprep.subr.bf16.mxu0 %v5724_v61  ;;  %v1175_v62 = vld [vmem:[#allocation6 + $0xdd0] sm:$0xff] }
 0x2ee   :  { %4492 = vmatprep.subr.bf16.mxu1 %v5726_v63  ;;  %v1179_v61 = vld [vmem:[#allocation6 + $0xdf0] sm:$0xff] }
 0x2ef   :  { %4310 = vmatmul.mubr.bf16.vlgmr.msra.gmra.mrb[12].mxu0 %v6490_v27 }
 0x2f0   :  { %4482 = vmatmul.mubr.bf16.vlgmr.msra.gmra.mrb[12].mxu1 %v6490_v27  ;;  %4321 = vmatpush1.bf16.msra.mxu0 %v5723_v4  ;;  %v5741_v27 = vcombine.low %v1136_v12, %v1140_v17  ;;  %v5773_v12 = vcombine.low %v1168_v54, %v1172_v42  ;;  %v5779_v17 = vcombine.low %v1175_v62, %v1179_v61 }
 0x2f1   :  { %4352 = vmatprep.mubr.bf16.mxu0 %v6496_v59  ;;  %4493 = vmatpush1.bf16.msra.mxu1 %v5725_v7  ;;  %v1176_v7 = vld [vmem:[#allocation6 + $0xdd8] sm:$0xff] }
 0x2f2   :  { %4524 = vmatprep.mubr.bf16.mxu1 %v6496_v59  ;;  %4322 = vmatprep.subr.bf16.mxu0 %v5732_v8  ;;  %v5747_v59 = vcombine.low %v1143_v24, %v1147_v25  ;;  %v1180_v8 = vld [vmem:[#allocation6 + $0xdf8] sm:$0xff]  ;;  %v5780_v24 = vcombine.high %v1175_v62, %v1179_v61 }
 0x2f3   :  { %4494 = vmatprep.subr.bf16.mxu1 %v5734_v11  ;;  %v5781_v28 = vcombine.low %v1176_v7, %v1180_v8 }
 0x2f4   :  { %4323 = vmatpush1.bf16.msra.mxu0 %v5731_v18 }
 0x2f5   :  { %4495 = vmatpush1.bf16.msra.mxu1 %v5733_v20  ;;  %4324 = vmatprep.subr.bf16.mxu0 %v5740_v22 }
 0x2f6   :  { %4496 = vmatprep.subr.bf16.mxu1 %v5742_v23 }
 0x2f8   :  { %4325 = vmatpush1.bf16.msra.mxu0 %v5739_v29  ;;  %v5782_v29 = vcombine.high %v1176_v7, %v1180_v8 }
 0x2f9   :  { %4497 = vmatpush1.bf16.msra.mxu1 %v5741_v27  ;;  %4326 = vmatprep.subr.bf16.mxu0 %v5748_v40  ;;  %v1183_v27 = vld [vmem:[#allocation6 + $0xe10] sm:$0xff] }
 0x2fa   :  { %4498 = vmatprep.subr.bf16.mxu1 %v5750_v30  ;;  %v1187_v40 = vld [vmem:[#allocation6 + $0xe30] sm:$0xff] }
 0x2fb   :  { %v5788_v43 = vcombine.high %v1183_v27, %v1187_v40 }
 0x2fc   :  { %4327 = vmatpush1.bf16.msra.mxu0 %v5747_v59  ;;  %v1188_v59 = vld [vmem:[#allocation6 + $0xe38] sm:$0xff] }
 0x2fd   :  { %4499 = vmatpush1.bf16.msra.mxu1 %v5749_v37  ;;  %4328 = vmatprep.subr.bf16.mxu0 %v5756_v3  ;;  %v5789_v54 = vcombine.low %v1184_v35, %v1188_v59 }
 0x2fe   :  { %4500 = vmatprep.subr.bf16.mxu1 %v5758_v38 }
 0x300   :  { %4329 = vmatpush1.bf16.msra.mxu0 %v5755_v0 }
 0x301   :  { %4501 = vmatpush1.bf16.msra.mxu1 %v5757_v45  ;;  %4330 = vmatprep.subr.bf16.mxu0 %v5764_v46  ;;  %v5790_v46 = vcombine.high %v1184_v35, %v1188_v59 }
 0x302   :  { %v4010_v63 = vpop.f32.mrb[8].mxu0  ;;  %v4182_v19 = vpop.f32.mrb[8].mxu1  ;;  %4502 = vmatprep.subr.bf16.mxu1 %v5766_v48  ;;  %v1191_v48 = vld [vmem:[#allocation6 + $0xe50] sm:$0xff] }
 0x303   :  { %v6000_v2 = vadd.f32 %v4010_v63, %v1250_v52  ;;  %v6004_v4 = vadd.f32 %v4182_v19, %v1258_v53  ;;  %v4012_v6 = vpop.f32.mrb[9].mxu0  ;;  %v4184_v15 = vpop.f32.mrb[9].mxu1  ;;  %v5796_v42 = vcombine.high %v1191_v48, %v1195_v49  ;;  %v5795_v62 = vcombine.low %v1191_v48, %v1195_v49 }
 0x304   :  { %v6001_v9 = vadd.f32 %v4012_v6, %v1254_v56  ;;  %v6005_v21 = vadd.f32 %v4184_v15, %v1262_v57  ;;  %v4014_v10 = vpop.f32.mrb[10].mxu0  ;;  %v4186_v11 = vpop.f32.mrb[10].mxu1  ;;  %4331 = vmatpush1.bf16.msra.mxu0 %v5763_v58  ;;  %v1203_v58 = vld [vmem:[#allocation6 + $0xeb0] sm:$0xff]  ;;  %v1212_v6 = vld [vmem:[#allocation6 + $0xef8] sm:$0xff] }
 0x305   :  { %v6002_v18 = vadd.f32 %v4014_v10, %v1250_v52  ;;  %v6006_v20 = vadd.f32 %v4186_v11, %v1258_v53  ;;  %4503 = vmatpush1.bf16.msra.mxu1 %v5765_v60  ;;  %v4016_v22 = vpop.f32.mrb[11].mxu0  ;;  %v4188_v23 = vpop.f32.mrb[11].mxu1  ;;  %4332 = vmatprep.subr.bf16.mxu0 %v5772_v14  ;;  %v4535_v30 = vmax.f32 %v6000_v2, 0.0  ;;  %v4537_v31 = vmax.f32 %v6004_v4, 0.0  ;;  %v1196_v52 = vld [vmem:[#allocation6 + $0xe78] sm:$0xff]  ;;  %v1211_v2 = vld [vmem:[#allocation6 + $0xef0] sm:$0xff] }
 0x306   :  { %v6003_v25 = vadd.f32 %v4016_v22, %v1254_v56  ;;  %v6007_v26 = vadd.f32 %v4188_v23, %v1262_v57  ;;  %4504 = vmatprep.subr.bf16.mxu1 %v5774_v1  ;;  %v4536_v37 = vmax.f32 %v6001_v9, 0.0  ;;  %v4538_v3 = vmax.f32 %v6005_v21, 0.0  ;;  %v1199_v57 = vld [vmem:[#allocation6 + $0xe90] sm:$0xff]  ;;  %v1200_v60 = vld [vmem:[#allocation6 + $0xe98] sm:$0xff] }
 0x307   :  { %v4543_v33 = vmax.f32 %v6002_v18, 0.0  ;;  %v4545_v34 = vmax.f32 %v6006_v20, 0.0  ;;  %v5787_v53 = vcombine.low %v1183_v27, %v1187_v40  ;;  %v5798_v56 = vcombine.high %v1192_v50, %v1196_v52  ;;  %v1204_v14 = vld [vmem:[#allocation6 + $0xeb8] sm:$0xff]  ;;  %v1207_v1 = vld [vmem:[#allocation6 + $0xed0] sm:$0xff] }
 0x308   :  { %v4544_v38 = vmax.f32 %v6003_v25, 0.0  ;;  %v4546_v39 = vmax.f32 %v6007_v26, 0.0  ;;  %4333 = vmatpush1.bf16.msra.mxu0 %v5771_v16  ;;  %v5797_v61 = vcombine.low %v1192_v50, %v1196_v52  ;;  %v5804_v63 = vcombine.high %v1199_v57, %v1203_v58  ;;  %v1208_v4 = vld [vmem:[#allocation6 + $0xed8] sm:$0xff]  ;;  %v1215_v9 = vld [vmem:[#allocation6 + $0xf10] sm:$0xff] }
 0x309   :  { %v6536_v5 = vpack.c.bf16 %v4543_v33, %v4535_v30  ;;  %v6538_v41 = vpack.c.bf16 %v4545_v34, %v4537_v31  ;;  %4505 = vmatpush1.bf16.msra.mxu1 %v5773_v12  ;;  %4334 = vmatprep.subr.bf16.mxu0 %v5780_v24  ;;  %v5806_v19 = vcombine.high %v1200_v60, %v1204_v14  ;;  %v1219_v21 = vld [vmem:[#allocation6 + $0xf30] sm:$0xff]  ;;  %v1216_v10 = vld [vmem:[#allocation6 + $0xf18] sm:$0xff] }
 0x30a   :  { %v6540_v0 = vpack.c.bf16 %v4544_v38, %v4536_v37  ;;  %v6542_v45 = vpack.c.bf16 %v4546_v39, %v4538_v3  ;;  %4506 = vmatprep.subr.bf16.mxu1 %v5782_v29  ;;  %v5803_v15 = vcombine.low %v1199_v57, %v1203_v58  ;;  %v5805_v16 = vcombine.low %v1200_v60, %v1204_v14  ;;  %v1220_v11 = vld [vmem:[#allocation6 + $0xf38] sm:$0xff]  ;;  %v1223_v22 = vld [vmem:[#allocation6 + $0xf50] sm:$0xff]  ;;  %v6079_v57 = vld [vmem:[#allocation9 + $0x80] sm:$0xff]  }
 0x30b   :  { %v5812_v7 = vcombine.high %v1207_v1, %v1211_v2  ;;  %v5814_v8 = vcombine.high %v1208_v4, %v1212_v6  ;;  %v5811_v12 = vcombine.low %v1207_v1, %v1211_v2  ;;  %v5820_v18 = vcombine.high %v1215_v9, %v1219_v21  ;;  %v1227_v23 = vld [vmem:[#allocation6 + $0xf70] sm:$0xff]  ;;  %v1224_v24 = vld [vmem:[#allocation6 + $0xf58] sm:$0xff]  ;;  %v6088_v2 = vld [vmem:[#allocation9 + $0x58] sm:$0xff]  }
 0x30c   :  { %4335 = vmatpush1.bf16.msra.mxu0 %v5779_v17  ;;  %v5813_v17 = vcombine.low %v1208_v4, %v1212_v6  ;;  %v5822_v20 = vcombine.high %v1216_v10, %v1220_v11  ;;  %v1228_v25 = vld [vmem:[#allocation6 + $0xf78] sm:$0xff]  ;;  %v5819_v26 = vcombine.low %v1215_v9, %v1219_v21  ;;  %v5828_v29 = vcombine.high %v1223_v22, %v1227_v23  ;;  %v1231_v40 = vld [vmem:[#allocation6 + $0xf90] sm:$0xff]  ;;  %v6090_v4 = vld [vmem:[#allocation9 + $0x18] sm:$0xff]  }
 0x30d   :  { %4507 = vmatpush1.bf16.msra.mxu1 %v5781_v28  ;;  %4336 = vmatprep.subr.bf16.mxu0 %v5788_v43  ;;  %v5821_v28 = vcombine.low %v1216_v10, %v1220_v11  ;;  %v5830_v27 = vcombine.high %v1224_v24, %v1228_v25  ;;  %v1235_v30 = vld [vmem:[#allocation6 + $0xfb0] sm:$0xff]  ;;  %v1232_v31 = vld [vmem:[#allocation6 + $0xf98] sm:$0xff]  ;;  %v5827_v34 = vcombine.low %v1223_v22, %v1227_v23  ;;  %v6092_v6 = vld [vmem:[#allocation9 + $0x60] sm:$0xff]  }
 0x30e   :  { %4508 = vmatprep.subr.bf16.mxu1 %v5790_v46  ;;  %v1236_v33 = vld [vmem:[#allocation6 + $0xfb8] sm:$0xff]  ;;  %v5829_v35 = vcombine.low %v1224_v24, %v1228_v25  ;;  %v5836_v59 = vcombine.high %v1231_v40, %v1235_v30  ;;  %v1239_v3 = vld [vmem:[#allocation6 + $0xfd0] sm:$0xff]  ;;  %v5835_v46 = vcombine.low %v1231_v40, %v1235_v30  ;;  %v6106_v22 = vld [vmem:[#allocation9 + $0x38] sm:$0xff]  }
 0x30f   :  { %v5838_v37 = vcombine.high %v1232_v31, %v1236_v33  ;;  %v1243_v38 = vld [vmem:[#allocation6 + $0xff0] sm:$0xff]  ;;  %v1240_v39 = vld [vmem:[#allocation6 + $0xfd8] sm:$0xff]  ;;  %v5837_v48 = vcombine.low %v1232_v31, %v1236_v33  ;;  %v6107_v23 = vld [vmem:[#allocation9 + $0xb8] sm:$0xff]  }
 0x310   :  { %4337 = vmatpush1.bf16.msra.mxu0 %v5787_v53  ;;  %v1244_v43 = vld [vmem:[#allocation6 + $0xff8] sm:$0xff]  ;;  %v5844_v49 = vcombine.high %v1239_v3, %v1243_v38  ;;  %v5843_v52 = vcombine.low %v1239_v3, %v1243_v38  ;;  %v6080_v58 = vld [vmem:[#allocation9 + $0x48] sm:$0xff]   ;;  %v6108_v24 = vld [vmem:[#allocation9 + $0x140] sm:$0xff]  }
 0x311   :  { %4509 = vmatpush1.bf16.msra.mxu1 %v5789_v54  ;;  %4338 = vmatprep.subr.bf16.mxu0 %v5796_v42  ;;  %v5846_v50 = vcombine.high %v1240_v39, %v1244_v43  ;;  %v5845_v53 = vcombine.low %v1240_v39, %v1244_v43  ;;  %v6076_v54 = vld [vmem:[#allocation9 + $0x40] sm:$0xff]   ;;  %v6081_v60 = vld [vmem:[#allocation9 + $0xc8] sm:$0xff]   ;;  %v6087_v1 = vld [vmem:[#allocation9 + $0x90] sm:$0xff]  }
 0x312   :  { %4510 = vmatprep.subr.bf16.mxu1 %v5798_v56  ;;  %v6077_v42 = vld [vmem:[#allocation9 + $0xc0] sm:$0xff]   ;;  %v6082_v14 = vld [vmem:[#allocation9 + $0x8] sm:$0xff]   ;;  %v6100_v10 = vld [vmem:[#allocation9 + $0x70] sm:$0xff]  }
 0x313   :  { %v6078_v56 = vld [vmem:[#allocation9] sm:$0xff]   ;;  %v6098_v9 = vld [vmem:[#allocation9 + $0x28] sm:$0xff]   ;;  %v6101_v11 = vld [vmem:[#allocation9 + $0xf0] sm:$0xff]  }
 0x314   :  { %4339 = vmatpush1.bf16.msra.mxu0 %v5795_v62  ;;  %v6083_v62 = vld [vmem:[#allocation9 + $0x88] sm:$0xff]   ;;  %v6109_v25 = vld [vmem:[#allocation9 + $0x1c0] sm:$0xff]   ;;  %v6116_v31 = vld [vmem:[#allocation9 + $0x150] sm:$0xff]  }
 0x315   :  { %4511 = vmatpush1.bf16.msra.mxu1 %v5797_v61  ;;  %4340 = vmatprep.subr.bf16.mxu0 %v5804_v63  ;;  %v6084_v61 = vld [vmem:[#allocation9 + $0x50] sm:$0xff]   ;;  %v6099_v21 = vld [vmem:[#allocation9 + $0xa8] sm:$0xff]   ;;  %v6124_v3 = vld [vmem:[#allocation9 + $0x160] sm:$0xff]  }
 0x316   :  { %4512 = vmatprep.subr.bf16.mxu1 %v5806_v19  ;;  %v6085_v63 = vld [vmem:[#allocation9 + $0xd0] sm:$0xff]   ;;  %v6114_v40 = vld [vmem:[#allocation9 + $0x108] sm:$0xff]   ;;  %v6125_v38 = vld [vmem:[#allocation9 + $0x1e0] sm:$0xff]  }
 0x317   :  { %v6086_v19 = vld [vmem:[#allocation9 + $0x10] sm:$0xff]   ;;  %v6115_v30 = vld [vmem:[#allocation9 + $0x188] sm:$0xff]   ;;  %v6126_v39 = vld [vmem:[#allocation9 + $0x120] sm:$0xff]  }
 0x318   :  { %4341 = vmatpush1.bf16.msra.mxu0 %v5803_v15  ;;  %v6093_v15 = vld [vmem:[#allocation9 + $0xe0] sm:$0xff]   ;;  %v6117_v33 = vld [vmem:[#allocation9 + $0x1d0] sm:$0xff]  }
 0x319   :  { %4513 = vmatpush1.bf16.msra.mxu1 %v5805_v16  ;;  %4342 = vmatprep.subr.bf16.mxu0 %v5812_v7  ;;  %v6095_v16 = vld [vmem:[#allocation9 + $0xa0] sm:$0xff]   ;;  %v6096_v7 = vld [vmem:[#allocation9 + $0x68] sm:$0xff]  }
 0x31a   :  { %4514 = vmatprep.subr.bf16.mxu1 %v5814_v8  ;;  %v6097_v8 = vld [vmem:[#allocation9 + $0xe8] sm:$0xff]   ;;  %v6127_v43 = vld [vmem:[#allocation9 + $0x1a0] sm:$0xff]  }
 0x31c   :  { %4343 = vmatpush1.bf16.msra.mxu0 %v5811_v12  ;;  %v6102_v12 = vld [vmem:[#allocation9 + $0x30] sm:$0xff]  }
 0x31d   :  { %4515 = vmatpush1.bf16.msra.mxu1 %v5813_v17  ;;  %4344 = vmatprep.subr.bf16.mxu0 %v5820_v18  ;;  %v6103_v17 = vld [vmem:[#allocation9 + $0xb0] sm:$0xff]   ;;  %v6104_v18 = vld [vmem:[#allocation9 + $0x78] sm:$0xff]  }
 0x31e   :  { %4516 = vmatprep.subr.bf16.mxu1 %v5822_v20  ;;  %v6105_v20 = vld [vmem:[#allocation9 + $0xf8] sm:$0xff]  }
 0x320   :  { %4345 = vmatpush1.bf16.msra.mxu0 %v5819_v26  ;;  %v6110_v26 = vld [vmem:[#allocation9 + $0x100] sm:$0xff]  }
 0x321   :  { %4517 = vmatpush1.bf16.msra.mxu1 %v5821_v28  ;;  %4346 = vmatprep.subr.bf16.mxu0 %v5828_v29  ;;  %v6111_v28 = vld [vmem:[#allocation9 + $0x180] sm:$0xff]   ;;  %v6112_v29 = vld [vmem:[#allocation9 + $0x148] sm:$0xff]  }
 0x322   :  { %4518 = vmatprep.subr.bf16.mxu1 %v5830_v27  ;;  %v6113_v27 = vld [vmem:[#allocation9 + $0x1c8] sm:$0xff]  }
 0x324   :  { %4347 = vmatpush1.bf16.msra.mxu0 %v5827_v34  ;;  %v6118_v34 = vld [vmem:[#allocation9 + $0x110] sm:$0xff]  }
 0x325   :  { %4519 = vmatpush1.bf16.msra.mxu1 %v5829_v35  ;;  %4348 = vmatprep.subr.bf16.mxu0 %v5836_v59  ;;  %v6119_v35 = vld [vmem:[#allocation9 + $0x190] sm:$0xff]   ;;  %v6120_v59 = vld [vmem:[#allocation9 + $0x158] sm:$0xff]  }
 0x326   :  { %4520 = vmatprep.subr.bf16.mxu1 %v5838_v37  ;;  %v6121_v37 = vld [vmem:[#allocation9 + $0x1d8] sm:$0xff]  }
 0x328   :  { %4349 = vmatpush1.bf16.msra.mxu0 %v5835_v46  ;;  %v6128_v46 = vld [vmem:[#allocation9 + $0x168] sm:$0xff]  }
 0x329   :  { %4521 = vmatpush1.bf16.msra.mxu1 %v5837_v48  ;;  %4350 = vmatprep.subr.bf16.mxu0 %v5844_v49  ;;  %v6129_v48 = vld [vmem:[#allocation9 + $0x1e8] sm:$0xff]  }
 0x32a   :  { %4522 = vmatprep.subr.bf16.mxu1 %v5846_v50  ;;  %v6130_v49 = vld [vmem:[#allocation9 + $0x128] sm:$0xff]  }
 0x32b   :  { %v6131_v50 = vld [vmem:[#allocation9 + $0x1a8] sm:$0xff]  }
 0x32c   :  { %4351 = vmatpush1.bf16.msra.mxu0 %v5843_v52  ;;  %v6132_v52 = vld [vmem:[#allocation9 + $0x170] sm:$0xff]  }
 0x32d   :  { %4523 = vmatpush1.bf16.msra.mxu1 %v5845_v53  ;;  %5912 = vmatprep.subr.bf16.mxu0 %v6076_v54  ;;  %v6133_v53 = vld [vmem:[#allocation9 + $0x1f0] sm:$0xff]  }
 0x32e   :  { %5934 = vmatprep.subr.bf16.mxu1 %v6077_v42  ;;  %v6134_v54 = vld [vmem:[#allocation9 + $0x130] sm:$0xff]  }
 0x32f   :  { %4353 = vmatmul.mubr.bf16.vlgmr.msra.gmra.mrb[12].mxu0 %v6494_v55  ;;  %v6135_v42 = vld [vmem:[#allocation9 + $0x1b0] sm:$0xff]  }
 0x330   :  { %4525 = vmatmul.mubr.bf16.vlgmr.msra.gmra.mrb[12].mxu1 %v6494_v55  ;;  %5913 = vmatpush3.bf16.msra.mxu0 %v6078_v56  ;;  %v6089_v55 = vld [vmem:[#allocation9 + $0xd8] sm:$0xff]  }
 0x331   :  { %5110 = vmatprep.mubr.bf16.mxu0 %v6540_v0  ;;  %5935 = vmatpush3.bf16.msra.mxu1 %v6079_v57  ;;  %v6091_v0 = vld [vmem:[#allocation9 + $0x98] sm:$0xff]  }
 0x332   :  { %5151 = vmatprep.mubr.bf16.mxu1 %v6542_v45  ;;  %5914 = vmatprep.subr.bf16.mxu0 %v6080_v58  ;;  %v6094_v45 = vld [vmem:[#allocation9 + $0x20] sm:$0xff]   ;;  %v6136_v56 = vld [vmem:[#allocation9 + $0x178] sm:$0xff]  }
 0x333   :  { %5936 = vmatprep.subr.bf16.mxu1 %v6081_v60  ;;  %v6137_v57 = vld [vmem:[#allocation9 + $0x1f8] sm:$0xff]  }
 0x334   :  { %5915 = vmatpush3.bf16.msra.mxu0 %v6082_v14  ;;  %v6138_v58 = vld [vmem:[#allocation9 + $0x138] sm:$0xff]   ;;  %v1266_v14 = vrot.slane %v6522_v44, %v189_v32 }
 0x335   :  { %5937 = vmatpush3.bf16.msra.mxu1 %v6083_v62  ;;  %5916 = vmatprep.subr.bf16.mxu0 %v6084_v61  ;;  %v6139_v60 = vld [vmem:[#allocation9 + $0x1b8] sm:$0xff]   ;;  %v1274_v62 = vrot.slane %v6522_v44, %v197_v47  ;;  %v1270_v61 = vrot.slane %v6522_v44, %v193_v36 }
 0x336   :  { %5938 = vmatprep.subr.bf16.mxu1 %v6085_v63  ;;  %v1278_v63 = vrot.slane %v6522_v44, %v201_v51 }
 0x338   :  { %5917 = vmatpush3.bf16.msra.mxu0 %v6086_v19 }
 0x339   :  { %5939 = vmatpush3.bf16.msra.mxu1 %v6087_v1  ;;  %5918 = vmatprep.subr.bf16.mxu0 %v6088_v2 }
 0x33a   :  { %5940 = vmatprep.subr.bf16.mxu1 %v6089_v55 }
 0x33c   :  { %5919 = vmatpush3.bf16.msra.mxu0 %v6090_v4 }
 0x33d   :  { %5941 = vmatpush3.bf16.msra.mxu1 %v6091_v0  ;;  %5920 = vmatprep.subr.bf16.mxu0 %v6092_v6 }
 0x33e   :  { %5942 = vmatprep.subr.bf16.mxu1 %v6093_v15 }
 0x340   :  { %5921 = vmatpush3.bf16.msra.mxu0 %v6094_v45 }
 0x341   :  { %5943 = vmatpush3.bf16.msra.mxu1 %v6095_v16  ;;  %5922 = vmatprep.subr.bf16.mxu0 %v6096_v7 }
 0x342   :  { %5944 = vmatprep.subr.bf16.mxu1 %v6097_v8 }
 0x344   :  { %5923 = vmatpush3.bf16.msra.mxu0 %v6098_v9 }
 0x345   :  { %5945 = vmatpush3.bf16.msra.mxu1 %v6099_v21  ;;  %5924 = vmatprep.subr.bf16.mxu0 %v6100_v10 }
 0x346   :  { %5946 = vmatprep.subr.bf16.mxu1 %v6101_v11 }
 0x348   :  { %5925 = vmatpush3.bf16.msra.mxu0 %v6102_v12 }
 0x349   :  { %5947 = vmatpush3.bf16.msra.mxu1 %v6103_v17  ;;  %5926 = vmatprep.subr.bf16.mxu0 %v6104_v18 }
 0x34a   :  { %5948 = vmatprep.subr.bf16.mxu1 %v6105_v20 }
 0x34c   :  { %5927 = vmatpush3.bf16.msra.mxu0 %v6106_v22 }
 0x34d   :  { %5949 = vmatpush3.bf16.msra.mxu1 %v6107_v23  ;;  %5956 = vmatprep.subr.bf16.mxu0 %v6108_v24 }
 0x34e   :  { %5978 = vmatprep.subr.bf16.mxu1 %v6109_v25 }
 0x34f   :  { %5111 = vmatmul.mubr.bf16.vlgmr.msra.gmra.mrb[16].mxu0 %v6536_v5  ;;  %v6122_v5 = vld [vmem:[#allocation9 + $0x118] sm:$0xff]  }
 0x350   :  { %5152 = vmatmul.mubr.bf16.vlgmr.msra.gmra.mrb[16].mxu1 %v6538_v41  ;;  %5957 = vmatpush3.bf16.msra.mxu0 %v6110_v26  ;;  %v6123_v41 = vld [vmem:[#allocation9 + $0x198] sm:$0xff]   ;;  %v5847_v26 = vld [vmem:[#allocation10] ss:$0 sm:$0xff] }
 0x351   :  { %5979 = vmatpush3.bf16.msra.mxu1 %v6111_v28  ;;  %5958 = vmatprep.subr.bf16.mxu0 %v6112_v29 }
 0x352   :  { %5980 = vmatprep.subr.bf16.mxu1 %v6113_v27 }
 0x354   :  { %5959 = vmatpush3.bf16.msra.mxu0 %v6114_v40 }
 0x355   :  { %5981 = vmatpush3.bf16.msra.mxu1 %v6115_v30  ;;  %5960 = vmatprep.subr.bf16.mxu0 %v6116_v31 }
 0x356   :  { %5982 = vmatprep.subr.bf16.mxu1 %v6117_v33 }
 0x358   :  { %5961 = vmatpush3.bf16.msra.mxu0 %v6118_v34 }
 0x359   :  { %5983 = vmatpush3.bf16.msra.mxu1 %v6119_v35  ;;  %5962 = vmatprep.subr.bf16.mxu0 %v6120_v59 }
 0x35a   :  { %5984 = vmatprep.subr.bf16.mxu1 %v6121_v37 }
 0x35c   :  { %5963 = vmatpush3.bf16.msra.mxu0 %v6122_v5 }
 0x35d   :  { %5985 = vmatpush3.bf16.msra.mxu1 %v6123_v41  ;;  %5964 = vmatprep.subr.bf16.mxu0 %v6124_v3 }
 0x35e   :  { %5986 = vmatprep.subr.bf16.mxu1 %v6125_v38 }
 0x360   :  { %5965 = vmatpush3.bf16.msra.mxu0 %v6126_v39 }
 0x361   :  { %5987 = vmatpush3.bf16.msra.mxu1 %v6127_v43  ;;  %5966 = vmatprep.subr.bf16.mxu0 %v6128_v46 }
 0x362   :  { %5988 = vmatprep.subr.bf16.mxu1 %v6129_v48 }
 0x364   :  { %5967 = vmatpush3.bf16.msra.mxu0 %v6130_v49 }
 0x365   :  { %5989 = vmatpush3.bf16.msra.mxu1 %v6131_v50  ;;  %5968 = vmatprep.subr.bf16.mxu0 %v6132_v52 }
 0x366   :  { %5990 = vmatprep.subr.bf16.mxu1 %v6133_v53 }
 0x368   :  { %5969 = vmatpush3.bf16.msra.mxu0 %v6134_v54 }
 0x369   :  { %5991 = vmatpush3.bf16.msra.mxu1 %v6135_v42  ;;  %5970 = vmatprep.subr.bf16.mxu0 %v6136_v56 }
 0x36a   :  { %5992 = vmatprep.subr.bf16.mxu1 %v6137_v57 }
 0x36c   :  { %5971 = vmatpush3.bf16.msra.mxu0 %v6138_v58 }
 0x36d   :  { %5993 = vmatpush3.bf16.msra.mxu1 %v6139_v60 }
 0x402   :  { %v4354_v19 = vpop.f32.mrb[12].mxu0 }
 0x403   :  { %v6008_v1 = vadd.f32 %v4354_v19, %v1266_v14  ;;  %v4526_v2 = vpop.f32.mrb[12].mxu1  ;;  %v4356_v55 = vpop.f32.mrb[13].mxu0 }
 0x404   :  { %v6012_v4 = vadd.f32 %v4526_v2, %v1274_v62  ;;  %v6009_v0 = vadd.f32 %v4356_v55, %v1270_v61  ;;  %v4528_v6 = vpop.f32.mrb[13].mxu1  ;;  %v4358_v32 = vpop.f32.mrb[14].mxu0 }
 0x405   :  { %v6013_v15 = vadd.f32 %v4528_v6, %v1278_v63  ;;  %v6010_v45 = vadd.f32 %v4358_v32, %v1266_v14  ;;  %v4530_v16 = vpop.f32.mrb[14].mxu1  ;;  %v4360_v47 = vpop.f32.mrb[15].mxu0  ;;  %v4539_v36 = vmax.f32 %v6008_v1, 0.0 }
 0x406   :  { %v6014_v7 = vadd.f32 %v4530_v16, %v1274_v62  ;;  %v6011_v8 = vadd.f32 %v4360_v47, %v1270_v61  ;;  %v4532_v9 = vpop.f32.mrb[15].mxu1  ;;  %v4541_v10 = vmax.f32 %v6012_v4, 0.0  ;;  %v4540_v51 = vmax.f32 %v6009_v0, 0.0 }
 0x407   :  { %v4547_v21 = vmax.f32 %v6010_v45, 0.0  ;;  %v6015_v13 = vadd.f32 %v4532_v9, %v1278_v63  ;;  %v4542_v12 = vmax.f32 %v6013_v15, 0.0 }
 0x408   :  { %v4549_v44 = vmax.f32 %v6014_v7, 0.0  ;;  %v4548_v11 = vmax.f32 %v6011_v8, 0.0 }
 0x409   :  { %v4555_v17 = vpack.c.bf16 %v4547_v21, %v4539_v36  ;;  %v4550_v18 = vmax.f32 %v6015_v13, 0.0 }
 0x40a   :  { %v4557_v20 = vpack.c.bf16 %v4549_v44, %v4541_v10  ;;  %v4556_v22 = vpack.c.bf16 %v4548_v11, %v4540_v51 }
 0x40b   :  { %v4558_v23 = vpack.c.bf16 %v4550_v18, %v4542_v12 }
 0x40c   :  { %5192 = vmatprep.mubr.bf16.mxu0 %v4556_v22 }
 0x40d   :  { %5233 = vmatprep.mubr.bf16.mxu1 %v4558_v23  ;;  %5193 = vmatmul.mubr.bf16.vlgmr.msra.gmra.mrb[20].mxu0 %v4555_v17 }
 0x40e   :  { %5234 = vmatmul.mubr.bf16.vlgmr.msra.gmra.mrb[20].mxu1 %v4557_v20 }
 0x422   :  { %v5928_v24 = vpop.f32.mrb[16].mxu0 }
 0x423   :  { %v5950_v25 = vpop.f32.mrb[16].mxu1  ;;  %v5929_v28 = vpop.f32.mrb[17].mxu0 }
 0x424   :  { %v5930_v29 = vadd.f32 %v5929_v28, %v5928_v24  ;;  %v5951_v27 = vpop.f32.mrb[17].mxu1  ;;  %v5931_v40 = vpop.f32.mrb[18].mxu0 }
 0x425   :  { %v5952_v30 = vadd.f32 %v5951_v27, %v5950_v25  ;;  %v5953_v31 = vpop.f32.mrb[18].mxu1  ;;  %v5932_v33 = vpop.f32.mrb[19].mxu0 }
 0x426   :  { %v5113_v34 = vadd.f32 %v5930_v29, %v5847_v26  ;;  %v5933_v35 = vadd.f32 %v5932_v33, %v5931_v40  ;;  %v5954_v59 = vpop.f32.mrb[19].mxu1 }
 0x427   :  { %v5955_v37 = vadd.f32 %v5954_v59, %v5953_v31 }
 0x428   :  { %v5154_v5 = vadd.f32 %v5952_v30, %v5113_v34  ;;  %v5116_v41 = vadd.f32 %v5933_v35, %v5847_v26 }
 0x42a   :  { %v5157_v3 = vadd.f32 %v5955_v37, %v5116_v41 }
 0x4e0   :  { %v5972_v38 = vpop.f32.mrb[20].mxu0 }
 0x4e1   :  { %v5994_v39 = vpop.f32.mrb[20].mxu1  ;;  %v5973_v43 = vpop.f32.mrb[21].mxu0 }
 0x4e2   :  { %v5974_v46 = vadd.f32 %v5973_v43, %v5972_v38  ;;  %v5995_v48 = vpop.f32.mrb[21].mxu1  ;;  %v5975_v49 = vpop.f32.mrb[22].mxu0 }
 0x4e3   :  { %v5996_v50 = vadd.f32 %v5995_v48, %v5994_v39  ;;  %v5997_v52 = vpop.f32.mrb[22].mxu1  ;;  %v5976_v53 = vpop.f32.mrb[23].mxu0 }
 0x4e4   :  { %v5195_v54 = vadd.f32 %v5974_v46, %v5154_v5  ;;  %v5977_v42 = vadd.f32 %v5976_v53, %v5975_v49  ;;  %v5998_v56 = vpop.f32.mrb[23].mxu1 }
 0x4e5   :  { %v5999_v57 = vadd.f32 %v5998_v56, %v5997_v52 }
 0x4e6   :  { %v5198_v58 = vadd.f32 %v5977_v42, %v5157_v3  ;;  %v5236_v60 = vadd.f32 %v5996_v50, %v5195_v54 }
 0x4e8   :  { %5242 = vmax.xlane.f32.xlu0 %v5236_v60  ;;  %v5239_v14 = vadd.f32 %v5999_v57, %v5198_v58 }
 0x4ec   :  { %5244 = vmax.xlane.f32.xlu0 %v5239_v14 }
 0x575   :  { %v5243_v62 = vpop.xlane.xlu0 %5242 }
 0x576   :  { %v5246_v61 = vsub.f32 %v5236_v60, %v5243_v62 }
 0x578   :  { %v5248_v63 = vmul.f32 1.442695, %v5246_v61 }
 0x579   :  { %v5245_v19 = vpop.xlane.xlu0 %5244 }
 0x57a   :  { %6140 = vpow2.f32 %v5248_v63  ;;  %v5247_v1 = vsub.f32 %v5239_v14, %v5245_v19 }
 0x57c   :  { %v5250_v2 = vmul.f32 1.442695, %v5247_v1 }
 0x57e   :  { %6142 = vpow2.f32 %v5250_v2 }
 0x584   :  { %v6141_v55 = vpop.eup %6140 }
 0x585   :  { %5252 = vadd.xlane.f32.xlu1 %v6141_v55 }
 0x588   :  { %v6143_v4 = vpop.eup %6142 }
 0x589   :  { %5254 = vadd.xlane.f32.xlu1 %v6143_v4 }
 0x612   :  { %v5253_v0 = vpop.xlane.xlu1 %5252 }
 0x613   :  { %6144 = vrcp.f32 %v5253_v0 }
 0x616   :  { %v5255_v6 = vpop.xlane.xlu1 %5254 }
 0x617   :  { %6146 = vrcp.f32 %v5255_v6 }
 0x61d   :  { %v6145_v32 = vpop.eup %6144 }
 0x61e   :  { %v5257_v15 = vmul.f32 %v6145_v32, %v6141_v55 }
 0x620   :  { %5260 = vst [vmem:[%s6575_s7] sm:$0xff] %v5257_v15 }
 0x621   :  { %v6147_v45 = vpop.eup %6146 }
 0x622   :  { %v5259_v16 = vmul.f32 %v6147_v45, %v6143_v4 }
 0x624   :  { %5261 = vst [vmem:[%s6575_s7 + $0x8] sm:$0xff] %v5259_v16 }
 0x625   :  { %5266 = vsyncpa [#allocation3], 1 }
 0x626   :  { %5267 = vsyncpa [#allocation5], 1 }
 0x627   :  { %5268 = vsyncpa [#allocation8], 1 }
 0x628   :  { %5269 = vsyncpa [#allocation11], 1 }

</bundles_post_ra>
